<compile_context>
chip_gen: v6e
topology: v6e:2x2x1
jax: 0.10.0
libtpu: 0.0.40
codegen_flags: <defaults>
</compile_context>

<pallas_src>
import jax
import jax.numpy as jnp
from jax import lax
from jax.experimental import pallas as pl
from jax.experimental.pallas import tpu as pltpu


def bottleneck_kernel(x_ref, w1_ref, w2_ref, w3_ref, b1_ref, b2_ref, b3_ref,
                      out_ref, pad_ref):
    H, W, Cin = x_ref.shape
    P = w1_ref.shape[1]           # planes
    Cout = w3_ref.shape[1]        # planes * 4 (== Cin, downsample=None path)
    HW = H * W

    # ---- conv1 (1x1) + folded bn1 + relu: one channel matmul on the MXU ----
    x = x_ref[...].reshape(HW, Cin)
    y1 = jnp.dot(x, w1_ref[...], preferred_element_type=jnp.float32)
    y1 = jnp.maximum(y1 + b1_ref[...], 0.0)

    # ---- conv2 (3x3, pad=1, stride=1) as ONE fat-K (9*P) matmul ------------
    # Refresh only the 1-pixel halo border of the padded scratch; the interior
    # is fully overwritten every grid step, so nothing stale leaks between
    # batch elements even with "parallel" semantics.
    pad_ref[0:1, :, :] = jnp.zeros((1, W + 2, P), jnp.float32)
    pad_ref[H + 1:H + 2, :, :] = jnp.zeros((1, W + 2, P), jnp.float32)
    pad_ref[:, 0:1, :] = jnp.zeros((H + 2, 1, P), jnp.float32)
    pad_ref[:, W + 1:W + 2, :] = jnp.zeros((H + 2, 1, P), jnp.float32)
    pad_ref[1:H + 1, 1:W + 1, :] = y1.reshape(H, W, P)

    # im2col: 9 shifted views concatenated on channels -> contraction K = 9*P,
    # tap order (dy, dx, cin) matches the (KH, KW, I, O)-flattened weight.
    taps = [pad_ref[dy:dy + H, dx:dx + W, :].reshape(HW, P)
            for dy in range(3) for dx in range(3)]
    patches = jnp.concatenate(taps, axis=-1)                    # (HW, 9P)
    y2 = jnp.dot(patches, w2_ref[...], preferred_element_type=jnp.float32)
    y2 = jnp.maximum(y2 + b2_ref[...], 0.0)

    # ---- conv3 (1x1) + folded bn3 + residual + relu -------------------------
    y3 = jnp.dot(y2, w3_ref[...], preferred_element_type=jnp.float32)
    res = x_ref[...].reshape(HW, Cout)          # re-read residual from VMEM tile
    y3 = jnp.maximum(y3 + b3_ref[...] + res, 0.0)

    out_ref[...] = y3.reshape(H, W, Cout).astype(out_ref.dtype)


def bottleneck_pallas(x_nchw, w1_oihw, w2_oihw, w3_oihw, bn_params, eps=1e-5):
    """x_nchw: (N, Cin, H, W); weights in PyTorch OIHW. Returns NCHW."""
    N, Cin, H, W = x_nchw.shape
    P = w1_oihw.shape[0]
    Cout = w3_oihw.shape[0]
    assert Cout == Cin, "downsample=None path requires inplanes == planes*4"

    # layout conversion (glue, plain JAX)
    x_nhwc = jnp.transpose(x_nchw, (0, 2, 3, 1))

    # fold BN (inference) -> per-channel scale/bias, then fold scale into weights
    def fold(g, b, m, v):
        s = g / jnp.sqrt(v + eps)
        return s, (b - m * s)

    s1, b1 = fold(*bn_params[0])
    s2, b2 = fold(*bn_params[1])
    s3, b3 = fold(*bn_params[2])

    w1 = jnp.transpose(w1_oihw[:, :, 0, 0] * s1[:, None], (1, 0))           # (Cin, P)
    w2 = jnp.transpose(w2_oihw * s2[:, None, None, None], (2, 3, 1, 0))     # (3,3,P,P) HWIO
    w2 = w2.reshape(9 * P, P)                                               # rows: (dy,dx,cin)
    w3 = jnp.transpose(w3_oihw[:, :, 0, 0] * s3[:, None], (1, 0))           # (P, Cout)

    b1 = b1.reshape(1, P)
    b2 = b2.reshape(1, P)
    b3 = b3.reshape(1, Cout)

    # weights / biases: constant index_map -> stay resident in VMEM across grid
    def const_spec(shape):
        return pl.BlockSpec(shape, lambda n: (0,) * len(shape))

    out_nhwc = pl.pallas_call(
        bottleneck_kernel,
        out_shape=jax.ShapeDtypeStruct((N, H, W, Cout), x_nchw.dtype),
        grid=(N,),
        in_specs=[
            pl.BlockSpec((None, H, W, Cin), lambda n: (n, 0, 0, 0)),
            const_spec((Cin, P)),
            const_spec((9 * P, P)),
            const_spec((P, Cout)),
            const_spec((1, P)),
            const_spec((1, P)),
            const_spec((1, Cout)),
        ],
        out_specs=pl.BlockSpec((None, H, W, Cout), lambda n: (n, 0, 0, 0)),
        scratch_shapes=[pltpu.VMEM((H + 2, W + 2, P), jnp.float32)],
        compiler_params=pltpu.CompilerParams(
            dimension_semantics=("parallel",),        # megacore sharding on v7x
            vmem_limit_bytes=32 * 1024 * 1024,        # safe on v5e/v6e/v7x
        ),
    )(x_nhwc, w1, w2, w3, b1, b2, b3)

    return jnp.transpose(out_nhwc, (0, 3, 1, 2))                 # back to NCHW


# ---------------- pure-JAX reference (for correctness check) ----------------
def bottleneck_ref(x_nchw, w1_oihw, w2_oihw, w3_oihw, bn_params, eps=1e-5):
    x = jnp.transpose(x_nchw, (0, 2, 3, 1))
    dn = ('NHWC', 'HWIO', 'NHWC')

    def bn(y, g, b, m, v):
        s = g / jnp.sqrt(v + eps)
        return y * s + (b - m * s)

    w1 = jnp.transpose(w1_oihw, (2, 3, 1, 0))
    w2 = jnp.transpose(w2_oihw, (2, 3, 1, 0))
    w3 = jnp.transpose(w3_oihw, (2, 3, 1, 0))

    hp = lax.Precision.HIGHEST
    y = lax.conv_general_dilated(x, w1, (1, 1), 'VALID', dimension_numbers=dn,
                                 precision=hp)
    y = jnp.maximum(bn(y, *bn_params[0]), 0.0)
    y = lax.conv_general_dilated(y, w2, (1, 1), 'SAME', dimension_numbers=dn,
                                 precision=hp)
    y = jnp.maximum(bn(y, *bn_params[1]), 0.0)
    y = lax.conv_general_dilated(y, w3, (1, 1), 'VALID', dimension_numbers=dn,
                                 precision=hp)
    y = bn(y, *bn_params[2]) + x
    y = jnp.maximum(y, 0.0)
    return jnp.transpose(y, (0, 3, 1, 2))


if __name__ == "__main__":
    key = jax.random.PRNGKey(0)
    ks = jax.random.split(key, 16)

    N, H, W = 2, 16, 16
    planes = 32
    inplanes = planes * 4   # 128: residual adds without downsample, lane-dense C

    x = jax.random.normal(ks[0], (N, inplanes, H, W), jnp.float32)

    # conv weights (PyTorch OIHW shapes), deterministic
    w1 = 0.1 * jax.random.normal(ks[1], (planes, inplanes, 1, 1), jnp.float32)
    w2 = 0.1 * jax.random.normal(ks[2], (planes, planes, 3, 3), jnp.float32)
    w3 = 0.1 * jax.random.normal(ks[3], (planes * 4, planes, 1, 1), jnp.float32)

    # BatchNorm params (gamma, beta, running_mean, running_var), deterministic
    def make_bn(c, k0, k1, k2, k3):
        gamma = jax.random.uniform(k0, (c,), jnp.float32, 0.5, 1.5)
        beta = 0.1 * jax.random.normal(k1, (c,), jnp.float32)
        mean = 0.1 * jax.random.normal(k2, (c,), jnp.float32)
        var = jax.random.uniform(k3, (c,), jnp.float32, 0.5, 1.5)
        return (gamma, beta, mean, var)

    bn_params = (
        make_bn(planes, ks[4], ks[5], ks[6], ks[7]),
        make_bn(planes, ks[8], ks[9], ks[10], ks[11]),
        make_bn(planes * 4, ks[12], ks[13], ks[14], ks[15]),
    )

    out = jax.block_until_ready(bottleneck_pallas(x, w1, w2, w3, bn_params))

    ref = bottleneck_ref(x, w1, w2, w3, bn_params)
    assert out.shape == (N, inplanes, H, W)
    max_err = jnp.max(jnp.abs(out - ref))
    assert jnp.allclose(out, ref, atol=1e-3, rtol=1e-3), f"max abs err {max_err}"

    print("KERNEL_OK")
</pallas_src>

<mosaic_0001>
module attributes {stable_mosaic.version = 11 : i64} {
  func.func @bottleneck_kernel(%arg0: i32, %arg1: memref<1x16x16x128xf32, #tpu.memory_space<vmem>>, %arg2: memref<128x32xf32, #tpu.memory_space<vmem>>, %arg3: memref<288x32xf32, #tpu.memory_space<vmem>>, %arg4: memref<32x128xf32, #tpu.memory_space<vmem>>, %arg5: memref<1x32xf32, #tpu.memory_space<vmem>>, %arg6: memref<1x32xf32, #tpu.memory_space<vmem>>, %arg7: memref<1x128xf32, #tpu.memory_space<vmem>>, %arg8: memref<1x16x16x128xf32, #tpu.memory_space<vmem>>, %arg9: memref<18x18x32xf32, #tpu.memory_space<vmem>>) attributes {dimension_semantics = [#tpu.dimension_semantics<parallel>], iteration_bounds = array<i64: 2>, scalar_prefetch = 0 : i64, scratch_operands = 1 : i64, tpu.core_type = #tpu.core_type<tc>, window_params = [{transform_indices = @transform_0, window_bounds = array<i64: 1, 16, 16, 128>}, {pipeline_mode = #tpu.pipeline_mode<synchronous>, transform_indices = @transform_1, window_bounds = array<i64: 128, 32>}, {pipeline_mode = #tpu.pipeline_mode<synchronous>, transform_indices = @transform_2, window_bounds = array<i64: 288, 32>}, {pipeline_mode = #tpu.pipeline_mode<synchronous>, transform_indices = @transform_3, window_bounds = array<i64: 32, 128>}, {pipeline_mode = #tpu.pipeline_mode<synchronous>, transform_indices = @transform_4, window_bounds = array<i64: 1, 32>}, {pipeline_mode = #tpu.pipeline_mode<synchronous>, transform_indices = @transform_5, window_bounds = array<i64: 1, 32>}, {pipeline_mode = #tpu.pipeline_mode<synchronous>, transform_indices = @transform_6, window_bounds = array<i64: 1, 128>}, {transform_indices = @transform_7, window_bounds = array<i64: 1, 16, 16, 128>}]} {
    %c0 = arith.constant 0 : index
    %c0_0 = arith.constant 0 : index
    %c0_1 = arith.constant 0 : index
    %c0_2 = arith.constant 0 : index
    %0 = vector.load %arg1[%c0, %c0_0, %c0_1, %c0_2] : memref<1x16x16x128xf32, #tpu.memory_space<vmem>>, vector<1x16x16x128xf32>
    %1 = vector.shape_cast %0 : vector<1x16x16x128xf32> to vector<16x16x128xf32>
    %2 = vector.shape_cast %1 : vector<16x16x128xf32> to vector<256x128xf32>
    %c0_3 = arith.constant 0 : index
    %c0_4 = arith.constant 0 : index
    %3 = vector.load %arg2[%c0_3, %c0_4] : memref<128x32xf32, #tpu.memory_space<vmem>>, vector<128x32xf32>
    %cst = arith.constant dense<0.000000e+00> : vector<256x32xf32>
    %4 = tpu.matmul %2, %3, %cst {dimension_numbers = #tpu.dot_dimension_numbers<[1], [0], [0], [1], [0, 0, 1, 1], [], []>} : vector<256x128xf32>, vector<128x32xf32>, vector<256x32xf32> -> vector<256x32xf32>
    %c0_5 = arith.constant 0 : index
    %c0_6 = arith.constant 0 : index
    %5 = vector.load %arg5[%c0_5, %c0_6] : memref<1x32xf32, #tpu.memory_space<vmem>>, vector<1x32xf32>
    %6 = vector.broadcast %5 : vector<1x32xf32> to vector<256x32xf32>
    %7 = arith.addf %4, %6 : vector<256x32xf32>
    %cst_7 = arith.constant 0.000000e+00 : f32
    %8 = vector.broadcast %cst_7 : f32 to vector<256x32xf32>
    %9 = arith.maximumf %7, %8 : vector<256x32xf32>
    %cst_8 = arith.constant 0.000000e+00 : f32
    %10 = vector.broadcast %cst_8 : f32 to vector<1x18x32xf32>
    %c0_9 = arith.constant 0 : index
    %c0_10 = arith.constant 0 : index
    %c0_11 = arith.constant 0 : index
    %11 = vector.load %arg9[%c0_9, %c0_10, %c0_11] : memref<18x18x32xf32, #tpu.memory_space<vmem>>, vector<1x18x32xf32>
    tpu.vector_store %arg9[%c0_9, %c0_10, %c0_11], %10 {strides = array<i32>} : memref<18x18x32xf32, #tpu.memory_space<vmem>>, vector<1x18x32xf32>,
    %cst_12 = arith.constant 0.000000e+00 : f32
    %12 = vector.broadcast %cst_12 : f32 to vector<1x18x32xf32>
    %c17 = arith.constant 17 : index
    %c0_13 = arith.constant 0 : index
    %c0_14 = arith.constant 0 : index
    %13 = vector.load %arg9[%c17, %c0_13, %c0_14] : memref<18x18x32xf32, #tpu.memory_space<vmem>>, vector<1x18x32xf32>
    tpu.vector_store %arg9[%c17, %c0_13, %c0_14], %12 {strides = array<i32>} : memref<18x18x32xf32, #tpu.memory_space<vmem>>, vector<1x18x32xf32>,
    %cst_15 = arith.constant 0.000000e+00 : f32
    %14 = vector.broadcast %cst_15 : f32 to vector<18x1x32xf32>
    %c0_16 = arith.constant 0 : index
    %c0_17 = arith.constant 0 : index
    %c0_18 = arith.constant 0 : index
    %15 = vector.load %arg9[%c0_16, %c0_17, %c0_18] : memref<18x18x32xf32, #tpu.memory_space<vmem>>, vector<18x1x32xf32>
    tpu.vector_store %arg9[%c0_16, %c0_17, %c0_18], %14 {strides = array<i32>} : memref<18x18x32xf32, #tpu.memory_space<vmem>>, vector<18x1x32xf32>,
    %cst_19 = arith.constant 0.000000e+00 : f32
    %16 = vector.broadcast %cst_19 : f32 to vector<18x1x32xf32>
    %c0_20 = arith.constant 0 : index
    %c17_21 = arith.constant 17 : index
    %c0_22 = arith.constant 0 : index
    %17 = vector.load %arg9[%c0_20, %c17_21, %c0_22] : memref<18x18x32xf32, #tpu.memory_space<vmem>>, vector<18x1x32xf32>
    tpu.vector_store %arg9[%c0_20, %c17_21, %c0_22], %16 {strides = array<i32>} : memref<18x18x32xf32, #tpu.memory_space<vmem>>, vector<18x1x32xf32>,
    %18 = vector.shape_cast %9 : vector<256x32xf32> to vector<16x16x32xf32>
    %c1 = arith.constant 1 : index
    %c1_23 = arith.constant 1 : index
    %c0_24 = arith.constant 0 : index
    %19 = vector.load %arg9[%c1, %c1_23, %c0_24] : memref<18x18x32xf32, #tpu.memory_space<vmem>>, vector<16x16x32xf32>
    tpu.vector_store %arg9[%c1, %c1_23, %c0_24], %18 {strides = array<i32>} : memref<18x18x32xf32, #tpu.memory_space<vmem>>, vector<16x16x32xf32>,
    %c0_25 = arith.constant 0 : index
    %c0_26 = arith.constant 0 : index
    %c0_27 = arith.constant 0 : index
    %20 = vector.load %arg9[%c0_25, %c0_26, %c0_27] : memref<18x18x32xf32, #tpu.memory_space<vmem>>, vector<16x16x32xf32>
    %21 = vector.shape_cast %20 : vector<16x16x32xf32> to vector<256x32xf32>
    %c0_28 = arith.constant 0 : index
    %c1_29 = arith.constant 1 : index
    %c0_30 = arith.constant 0 : index
    %22 = vector.load %arg9[%c0_28, %c1_29, %c0_30] : memref<18x18x32xf32, #tpu.memory_space<vmem>>, vector<16x16x32xf32>
    %23 = vector.shape_cast %22 : vector<16x16x32xf32> to vector<256x32xf32>
    %c0_31 = arith.constant 0 : index
    %c2 = arith.constant 2 : index
    %c0_32 = arith.constant 0 : index
    %24 = vector.load %arg9[%c0_31, %c2, %c0_32] : memref<18x18x32xf32, #tpu.memory_space<vmem>>, vector<16x16x32xf32>
    %25 = vector.shape_cast %24 : vector<16x16x32xf32> to vector<256x32xf32>
    %c1_33 = arith.constant 1 : index
    %c0_34 = arith.constant 0 : index
    %c0_35 = arith.constant 0 : index
    %26 = vector.load %arg9[%c1_33, %c0_34, %c0_35] : memref<18x18x32xf32, #tpu.memory_space<vmem>>, vector<16x16x32xf32>
    %27 = vector.shape_cast %26 : vector<16x16x32xf32> to vector<256x32xf32>
    %c1_36 = arith.constant 1 : index
    %c1_37 = arith.constant 1 : index
    %c0_38 = arith.constant 0 : index
    %28 = vector.load %arg9[%c1_36, %c1_37, %c0_38] : memref<18x18x32xf32, #tpu.memory_space<vmem>>, vector<16x16x32xf32>
    %29 = vector.shape_cast %28 : vector<16x16x32xf32> to vector<256x32xf32>
    %c1_39 = arith.constant 1 : index
    %c2_40 = arith.constant 2 : index
    %c0_41 = arith.constant 0 : index
    %30 = vector.load %arg9[%c1_39, %c2_40, %c0_41] : memref<18x18x32xf32, #tpu.memory_space<vmem>>, vector<16x16x32xf32>
    %31 = vector.shape_cast %30 : vector<16x16x32xf32> to vector<256x32xf32>
    %c2_42 = arith.constant 2 : index
    %c0_43 = arith.constant 0 : index
    %c0_44 = arith.constant 0 : index
    %32 = vector.load %arg9[%c2_42, %c0_43, %c0_44] : memref<18x18x32xf32, #tpu.memory_space<vmem>>, vector<16x16x32xf32>
    %33 = vector.shape_cast %32 : vector<16x16x32xf32> to vector<256x32xf32>
    %c2_45 = arith.constant 2 : index
    %c1_46 = arith.constant 1 : index
    %c0_47 = arith.constant 0 : index
    %34 = vector.load %arg9[%c2_45, %c1_46, %c0_47] : memref<18x18x32xf32, #tpu.memory_space<vmem>>, vector<16x16x32xf32>
    %35 = vector.shape_cast %34 : vector<16x16x32xf32> to vector<256x32xf32>
    %c2_48 = arith.constant 2 : index
    %c2_49 = arith.constant 2 : index
    %c0_50 = arith.constant 0 : index
    %36 = vector.load %arg9[%c2_48, %c2_49, %c0_50] : memref<18x18x32xf32, #tpu.memory_space<vmem>>, vector<16x16x32xf32>
    %37 = vector.shape_cast %36 : vector<16x16x32xf32> to vector<256x32xf32>
    %38 = tpu.concatenate %21, %23, %25, %27, %29, %31, %33, %35, %37 in 1 : vector<256x32xf32>, vector<256x32xf32>, vector<256x32xf32>, vector<256x32xf32>, vector<256x32xf32>, vector<256x32xf32>, vector<256x32xf32>, vector<256x32xf32>, vector<256x32xf32> -> vector<256x288xf32>
    %c0_51 = arith.constant 0 : index
    %c0_52 = arith.constant 0 : index
    %39 = vector.load %arg3[%c0_51, %c0_52] : memref<288x32xf32, #tpu.memory_space<vmem>>, vector<288x32xf32>
    %cst_53 = arith.constant dense<0.000000e+00> : vector<256x32xf32>
    %40 = tpu.matmul %38, %39, %cst_53 {dimension_numbers = #tpu.dot_dimension_numbers<[1], [0], [0], [1], [0, 0, 1, 1], [], []>} : vector<256x288xf32>, vector<288x32xf32>, vector<256x32xf32> -> vector<256x32xf32>
    %c0_54 = arith.constant 0 : index
    %c0_55 = arith.constant 0 : index
    %41 = vector.load %arg6[%c0_54, %c0_55] : memref<1x32xf32, #tpu.memory_space<vmem>>, vector<1x32xf32>
    %42 = vector.broadcast %41 : vector<1x32xf32> to vector<256x32xf32>
    %43 = arith.addf %40, %42 : vector<256x32xf32>
    %cst_56 = arith.constant 0.000000e+00 : f32
    %44 = vector.broadcast %cst_56 : f32 to vector<256x32xf32>
    %45 = arith.maximumf %43, %44 : vector<256x32xf32>
    %c0_57 = arith.constant 0 : index
    %c0_58 = arith.constant 0 : index
    %46 = vector.load %arg4[%c0_57, %c0_58] : memref<32x128xf32, #tpu.memory_space<vmem>>, vector<32x128xf32>
    %cst_59 = arith.constant dense<0.000000e+00> : vector<256x128xf32>
    %47 = tpu.matmul %45, %46, %cst_59 {dimension_numbers = #tpu.dot_dimension_numbers<[1], [0], [0], [1], [0, 0, 1, 1], [], []>} : vector<256x32xf32>, vector<32x128xf32>, vector<256x128xf32> -> vector<256x128xf32>
    %c0_60 = arith.constant 0 : index
    %c0_61 = arith.constant 0 : index
    %c0_62 = arith.constant 0 : index
    %c0_63 = arith.constant 0 : index
    %48 = vector.load %arg1[%c0_60, %c0_61, %c0_62, %c0_63] : memref<1x16x16x128xf32, #tpu.memory_space<vmem>>, vector<1x16x16x128xf32>
    %49 = vector.shape_cast %48 : vector<1x16x16x128xf32> to vector<16x16x128xf32>
    %50 = vector.shape_cast %49 : vector<16x16x128xf32> to vector<256x128xf32>
    %c0_64 = arith.constant 0 : index
    %c0_65 = arith.constant 0 : index
    %51 = vector.load %arg7[%c0_64, %c0_65] : memref<1x128xf32, #tpu.memory_space<vmem>>, vector<1x128xf32>
    %52 = vector.broadcast %51 : vector<1x128xf32> to vector<256x128xf32>
    %53 = arith.addf %47, %52 : vector<256x128xf32>
    %54 = arith.addf %53, %50 : vector<256x128xf32>
    %cst_66 = arith.constant 0.000000e+00 : f32
    %55 = vector.broadcast %cst_66 : f32 to vector<256x128xf32>
    %56 = arith.maximumf %54, %55 : vector<256x128xf32>
    %57 = vector.shape_cast %56 : vector<256x128xf32> to vector<16x16x128xf32>
    %c0_67 = arith.constant 0 : index
    %c0_68 = arith.constant 0 : index
    %c0_69 = arith.constant 0 : index
    %c0_70 = arith.constant 0 : index
    %58 = vector.load %arg8[%c0_67, %c0_68, %c0_69, %c0_70] : memref<1x16x16x128xf32, #tpu.memory_space<vmem>>, vector<1x16x16x128xf32>
    %59 = vector.shape_cast %58 : vector<1x16x16x128xf32> to vector<16x16x128xf32>
    %60 = vector.shape_cast %57 : vector<16x16x128xf32> to vector<1x16x16x128xf32>
    tpu.vector_store %arg8[%c0_67, %c0_68, %c0_69, %c0_70], %60 {strides = array<i32>} : memref<1x16x16x128xf32, #tpu.memory_space<vmem>>, vector<1x16x16x128xf32>,
    return
  }
  func.func @transform_0(%arg0: i32) -> (i32, i32, i32, i32) {
    %c0_i32 = arith.constant 0 : i32
    %c0_i32_0 = arith.constant 0 : i32
    %c0_i32_1 = arith.constant 0 : i32
    %c0_i32_2 = arith.constant 0 : i32
    return %arg0, %c0_i32, %c0_i32_0, %c0_i32_1 : i32, i32, i32, i32
  }
  func.func @transform_1(%arg0: i32) -> (i32, i32) {
    %c0_i32 = arith.constant 0 : i32
    %c0_i32_0 = arith.constant 0 : i32
    %c0_i32_1 = arith.constant 0 : i32
    return %c0_i32, %c0_i32_0 : i32, i32
  }
  func.func @transform_2(%arg0: i32) -> (i32, i32) {
    %c0_i32 = arith.constant 0 : i32
    %c0_i32_0 = arith.constant 0 : i32
    %c0_i32_1 = arith.constant 0 : i32
    return %c0_i32, %c0_i32_0 : i32, i32
  }
  func.func @transform_3(%arg0: i32) -> (i32, i32) {
    %c0_i32 = arith.constant 0 : i32
    %c0_i32_0 = arith.constant 0 : i32
    %c0_i32_1 = arith.constant 0 : i32
    return %c0_i32, %c0_i32_0 : i32, i32
  }
  func.func @transform_4(%arg0: i32) -> (i32, i32) {
    %c0_i32 = arith.constant 0 : i32
    %c0_i32_0 = arith.constant 0 : i32
    %c0_i32_1 = arith.constant 0 : i32
    return %c0_i32, %c0_i32_0 : i32, i32
  }
  func.func @transform_5(%arg0: i32) -> (i32, i32) {
    %c0_i32 = arith.constant 0 : i32
    %c0_i32_0 = arith.constant 0 : i32
    %c0_i32_1 = arith.constant 0 : i32
    return %c0_i32, %c0_i32_0 : i32, i32
  }
  func.func @transform_6(%arg0: i32) -> (i32, i32) {
    %c0_i32 = arith.constant 0 : i32
    %c0_i32_0 = arith.constant 0 : i32
    %c0_i32_1 = arith.constant 0 : i32
    return %c0_i32, %c0_i32_0 : i32, i32
  }
  func.func @transform_7(%arg0: i32) -> (i32, i32, i32, i32) {
    %c0_i32 = arith.constant 0 : i32
    %c0_i32_0 = arith.constant 0 : i32
    %c0_i32_1 = arith.constant 0 : i32
    %c0_i32_2 = arith.constant 0 : i32
    return %arg0, %c0_i32, %c0_i32_0, %c0_i32_1 : i32, i32, i32, i32
  }
}

</mosaic_0001>

<bundles_post_ra>
// kernel: tpu_custom_call.1
= control target key start
LH: loop header
LB: loop body
LE: loop exit
PB: predicated region body
PF: predicated region fallthrough
CT: control target
= control target key end

     0   :  { %12 = vsyncpa [#allocation4], 0  ;;  %s5465_s0 = inlined_call_operand.vmem [shape: f32[2,16,16,128], index: 0, kind: input, shape index: {}]   ;;  %s5466_s1 = inlined_call_operand.vmem [shape: f32[128,32], index: 1, kind: input, shape index: {}]   ;;  %s5467_s2 = inlined_call_operand.vmem [shape: f32[288,32], index: 2, kind: input, shape index: {}]   ;;  %s5468_s3 = inlined_call_operand.vmem [shape: f32[32,128], index: 3, kind: input, shape index: {}]   ;;  %s5469_s4 = inlined_call_operand.vmem [shape: f32[1,32], index: 4, kind: input, shape index: {}]   ;;  %s5470_s5 = inlined_call_operand.vmem [shape: f32[1,32], index: 5, kind: input, shape index: {}]   ;;  %s5471_s6 = inlined_call_operand.vmem [shape: f32[1,128], index: 6, kind: input, shape index: {}]   ;;  %s5472_s7 = inlined_call_operand.hbm [shape: f32[2,16,16,128], index: 7, kind: output, shape index: {}]  }
   0x1   :  { %14 = vsyncpa [#allocation4 + $0x1], 0  ;;  %s4115_s24 = smov 0   ;;  %s4117_s25 = smov 0  }
   0x2   :  { %s4119_s26 = smov 0   ;;  %s4121_s27 = smov 0  }
   0x3 LB: > { %s4136_s28 = sadd.s32 4294967295, %s4066_s27   ;;  %s3076_s29 = sadd.s32 4294967294, %s4066_s27   ;;  %s4066_s27 = sphi %s4121_s27, %s5478_s27   ;;  %s4062_s26 = sphi %s4119_s26, %s5477_s26   ;;  %s4058_s25 = sphi %s4117_s25, %s5476_s25   ;;  %s4054_s24 = sphi %s4115_s24, %s5475_s24  }
   0x4   : > { %s4140_s30 = sadd.s32 1, %s4066_s27   ;;  %s179_s8 = sadd.s32 1, %s4062_s26 }
   0x5   : > { %s176_s9 = ssub.s32 %s4066_s27, %s4140_s30  ;;  %p189_p0 = scmp.ne.s32.totalorder %s4062_s26, %s4058_s25 }
   0x6   : > { %p177_p1 = scmp.eq.s32.totalorder %s176_s9, 0  ;;  %p190_p2 = scmp.eq.s32.totalorder %s4136_s28, 1 }
   0x7   : > { %p195_p3 = scmp.ne.s32.totalorder %s4058_s25, %s4054_s24  ;;  %p196_p4 = scmp.eq.s32.totalorder %s3076_s29, 1 }
   0x8   : > { %s4151_s10 = scalar_select %p177_p1, %s4062_s26, %s179_s8  }
   0x9   : > { %p4153_p5 = por %p190_p2, %p189_p0  ;;  %p4157_p6 = por %p196_p4, %p195_p3 }
   0xa   : > { %p3079_p7 = scmp.ge.s32.totalorder %s4066_s27, 1  ;;  %p240_p8 = scmp.lt.s32.totalorder %s4066_s27, 3 }
   0xc   : > { %p241_p9 = pnand %p3079_p7, %p240_p8 }
   0xd   : > { %p272_p10 = scmp.lt.s32.totalorder (!%p241_p9), %s4136_s28, 1  ;;  %s4069_s15 = smov (!%p241_p9), 32  }
   0xe   : > { %244 = sbr.rel (%p241_p9) target bundleno = 1001 (0x3e9), region = 48  ;;  %s4070_s20 = smov (!%p241_p9), 96  }
   0xf   : > { %s4071_s21 = smov (!%p241_p9), 64   ;;  %s269_s14 = sand.u32 (!%p241_p9), 1, %s4058_s25  }
  0x10   : > { %s4072_s29 = smov (!%p241_p9), [#allocation3]  }
  0x11   : > { %s4010_s9 = sshll.u32 (!%p241_p9), %s4072_s29, 4  ;;  %s4011_s9 = int_to_ptr.vmem [resolvable:$false] %s4010_s9 }
  0x12   : > { %s4012_s13 = scalar_lea.vmem (!%p241_p9), %s4011_s9, 8192 }
  0x13   : > { %v324_v0 = vld [vmem:[%s5466_s1 + $0x78] sm:$0xff]  ;;  %v323_v1 = vld [vmem:[%s5466_s1 + $0x70] sm:$0xff]  ;;  %v322_v2 = vld [vmem:[%s5466_s1 + $0x68] sm:$0xff]  ;;  %s273_s19 = scalar_select %p272_p10, %s4136_s28, 1  ;;  %vm589_vm0 = vcmask 261120   ;;  %vm592_vm1 = vcmask 254976  }
  0x14   : > { %3277 = vmatprep.subr.mxu0 %v324_v0  ;;  %v321_v3 = vld [vmem:[%s5466_s1 + $0x60] sm:$0xff]  ;;  %v320_v4 = vld [vmem:[%s5466_s1 + $0x58] sm:$0xff]  ;;  %v319_v6 = vld [vmem:[%s5466_s1 + $0x50] sm:$0xff]  ;;  %vm598_vm2 = vcmask 253952   ;;  %v4068_v48 = vmov 0.0   ;;  %vm1757_vm3 = vcmask 523264  }
  0x15   : > { %3278 = vmatpush3.msra.mxu0 %v324_v0  ;;  %s3155_s22 = sshll.u32 %s273_s19, 8  ;;  %v318_v7 = vld [vmem:[%s5466_s1 + $0x48] sm:$0xff]  ;;  %v317_v8 = vld [vmem:[%s5466_s1 + $0x40] sm:$0xff]  ;;  %v316_v9 = vld [vmem:[%s5466_s1 + $0x38] sm:$0xff]  ;;  %591 = vst.msk [vmem:[#allocation2 + $0x8] sm:$0xff] %vm589_vm0, %v4068_v48  ;;  %2058 = vmatprep.subr.mxu1 %v4068_v48  ;;  %vm1790_vm4 = vcmask 785408  }
  0x16   : > { %3279 = vmatprep.subr.mxu0 %v323_v1  ;;  %s4180_s8 = scalar_lea.vmem %s5465_s0, %s3155_s22  ;;  %v315_v10 = vld [vmem:[%s5466_s1 + $0x30] sm:$0xff]  ;;  %v314_v11 = vld [vmem:[%s5466_s1 + $0x28] sm:$0xff]  ;;  %v313_v12 = vld [vmem:[%s5466_s1 + $0x20] sm:$0xff]  ;;  %593 = vst.msk [vmem:[#allocation2 + $0x10] sm:$0x3] %vm592_vm1, %v4068_v48  ;;  %s3156_s19 = sshll.u32 %s4136_s28, 12 }
  0x17   : > { %3280 = vmatpush3.msra.mxu0 %v323_v1  ;;  %v277_v5 = vld [vmem:[%s4180_s8] sm:$0xff]  ;;  %v312_v13 = vld [vmem:[%s5466_s1 + $0x18] sm:$0xff]  ;;  %v311_v14 = vld [vmem:[%s5466_s1 + $0x10] sm:$0xff]  ;;  %597 = vst.msk [vmem:[#allocation2 + $0x1a8] sm:$0x3] %vm592_vm1, %v4068_v48  ;;  %s5417_s23 = scalar_lea.hbm %s5472_s7, %s3156_s19 }
  0x18   : > { %3281 = vmatprep.subr.mxu0 %v322_v2  ;;  %3309 = vmatprep.mubr.f32.mxu0 %v277_v5  ;;  %v310_v15 = vld [vmem:[%s5466_s1 + $0x8] sm:$0xff]  ;;  %v309_v16 = vld [vmem:[%s5466_s1] sm:$0xff]  ;;  %v279_v18 = vld [vmem:[%s4180_s8 + $0x10] sm:$0xff]  ;;  %618 = vst.msk [vmem:[#allocation2 + $0x29] sm:$0x1] %vm598_vm2, %v4068_v48 }
  0x19   : > { %3282 = vmatpush3.msra.mxu0 %v322_v2  ;;  %v278_v17 = vld [vmem:[%s4180_s8 + $0x8] sm:$0xff]  ;;  %v280_v19 = vld [vmem:[%s4180_s8 + $0x18] sm:$0xff]  ;;  %v281_v20 = vld [vmem:[%s4180_s8 + $0x20] sm:$0xff]  ;;  %590 = vst.msk [vmem:[#allocation2] sm:$0xff] %vm589_vm0, %v4068_v48 }
  0x1a   : > { %3283 = vmatprep.subr.mxu0 %v321_v3  ;;  %v282_v21 = vld [vmem:[%s4180_s8 + $0x28] sm:$0xff]  ;;  %v283_v22 = vld [vmem:[%s4180_s8 + $0x30] sm:$0xff]  ;;  %v284_v23 = vld [vmem:[%s4180_s8 + $0x38] sm:$0xff]  ;;  %595 = vst.msk [vmem:[#allocation2 + $0x198] sm:$0xff] %vm589_vm0, %v4068_v48 }
  0x1b   : > { %3284 = vmatpush3.msra.mxu0 %v321_v3  ;;  %v285_v24 = vld [vmem:[%s4180_s8 + $0x40] sm:$0xff]  ;;  %v286_v25 = vld [vmem:[%s4180_s8 + $0x48] sm:$0xff]  ;;  %v287_v26 = vld [vmem:[%s4180_s8 + $0x50] sm:$0xff]  ;;  %596 = vst.msk [vmem:[#allocation2 + $0x1a0] sm:$0xff] %vm589_vm0, %v4068_v48 }
  0x1c   : > { %3285 = vmatprep.subr.mxu0 %v320_v4  ;;  %v288_v27 = vld [vmem:[%s4180_s8 + $0x58] sm:$0xff]  ;;  %v289_v28 = vld [vmem:[%s4180_s8 + $0x60] sm:$0xff]  ;;  %v290_v29 = vld [vmem:[%s4180_s8 + $0x68] sm:$0xff]  ;;  %600 = vst.msk [vmem:[#allocation2 + $0x18] sm:$0x1] %vm598_vm2, %v4068_v48 }
  0x1d   : > { %3286 = vmatpush3.msra.mxu0 %v320_v4  ;;  %v291_v30 = vld [vmem:[%s4180_s8 + $0x70] sm:$0xff]  ;;  %v292_v31 = vld [vmem:[%s4180_s8 + $0x78] sm:$0xff]  ;;  %v293_v32 = vld [vmem:[%s4180_s8 + $0x80] sm:$0xff]  ;;  %601 = vst.msk [vmem:[#allocation2 + $0x30] sm:$0x1] %vm598_vm2, %v4068_v48 }
  0x1e   : > { %3287 = vmatprep.subr.mxu0 %v319_v6  ;;  %v294_v33 = vld [vmem:[%s4180_s8 + $0x88] sm:$0xff]  ;;  %v295_v34 = vld [vmem:[%s4180_s8 + $0x90] sm:$0xff]  ;;  %v296_v35 = vld [vmem:[%s4180_s8 + $0x98] sm:$0xff]  ;;  %602 = vst.msk [vmem:[#allocation2 + $0x48] sm:$0x1] %vm598_vm2, %v4068_v48 }
  0x1f   : > { %3288 = vmatpush3.msra.mxu0 %v319_v6  ;;  %v297_v36 = vld [vmem:[%s4180_s8 + $0xa0] sm:$0xff]  ;;  %v298_v37 = vld [vmem:[%s4180_s8 + $0xa8] sm:$0xff]  ;;  %v299_v38 = vld [vmem:[%s4180_s8 + $0xb0] sm:$0xff]  ;;  %603 = vst.msk [vmem:[#allocation2 + $0x60] sm:$0x1] %vm598_vm2, %v4068_v48 }
  0x20   : > { %3289 = vmatprep.subr.mxu0 %v318_v7  ;;  %v300_v39 = vld [vmem:[%s4180_s8 + $0xb8] sm:$0xff]  ;;  %v301_v40 = vld [vmem:[%s4180_s8 + $0xc0] sm:$0xff]  ;;  %v302_v41 = vld [vmem:[%s4180_s8 + $0xc8] sm:$0xff]  ;;  %604 = vst.msk [vmem:[#allocation2 + $0x78] sm:$0x1] %vm598_vm2, %v4068_v48 }
  0x21   : > { %3290 = vmatpush3.msra.mxu0 %v318_v7  ;;  %v303_v42 = vld [vmem:[%s4180_s8 + $0xd0] sm:$0xff]  ;;  %v304_v43 = vld [vmem:[%s4180_s8 + $0xd8] sm:$0xff]  ;;  %v305_v44 = vld [vmem:[%s4180_s8 + $0xe0] sm:$0xff]  ;;  %605 = vst.msk [vmem:[#allocation2 + $0x90] sm:$0x1] %vm598_vm2, %v4068_v48 }
  0x22   : > { %3291 = vmatprep.subr.mxu0 %v317_v8  ;;  %v306_v45 = vld [vmem:[%s4180_s8 + $0xe8] sm:$0xff]  ;;  %v307_v46 = vld [vmem:[%s4180_s8 + $0xf0] sm:$0xff]  ;;  %v308_v47 = vld [vmem:[%s4180_s8 + $0xf8] sm:$0xff]  ;;  %606 = vst.msk [vmem:[#allocation2 + $0xa8] sm:$0x1] %vm598_vm2, %v4068_v48 }
  0x23   : > { %3292 = vmatpush3.msra.mxu0 %v317_v8  ;;  %607 = vst.msk [vmem:[#allocation2 + $0xc0] sm:$0x1] %vm598_vm2, %v4068_v48  ;;  %608 = vst.msk [vmem:[#allocation2 + $0xd8] sm:$0x1] %vm598_vm2, %v4068_v48  ;;  %v4336_v49 = vld [vmem:[%s5467_s2 + $0x118] sm:$0xff]  ;;  %v1953_v50 = vld [vmem:[%s5467_s2 + $0x110] sm:$0xff] }
  0x24   : > { %3293 = vmatprep.subr.mxu0 %v316_v9  ;;  %609 = vst.msk [vmem:[#allocation2 + $0xf0] sm:$0x1] %vm598_vm2, %v4068_v48  ;;  %610 = vst.msk [vmem:[#allocation2 + $0x108] sm:$0x1] %vm598_vm2, %v4068_v48  ;;  %v1952_v51 = vld [vmem:[%s5467_s2 + $0x108] sm:$0xff]  ;;  %v1951_v52 = vld [vmem:[%s5467_s2 + $0x100] sm:$0xff] }
  0x25   : > { %3294 = vmatpush3.msra.mxu0 %v316_v9  ;;  %611 = vst.msk [vmem:[#allocation2 + $0x120] sm:$0x1] %vm598_vm2, %v4068_v48  ;;  %612 = vst.msk [vmem:[#allocation2 + $0x138] sm:$0x1] %vm598_vm2, %v4068_v48  ;;  %v1934_v53 = vld [vmem:[%s5467_s2 + $0x78] sm:$0xff]  ;;  %v1933_v54 = vld [vmem:[%s5467_s2 + $0x70] sm:$0xff] }
  0x26   : > { %3295 = vmatprep.subr.mxu0 %v315_v10  ;;  %613 = vst.msk [vmem:[#allocation2 + $0x150] sm:$0x1] %vm598_vm2, %v4068_v48  ;;  %614 = vst.msk [vmem:[#allocation2 + $0x168] sm:$0x1] %vm598_vm2, %v4068_v48  ;;  %2059 = vmatpush1.msra.mxu1 %v1934_v53  ;;  %v1932_v55 = vld [vmem:[%s5467_s2 + $0x68] sm:$0xff]  ;;  %v1931_v56 = vld [vmem:[%s5467_s2 + $0x60] sm:$0xff] }
  0x27   : > { %3296 = vmatpush3.msra.mxu0 %v315_v10  ;;  %615 = vst.msk [vmem:[#allocation2 + $0x180] sm:$0x1] %vm598_vm2, %v4068_v48  ;;  %619 = vst.msk [vmem:[#allocation2 + $0x41] sm:$0x1] %vm598_vm2, %v4068_v48  ;;  %2060 = vmatprep.subr.mxu1 %v4068_v48  ;;  %v1930_v57 = vld [vmem:[%s5467_s2 + $0x58] sm:$0xff]  ;;  %v1929_v58 = vld [vmem:[%s5467_s2 + $0x50] sm:$0xff] }
  0x28   : > { %3297 = vmatprep.subr.mxu0 %v314_v11  ;;  %620 = vst.msk [vmem:[#allocation2 + $0x59] sm:$0x1] %vm598_vm2, %v4068_v48  ;;  %621 = vst.msk [vmem:[#allocation2 + $0x71] sm:$0x1] %vm598_vm2, %v4068_v48  ;;  %2061 = vmatpush1.msra.mxu1 %v1933_v54  ;;  %v1928_v59 = vld [vmem:[%s5467_s2 + $0x48] sm:$0xff]  ;;  %v1927_v60 = vld [vmem:[%s5467_s2 + $0x40] sm:$0xff] }
  0x29   : > { %3298 = vmatpush3.msra.mxu0 %v314_v11  ;;  %622 = vst.msk [vmem:[#allocation2 + $0x89] sm:$0x1] %vm598_vm2, %v4068_v48  ;;  %623 = vst.msk [vmem:[#allocation2 + $0xa1] sm:$0x1] %vm598_vm2, %v4068_v48  ;;  %2062 = vmatprep.subr.mxu1 %v4068_v48  ;;  %v1926_v61 = vld [vmem:[%s5467_s2 + $0x38] sm:$0xff]  ;;  %v1925_v62 = vld [vmem:[%s5467_s2 + $0x30] sm:$0xff] }
  0x2a   : > { %3299 = vmatprep.subr.mxu0 %v313_v12  ;;  %624 = vst.msk [vmem:[#allocation2 + $0xb9] sm:$0x1] %vm598_vm2, %v4068_v48  ;;  %625 = vst.msk [vmem:[#allocation2 + $0xd1] sm:$0x1] %vm598_vm2, %v4068_v48  ;;  %2063 = vmatpush1.msra.mxu1 %v1932_v55  ;;  %v1924_v63 = vld [vmem:[%s5467_s2 + $0x28] sm:$0xff]  ;;  %v1923_v0 = vld [vmem:[%s5467_s2 + $0x20] sm:$0xff] }
  0x2b   : > { %3300 = vmatpush3.msra.mxu0 %v313_v12  ;;  %626 = vst.msk [vmem:[#allocation2 + $0xe9] sm:$0x1] %vm598_vm2, %v4068_v48  ;;  %627 = vst.msk [vmem:[#allocation2 + $0x101] sm:$0x1] %vm598_vm2, %v4068_v48  ;;  %2064 = vmatprep.subr.mxu1 %v4068_v48  ;;  %v1922_v1 = vld [vmem:[%s5467_s2 + $0x18] sm:$0xff]  ;;  %v1921_v2 = vld [vmem:[%s5467_s2 + $0x10] sm:$0xff] }
  0x2c   : > { %3301 = vmatprep.subr.mxu0 %v312_v13  ;;  %628 = vst.msk [vmem:[#allocation2 + $0x119] sm:$0x1] %vm598_vm2, %v4068_v48  ;;  %629 = vst.msk [vmem:[#allocation2 + $0x131] sm:$0x1] %vm598_vm2, %v4068_v48  ;;  %2065 = vmatpush1.msra.mxu1 %v1931_v56  ;;  %v1920_v3 = vld [vmem:[%s5467_s2 + $0x8] sm:$0xff]  ;;  %v1919_v4 = vld [vmem:[%s5467_s2] sm:$0xff] }
  0x2d   : > { %3302 = vmatpush3.msra.mxu0 %v312_v13  ;;  %630 = vst.msk [vmem:[#allocation2 + $0x149] sm:$0x1] %vm598_vm2, %v4068_v48  ;;  %631 = vst.msk [vmem:[#allocation2 + $0x161] sm:$0x1] %vm598_vm2, %v4068_v48  ;;  %2066 = vmatprep.subr.mxu1 %v4068_v48  ;;  %v1950_v5 = vld [vmem:[%s5467_s2 + $0xf8] sm:$0xff]  ;;  %v1949_v6 = vld [vmem:[%s5467_s2 + $0xf0] sm:$0xff] }
  0x2e   : > { %3303 = vmatprep.subr.mxu0 %v311_v14  ;;  %632 = vst.msk [vmem:[#allocation2 + $0x179] sm:$0x1] %vm598_vm2, %v4068_v48  ;;  %633 = vst.msk [vmem:[#allocation2 + $0x191] sm:$0x1] %vm598_vm2, %v4068_v48  ;;  %2067 = vmatpush1.msra.mxu1 %v1930_v57  ;;  %v1948_v7 = vld [vmem:[%s5467_s2 + $0xe8] sm:$0xff]  ;;  %v1947_v8 = vld [vmem:[%s5467_s2 + $0xe0] sm:$0xff] }
  0x2f   : > { %3304 = vmatpush3.msra.mxu0 %v311_v14  ;;  %617 = vst.msk [vmem:[#allocation2 + $0x11] sm:$0x1] %vm598_vm2, %v4068_v48  ;;  %634 = vst.msk [vmem:[#allocation2 + $0x1a9] sm:$0x1] %vm598_vm2, %v4068_v48  ;;  %2068 = vmatprep.subr.mxu1 %v4068_v48  ;;  %v1946_v9 = vld [vmem:[%s5467_s2 + $0xd8] sm:$0xff]  ;;  %v1945_v10 = vld [vmem:[%s5467_s2 + $0xd0] sm:$0xff] }
  0x30   : > { %3305 = vmatprep.subr.mxu0 %v310_v15  ;;  %599 = vst.msk [vmem:[#allocation2] sm:$0x1] %vm598_vm2, %v4068_v48  ;;  %616 = vst.msk [vmem:[#allocation2 + $0x198] sm:$0x1] %vm598_vm2, %v4068_v48  ;;  %2069 = vmatpush1.msra.mxu1 %v1929_v58  ;;  %v1944_v11 = vld [vmem:[%s5467_s2 + $0xc8] sm:$0xff]  ;;  %v1943_v13 = vld [vmem:[%s5467_s2 + $0xc0] sm:$0xff] }
  0x31   : > { %3306 = vmatpush3.msra.mxu0 %v310_v15  ;;  %2070 = vmatprep.subr.mxu1 %v4068_v48  ;;  %v4443_v12 = vld [vmem:[%s5469_s4] ss:$0 sm:$0xff] }
  0x32   : > { %3307 = vmatprep.subr.mxu0 %v309_v16  ;;  %2071 = vmatpush1.msra.mxu1 %v1928_v59  ;;  %v1935_v56 = vld [vmem:[%s5467_s2 + $0x80] sm:$0xff] }
  0x33   : > { %3308 = vmatpush3.msra.mxu0 %v309_v16  ;;  %2072 = vmatprep.subr.mxu1 %v4068_v48 }
  0x34   : > { %3310 = vmatmul.mubr.f32.vlgmr.msra.gmra.mxu0 %v278_v17  ;;  %3357 = vmatprep.subr.mxu0 %v4336_v49  ;;  %v1942_v17 = vld [vmem:[%s5467_s2 + $0xb8] sm:$0xff] }
  0x35   : > { %3312 = vmatprep.mubr.f32.mxu0 %v279_v18  ;;  %3358 = vmatpush3.msra.mxu0 %v4336_v49 }
  0x36   : > { %3359 = vmatprep.subr.mxu0 %v1953_v50  ;;  %2073 = vmatpush1.msra.mxu1 %v1927_v60 }
  0x37   : > { %3360 = vmatpush3.msra.mxu0 %v1953_v50  ;;  %2074 = vmatprep.subr.mxu1 %v4068_v48 }
  0x38   : > { %3313 = vmatmul.mubr.f32.gmra.mxu0 %v280_v19  ;;  %3361 = vmatprep.subr.mxu0 %v1952_v51 }
  0x39   : > { %3315 = vmatprep.mubr.f32.mxu0 %v281_v20  ;;  %3362 = vmatpush3.msra.mxu0 %v1952_v51  ;;  %v732_v51 = vld [vmem:[#allocation2 + $0x2] sm:$0xff] }
  0x3a   : > { %3363 = vmatprep.subr.mxu0 %v1951_v52  ;;  %2075 = vmatpush1.msra.mxu1 %v1926_v61 }
  0x3b   : > { %3364 = vmatpush3.msra.mxu0 %v1951_v52  ;;  %2076 = vmatprep.subr.mxu1 %v4068_v48  ;;  %v1936_v52 = vld [vmem:[%s5467_s2 + $0x88] sm:$0xff] }
  0x3c   : > { %3316 = vmatmul.mubr.f32.gmra.mxu0 %v282_v21  ;;  %2077 = vmatpush1.msra.mxu1 %v1925_v62  ;;  %v1941_v21 = vld [vmem:[%s5467_s2 + $0xb0] sm:$0xff] }
  0x3d   : > { %3318 = vmatprep.mubr.f32.mxu0 %v283_v22  ;;  %2078 = vmatprep.subr.mxu1 %v4068_v48 }
  0x3e   : > { %2079 = vmatpush1.msra.mxu1 %v1924_v63 }
  0x3f   : > { %2080 = vmatprep.subr.mxu1 %v4068_v48 }
  0x40   : > { %3319 = vmatmul.mubr.f32.gmra.mxu0 %v284_v23  ;;  %2081 = vmatpush1.msra.mxu1 %v1923_v0 }
  0x41   : > { %3321 = vmatprep.mubr.f32.mxu0 %v285_v24  ;;  %2082 = vmatprep.subr.mxu1 %v4068_v48 }
  0x42   : > { %2083 = vmatpush1.msra.mxu1 %v1922_v1 }
  0x43   : > { %2084 = vmatprep.subr.mxu1 %v4068_v48 }
  0x44   : > { %3322 = vmatmul.mubr.f32.gmra.mxu0 %v286_v25  ;;  %2085 = vmatpush1.msra.mxu1 %v1921_v2  ;;  %v1940_v25 = vld [vmem:[%s5467_s2 + $0xa8] sm:$0xff] }
  0x45   : > { %3324 = vmatprep.mubr.f32.mxu0 %v287_v26  ;;  %2086 = vmatprep.subr.mxu1 %v4068_v48 }
  0x46   : > { %2087 = vmatpush1.msra.mxu1 %v1920_v3  ;;  %v733_v3 = vld [vmem:[#allocation2 + $0xa] sm:$0xff] }
  0x47   : > { %2088 = vmatprep.subr.mxu1 %v4068_v48 }
  0x48   : > { %3325 = vmatmul.mubr.f32.gmra.mxu0 %v288_v27  ;;  %2089 = vmatpush1.msra.mxu1 %v1919_v4 }
  0x49   : > { %3327 = vmatprep.mubr.f32.mxu0 %v289_v28  ;;  %2090 = vmatprep.subr.mxu1 %v4068_v48 }
  0x4a   : > { %2091 = vmatpush2.msra.mxu1 %v1950_v5 }
  0x4b   : > { %2092 = vmatprep.subr.mxu1 %v4068_v48 }
  0x4c   : > { %3328 = vmatmul.mubr.f32.gmra.mxu0 %v290_v29  ;;  %2093 = vmatpush2.msra.mxu1 %v1949_v6  ;;  %v1939_v29 = vld [vmem:[%s5467_s2 + $0xa0] sm:$0xff] }
  0x4d   : > { %3330 = vmatprep.mubr.f32.mxu0 %v291_v30  ;;  %2094 = vmatprep.subr.mxu1 %v4068_v48 }
  0x4e   : > { %2095 = vmatpush2.msra.mxu1 %v1948_v7 }
  0x4f   : > { %2096 = vmatprep.subr.mxu1 %v4068_v48 }
  0x50   : > { %3331 = vmatmul.mubr.f32.gmra.mxu0 %v292_v31  ;;  %2097 = vmatpush2.msra.mxu1 %v1947_v8 }
  0x51   : > { %3333 = vmatprep.mubr.f32.mxu0 %v293_v32  ;;  %2098 = vmatprep.subr.mxu1 %v4068_v48 }
  0x52   : > { %2099 = vmatpush2.msra.mxu1 %v1946_v9 }
  0x53   : > { %2100 = vmatprep.subr.mxu1 %v4068_v48 }
  0x54   : > { %3334 = vmatmul.mubr.f32.gmra.mxu0 %v294_v33  ;;  %2101 = vmatpush2.msra.mxu1 %v1945_v10  ;;  %v701_v33 = vld [vmem:[#allocation2 + $0x9] sm:$0xff] }
  0x55   : > { %3336 = vmatprep.mubr.f32.mxu0 %v295_v34  ;;  %2102 = vmatprep.subr.mxu1 %v4068_v48  ;;  %v1938_v34 = vld [vmem:[%s5467_s2 + $0x98] sm:$0xff] }
  0x56   : > { %2103 = vmatpush2.msra.mxu1 %v1944_v11 }
  0x57   : > { %2104 = vmatprep.subr.mxu1 %v4068_v48 }
  0x58   : > { %3337 = vmatmul.mubr.f32.gmra.mxu0 %v296_v35  ;;  %2105 = vmatpush2.msra.mxu1 %v1943_v13 }
  0x59   : > { %3339 = vmatprep.mubr.f32.mxu0 %v297_v36  ;;  %2106 = vmatprep.subr.mxu1 %v4068_v48 }
  0x5a   : > { %2107 = vmatpush2.msra.mxu1 %v1942_v17 }
  0x5b   : > { %2108 = vmatprep.subr.mxu1 %v4068_v48 }
  0x5c   : > { %3340 = vmatmul.mubr.f32.gmra.mxu0 %v298_v37  ;;  %2109 = vmatpush2.msra.mxu1 %v1941_v21 }
  0x5d   : > { %3342 = vmatprep.mubr.f32.mxu0 %v299_v38  ;;  %2110 = vmatprep.subr.mxu1 %v4068_v48 }
  0x5e   : > { %2111 = vmatpush2.msra.mxu1 %v1940_v25 }
  0x5f   : > { %2112 = vmatprep.subr.mxu1 %v4068_v48 }
  0x60   : > { %3343 = vmatmul.mubr.f32.gmra.mxu0 %v300_v39  ;;  %2113 = vmatpush2.msra.mxu1 %v1939_v29  ;;  %v700_v39 = vld [vmem:[#allocation2 + $0x1] sm:$0xff] }
  0x61   : > { %3345 = vmatprep.mubr.f32.mxu0 %v301_v40  ;;  %2114 = vmatprep.subr.mxu1 %v4068_v48  ;;  %v1937_v40 = vld [vmem:[%s5467_s2 + $0x90] sm:$0xff] }
  0x62   : > { %2115 = vmatpush2.msra.mxu1 %v1938_v34 }
  0x63   : > { %2116 = vmatprep.subr.mxu1 %v4068_v48 }
  0x64   : > { %3346 = vmatmul.mubr.f32.gmra.mxu0 %v302_v41  ;;  %2117 = vmatpush2.msra.mxu1 %v1937_v40 }
  0x65   : > { %3348 = vmatprep.mubr.f32.mxu0 %v303_v42  ;;  %2118 = vmatprep.subr.mxu1 %v4068_v48 }
  0x66   : > { %2119 = vmatpush2.msra.mxu1 %v1936_v52 }
  0x67   : > { %2120 = vmatprep.subr.mxu1 %v4068_v48 }
  0x68   : > { %3349 = vmatmul.mubr.f32.gmra.mxu0 %v304_v43  ;;  %2121 = vmatpush2.msra.mxu1 %v1935_v56 }
  0x69   : > { %3351 = vmatprep.mubr.f32.mxu0 %v305_v44  ;;  %3469 = vmatprep.subr.mxu1 %v4336_v49 }
  0x6c   : > { %3352 = vmatmul.mubr.f32.gmra.mxu0 %v306_v45 }
  0x6d   : > { %3354 = vmatprep.mubr.f32.mxu0 %v307_v46 }
  0x70   : > { %3355 = vmatmul.mubr.f32.gmra.mxu0 %v308_v47 }
  0xf4   : > { %v3311_v14 = vpop.f32.mrf.mxu0 }
  0xf5   : > { %v404_v15 = vadd.f32 %v3311_v14, %v4443_v12 }
  0xf6   : > { %v398_v16 = vpop.f32.mrf.mxu0 }
  0xf7   : > { %v558_v18 = vmax.f32 %v404_v15, 0.0  ;;  %v399_v19 = vadd.f32 %v4443_v12, %v398_v16 }
  0xf8   : > { %v3314_v20 = vpop.f32.mrf.mxu0 }
  0xf9   : > { %637 = vst.msk [vmem:[#allocation2 + $0x21] sm:$0xff] %vm589_vm0, %v558_v18  ;;  %v557_v22 = vmax.f32 %v399_v19, 0.0  ;;  %v414_v23 = vadd.f32 %v3314_v20, %v4443_v12 }
  0xfa   : > { %v408_v24 = vpop.f32.mrf.mxu0 }
  0xfb   : > { %636 = vst.msk [vmem:[#allocation2 + $0x19] sm:$0xff] %vm589_vm0, %v557_v22  ;;  %v560_v26 = vmax.f32 %v414_v23, 0.0  ;;  %v409_v27 = vadd.f32 %v4443_v12, %v408_v24 }
  0xfc   : > { %v3317_v28 = vpop.f32.mrf.mxu0 }
  0xfd   : > { %639 = vst.msk [vmem:[#allocation2 + $0x39] sm:$0xff] %vm589_vm0, %v560_v26  ;;  %v559_v30 = vmax.f32 %v409_v27, 0.0  ;;  %v424_v31 = vadd.f32 %v3317_v28, %v4443_v12 }
  0xfe   : > { %v418_v32 = vpop.f32.mrf.mxu0 }
  0xff   : > { %638 = vst.msk [vmem:[#allocation2 + $0x31] sm:$0xff] %vm589_vm0, %v559_v30  ;;  %v562_v35 = vmax.f32 %v424_v31, 0.0  ;;  %v419_v36 = vadd.f32 %v4443_v12, %v418_v32 }
 0x100   : > { %v3320_v37 = vpop.f32.mrf.mxu0  ;;  %v4479_v38 = vld [vmem:[#allocation2 + $0x22] sm:$0xff] }
 0x101   : > { %641 = vst.msk [vmem:[#allocation2 + $0x51] sm:$0xff] %vm589_vm0, %v562_v35  ;;  %v561_v41 = vmax.f32 %v419_v36, 0.0  ;;  %v434_v42 = vadd.f32 %v3320_v37, %v4443_v12  ;;  %v3522_v43 = vpack.i.bf16 %v701_v33, %v4479_v38  ;;  %v4522_v2 = vld [vmem:[#allocation2 + $0x21] sm:$0xff] }
 0x102   : > { %v428_v44 = vpop.f32.mrf.mxu0  ;;  %v4488_v45 = vld [vmem:[#allocation2 + $0x1a] sm:$0xff] }
 0x103   : > { %640 = vst.msk [vmem:[#allocation2 + $0x49] sm:$0xff] %vm589_vm0, %v561_v41  ;;  %v564_v46 = vmax.f32 %v434_v42, 0.0  ;;  %v429_v47 = vadd.f32 %v4443_v12, %v428_v44  ;;  %3523 = vrot.lane.b32.xlu1 %v3522_v43, %s4069_s15  ;;  %v3527_v50 = vpack.i.bf16 %v700_v39, %v4488_v45  ;;  %v765_v54 = vld [vmem:[#allocation2 + $0x20] sm:$0xff]  ;;  %v764_v16 = vld [vmem:[#allocation2 + $0x18] sm:$0xff] }
 0x104   : > { %v3323_v53 = vpop.f32.mrf.mxu0  ;;  %v4498_v55 = vld [vmem:[#allocation2 + $0x39] sm:$0xff] }
 0x105   : > { %643 = vst.msk [vmem:[#allocation2 + $0x69] sm:$0xff] %vm589_vm0, %v564_v46  ;;  %v563_v57 = vmax.f32 %v429_v47, 0.0  ;;  %v444_v58 = vadd.f32 %v3323_v53, %v4443_v12  ;;  %3528 = vrot.lane.b32.xlu0 %v3527_v50, %s4069_s15  ;;  %v3532_v59 = vpack.i.bf16 %v765_v54, %v4498_v55  ;;  %v4510_v62 = vld [vmem:[#allocation2 + $0x3a] sm:$0xff] }
 0x106   : > { %v438_v60 = vpop.f32.mrf.mxu0  ;;  %v4508_v61 = vld [vmem:[#allocation2 + $0x32] sm:$0xff]  ;;  %v3537_v7 = vpack.i.bf16 %v4522_v2, %v4510_v62 }
 0x107   : > { %v4512_v63 = vld [vmem:[#allocation2 + $0x30] sm:$0xff]  ;;  %642 = vst.msk [vmem:[#allocation2 + $0x61] sm:$0xff] %vm589_vm0, %v563_v57  ;;  %v566_v0 = vmax.f32 %v444_v58, 0.0  ;;  %v439_v1 = vadd.f32 %v4443_v12, %v438_v60  ;;  %3365 = vmatprep.mubr.msk.f32.mxu0 %vm589_vm0, %v4508_v61  ;;  %3533 = vrot.lane.b32.xlu1 %v3532_v59, %s4070_s20  ;;  %v862_v4 = vld [vmem:[#allocation2 + $0x38] sm:$0xff] }
 0x108   : > { %v3542_v48 = vpack.i.bf16 %v732_v51, %v4512_v63  ;;  %3366 = vmatmul.mubr.msk.f32.vlgmr.msra.gmra.mxu0 %vm589_vm0, %v4510_v62  ;;  %v3326_v5 = vpop.f32.mrf.mxu0  ;;  %v4532_v10 = vld [vmem:[#allocation2 + $0x31] sm:$0xff]  ;;  %v3552_v49 = vpack.i.bf16 %v733_v3, %v862_v4  ;;  %v4547_v21 = vld [vmem:[#allocation2 + $0x19] sm:$0xff] }
 0x109   : > { %645 = vst.msk [vmem:[#allocation2 + $0x81] sm:$0xff] %vm589_vm0, %v566_v0  ;;  %v565_v6 = vmax.f32 %v439_v1, 0.0  ;;  %v454_v8 = vadd.f32 %v3326_v5, %v4443_v12  ;;  %v4538_v14 = vld [vmem:[#allocation2 + $0x52] sm:$0xff]  ;;  %v3547_v18 = vpack.i.bf16 %v764_v16, %v4532_v10  ;;  %v3557_v25 = vpack.i.bf16 %v4547_v21, %v4508_v61 }
 0x10a   : > { %3543 = vrot.lane.b32.xlu0 %v3542_v48, %s4071_s21  ;;  %v4530_v9 = vld [vmem:[#allocation2 + $0x4a] sm:$0xff]  ;;  %v448_v11 = vpop.f32.mrf.mxu0  ;;  %v3567_v43 = vpack.i.bf16 %v4498_v55, %v4538_v14 }
 0x10b   : > { %644 = vst.msk [vmem:[#allocation2 + $0x79] sm:$0xff] %vm589_vm0, %v565_v6  ;;  %3538 = vrot.lane.b32.xlu1 %v3537_v7, %s4069_s15  ;;  %v568_v13 = vmax.f32 %v454_v8, 0.0  ;;  %3368 = vmatprep.mubr.msk.f32.mxu0 %vm589_vm0, %v4530_v9  ;;  %v449_v15 = vadd.f32 %v4443_v12, %v448_v11  ;;  %v4549_v22 = vld [vmem:[#allocation2 + $0x51] sm:$0xff]  ;;  %v4562_v29 = vld [vmem:[#allocation2 + $0x49] sm:$0xff]  ;;  %v3587_v0 = vpack.i.bf16 %v4532_v10, %v4530_v9 }
 0x10c   : > { %3369 = vmatmul.mubr.msk.f32.gmra.mxu0 %vm589_vm0, %v4538_v14  ;;  %v3329_v17 = vpop.f32.mrf.mxu0  ;;  %v4559_v27 = vld [vmem:[#allocation2 + $0x6a] sm:$0xff]  ;;  %v3562_v31 = vpack.i.bf16 %v862_v4, %v4549_v22  ;;  %v3577_v36 = vpack.i.bf16 %v4512_v63, %v4562_v29 }
 0x10d   : > { %647 = vst.msk [vmem:[#allocation2 + $0x99] sm:$0xff] %vm589_vm0, %v568_v13  ;;  %v567_v19 = vmax.f32 %v449_v15, 0.0  ;;  %v464_v20 = vadd.f32 %v3329_v17, %v4443_v12  ;;  %v864_v41 = vld [vmem:[#allocation2 + $0x50] sm:$0xff]  ;;  %v863_v47 = vld [vmem:[#allocation2 + $0x48] sm:$0xff] }
 0x10e   : > { %3553 = vrot.lane.b32.xlu0 %v3552_v49, %s4071_s21  ;;  %v4551_v23 = vld [vmem:[#allocation2 + $0x62] sm:$0xff]  ;;  %v458_v24 = vpop.f32.mrf.mxu0  ;;  %v3582_v52 = vpack.i.bf16 %v4479_v38, %v864_v41  ;;  %v3572_v57 = vpack.i.bf16 %v4488_v45, %v863_v47 }
 0x10f   : > { %3548 = vrot.lane.b32.xlu1 %v3547_v18, %s4070_s20  ;;  %646 = vst.msk [vmem:[#allocation2 + $0x91] sm:$0xff] %vm589_vm0, %v567_v19  ;;  %v570_v26 = vmax.f32 %v464_v20, 0.0  ;;  %3371 = vmatprep.mubr.msk.f32.mxu0 %vm589_vm0, %v4551_v23  ;;  %v459_v28 = vadd.f32 %v4443_v12, %v458_v24  ;;  %v4604_v59 = vld [vmem:[#allocation2 + $0x69] sm:$0xff]  ;;  %v4617_v3 = vld [vmem:[#allocation2 + $0x61] sm:$0xff]  ;;  %v3597_v18 = vpack.i.bf16 %v4549_v22, %v4559_v27 }
 0x110   : > { %3372 = vmatmul.mubr.msk.f32.gmra.mxu0 %vm589_vm0, %v4559_v27  ;;  %v3332_v30 = vpop.f32.mrf.mxu0  ;;  %v4578_v39 = vld [vmem:[#allocation2 + $0x82] sm:$0xff]  ;;  %v3592_v5 = vpack.i.bf16 %v864_v41, %v4604_v59  ;;  %v3607_v11 = vpack.i.bf16 %v863_v47, %v4617_v3  ;;  %v3617_v41 = vpack.i.bf16 %v4562_v29, %v4551_v23 }
 0x111   : > { %649 = vst.msk [vmem:[#allocation2 + $0xb1] sm:$0xff] %vm589_vm0, %v570_v26  ;;  %v569_v32 = vmax.f32 %v459_v28, 0.0  ;;  %v474_v33 = vadd.f32 %v3332_v30, %v4443_v12  ;;  %v866_v16 = vld [vmem:[#allocation2 + $0x68] sm:$0xff]  ;;  %v865_v24 = vld [vmem:[#allocation2 + $0x60] sm:$0xff] }
 0x112   : > { %3558 = vrot.lane.b32.xlu0 %v3557_v25, %s4069_s15  ;;  %v4570_v34 = vld [vmem:[#allocation2 + $0x7a] sm:$0xff]  ;;  %v468_v35 = vpop.f32.mrf.mxu0  ;;  %v3612_v28 = vpack.i.bf16 %v4510_v62, %v866_v16 }
 0x113   : > { %3563 = vrot.lane.b32.xlu1 %v3562_v31, %s4070_s20  ;;  %648 = vst.msk [vmem:[#allocation2 + $0xa9] sm:$0xff] %vm589_vm0, %v569_v32  ;;  %v572_v37 = vmax.f32 %v474_v33, 0.0  ;;  %3374 = vmatprep.mubr.msk.f32.mxu0 %vm589_vm0, %v4570_v34  ;;  %v469_v40 = vadd.f32 %v4443_v12, %v468_v35  ;;  %v3602_v33 = vpack.i.bf16 %v4508_v61, %v865_v24 }
 0x114   : > { %3375 = vmatmul.mubr.msk.f32.gmra.mxu0 %vm589_vm0, %v4578_v39  ;;  %v3335_v42 = vpop.f32.mrf.mxu0  ;;  %v4595_v54 = vld [vmem:[#allocation2 + $0x9a] sm:$0xff] }
 0x115   : > { %651 = vst.msk [vmem:[#allocation2 + $0xc9] sm:$0xff] %vm589_vm0, %v572_v37  ;;  %v571_v44 = vmax.f32 %v469_v40, 0.0  ;;  %v484_v46 = vadd.f32 %v3335_v42, %v4443_v12 }
 0x116   : > { %3578 = vrot.lane.b32.xlu0 %v3577_v36, %s4070_s20  ;;  %v4588_v50 = vld [vmem:[#allocation2 + $0x92] sm:$0xff]  ;;  %v478_v51 = vpop.f32.mrf.mxu0  ;;  %v4658_v36 = vld [vmem:[#allocation2 + $0x81] sm:$0xff] }
 0x117   : > { %3568 = vrot.lane.b32.xlu1 %v3567_v43, %s4069_s15  ;;  %650 = vst.msk [vmem:[#allocation2 + $0xc1] sm:$0xff] %vm589_vm0, %v571_v44  ;;  %v574_v53 = vmax.f32 %v484_v46, 0.0  ;;  %3377 = vmatprep.mubr.msk.f32.mxu0 %vm589_vm0, %v4588_v50  ;;  %v479_v55 = vadd.f32 %v4443_v12, %v478_v51  ;;  %v4671_v44 = vld [vmem:[#allocation2 + $0x79] sm:$0xff]  ;;  %v3622_v29 = vpack.i.bf16 %v866_v16, %v4658_v36 }
 0x118   : > { %3378 = vmatmul.mubr.msk.f32.gmra.mxu0 %vm589_vm0, %v4595_v54  ;;  %v3338_v56 = vpop.f32.mrf.mxu0  ;;  %v4614_v45 = vld [vmem:[#allocation2 + $0xb2] sm:$0xff] }
 0x119   : > { %653 = vst.msk [vmem:[#allocation2 + $0xe1] sm:$0xff] %vm589_vm0, %v574_v53  ;;  %v573_v38 = vmax.f32 %v479_v55, 0.0  ;;  %v494_v58 = vadd.f32 %v3338_v56, %v4443_v12  ;;  %v3637_v55 = vpack.i.bf16 %v865_v24, %v4671_v44 }
 0x11a   : > { %3583 = vrot.lane.b32.xlu0 %v3582_v52, %s4071_s21  ;;  %v4606_v60 = vld [vmem:[#allocation2 + $0xaa] sm:$0xff]  ;;  %v488_v63 = vpop.f32.mrf.mxu0 }
 0x11b   : > { %3573 = vrot.lane.b32.xlu1 %v3572_v57, %s4071_s21  ;;  %652 = vst.msk [vmem:[#allocation2 + $0xd9] sm:$0xff] %vm589_vm0, %v573_v38  ;;  %v576_v1 = vmax.f32 %v494_v58, 0.0  ;;  %3380 = vmatprep.mubr.msk.f32.mxu0 %vm589_vm0, %v4606_v60  ;;  %v489_v48 = vadd.f32 %v4443_v12, %v488_v63  ;;  %v868_v58 = vld [vmem:[#allocation2 + $0x80] sm:$0xff] }
 0x11c   : > { %3381 = vmatmul.mubr.msk.f32.gmra.mxu0 %vm589_vm0, %v4614_v45  ;;  %v3341_v4 = vpop.f32.mrf.mxu0  ;;  %v4632_v13 = vld [vmem:[#allocation2 + $0xca] sm:$0xff] }
 0x11d   : > { %655 = vst.msk [vmem:[#allocation2 + $0xf9] sm:$0xff] %vm589_vm0, %v576_v1  ;;  %v575_v6 = vmax.f32 %v489_v48, 0.0  ;;  %v504_v7 = vadd.f32 %v3341_v4, %v4443_v12  ;;  %v867_v4 = vld [vmem:[#allocation2 + $0x78] sm:$0xff] }
 0x11e   : > { %3588 = vrot.lane.b32.xlu0 %v3587_v0, %s4069_s15  ;;  %v4625_v8 = vld [vmem:[#allocation2 + $0xc2] sm:$0xff]  ;;  %v498_v10 = vpop.f32.mrf.mxu0  ;;  %v3627_v0 = vpack.i.bf16 %v4604_v59, %v4578_v39 }
 0x11f   : > { %3593 = vrot.lane.b32.xlu1 %v3592_v5, %s4070_s20  ;;  %654 = vst.msk [vmem:[#allocation2 + $0xf1] sm:$0xff] %vm589_vm0, %v575_v6  ;;  %v578_v49 = vmax.f32 %v504_v7, 0.0  ;;  %3383 = vmatprep.mubr.msk.f32.mxu0 %vm589_vm0, %v4625_v8  ;;  %v499_v15 = vadd.f32 %v4443_v12, %v498_v10  ;;  %v3642_v7 = vpack.i.bf16 %v4538_v14, %v868_v58 }
 0x120   : > { %3384 = vmatmul.mubr.msk.f32.gmra.mxu0 %vm589_vm0, %v4632_v13  ;;  %v3344_v17 = vpop.f32.mrf.mxu0  ;;  %v4649_v22 = vld [vmem:[#allocation2 + $0xe2] sm:$0xff] }
 0x121   : > { %657 = vst.msk [vmem:[#allocation2 + $0x111] sm:$0xff] %vm589_vm0, %v578_v49  ;;  %v577_v19 = vmax.f32 %v499_v15, 0.0  ;;  %v514_v20 = vadd.f32 %v3344_v17, %v4443_v12  ;;  %v3632_v15 = vpack.i.bf16 %v4530_v9, %v867_v4  ;;  %v902_v17 = vld [vmem:[#allocation2 + $0x99] sm:$0xff] }
 0x122   : > { %3608 = vrot.lane.b32.xlu0 %v3607_v11, %s4070_s20  ;;  %v4642_v25 = vld [vmem:[#allocation2 + $0xda] sm:$0xff]  ;;  %v508_v26 = vpop.f32.mrf.mxu0 }
 0x123   : > { %3598 = vrot.lane.b32.xlu1 %v3597_v18, %s4069_s15  ;;  %656 = vst.msk [vmem:[#allocation2 + $0x109] sm:$0xff] %vm589_vm0, %v577_v19  ;;  %v580_v30 = vmax.f32 %v514_v20, 0.0  ;;  %3386 = vmatprep.mubr.msk.f32.mxu0 %vm589_vm0, %v4642_v25  ;;  %v509_v31 = vadd.f32 %v4443_v12, %v508_v26  ;;  %v3647_v20 = vpack.i.bf16 %v4617_v3, %v4570_v34 }
 0x124   : > { %3387 = vmatmul.mubr.msk.f32.gmra.mxu0 %vm589_vm0, %v4649_v22  ;;  %v3347_v32 = vpop.f32.mrf.mxu0  ;;  %v4668_v61 = vld [vmem:[#allocation2 + $0xfa] sm:$0xff] }
 0x125   : > { %659 = vst.msk [vmem:[#allocation2 + $0x129] sm:$0xff] %vm589_vm0, %v580_v30  ;;  %v579_v62 = vmax.f32 %v509_v31, 0.0  ;;  %v524_v35 = vadd.f32 %v3347_v32, %v4443_v12  ;;  %v3652_v30 = vpack.i.bf16 %v868_v58, %v902_v17  ;;  %v870_v32 = vld [vmem:[#allocation2 + $0x98] sm:$0xff]  ;;  %v873_v58 = vld [vmem:[#allocation2 + $0xc0] sm:$0xff] }
 0x126   : > { %3613 = vrot.lane.b32.xlu0 %v3612_v28, %s4071_s21  ;;  %v4660_v37 = vld [vmem:[#allocation2 + $0xf2] sm:$0xff]  ;;  %v518_v40 = vpop.f32.mrf.mxu0 }
 0x127   : > { %3603 = vrot.lane.b32.xlu1 %v3602_v33, %s4071_s21  ;;  %658 = vst.msk [vmem:[#allocation2 + $0x121] sm:$0xff] %vm589_vm0, %v579_v62  ;;  %v582_v42 = vmax.f32 %v524_v35, 0.0  ;;  %3389 = vmatprep.mubr.msk.f32.mxu0 %vm589_vm0, %v4660_v37  ;;  %v519_v43 = vadd.f32 %v4443_v12, %v518_v40  ;;  %v901_v28 = vld [vmem:[#allocation2 + $0x91] sm:$0xff]  ;;  %v3672_v62 = vpack.i.bf16 %v4559_v27, %v870_v32 }
 0x128   : > { %3390 = vmatmul.mubr.msk.f32.gmra.mxu0 %vm589_vm0, %v4668_v61  ;;  %v3350_v46 = vpop.f32.mrf.mxu0  ;;  %v4686_v57 = vld [vmem:[#allocation2 + $0x112] sm:$0xff]  ;;  %v3667_v31 = vpack.i.bf16 %v867_v4, %v901_v28  ;;  %v3687_v27 = vpack.i.bf16 %v902_v17, %v4614_v45 }
 0x129   : > { %661 = vst.msk [vmem:[#allocation2 + $0x141] sm:$0xff] %vm589_vm0, %v582_v42  ;;  %v581_v47 = vmax.f32 %v519_v43, 0.0  ;;  %v534_v51 = vadd.f32 %v3350_v46, %v4443_v12  ;;  %v869_v33 = vld [vmem:[#allocation2 + $0x90] sm:$0xff] }
 0x12a   : > { %3618 = vrot.lane.b32.xlu0 %v3617_v41, %s4069_s15  ;;  %v4679_v52 = vld [vmem:[#allocation2 + $0x10a] sm:$0xff]  ;;  %v528_v53 = vpop.f32.mrf.mxu0  ;;  %v3662_v35 = vpack.i.bf16 %v4551_v23, %v869_v33  ;;  %v3677_v41 = vpack.i.bf16 %v4671_v44, %v4588_v50 }
 0x12b   : > { %3623 = vrot.lane.b32.xlu1 %v3622_v29, %s4070_s20  ;;  %660 = vst.msk [vmem:[#allocation2 + $0x139] sm:$0xff] %vm589_vm0, %v581_v47  ;;  %v584_v56 = vmax.f32 %v534_v51, 0.0  ;;  %3392 = vmatprep.mubr.msk.f32.mxu0 %vm589_vm0, %v4679_v52  ;;  %v529_v38 = vadd.f32 %v4443_v12, %v528_v53  ;;  %v904_v40 = vld [vmem:[#allocation2 + $0xb1] sm:$0xff]  ;;  %v903_v42 = vld [vmem:[#allocation2 + $0xa9] sm:$0xff]  ;;  %v3707_v51 = vpack.i.bf16 %v901_v28, %v4606_v60  ;;  %v905_v53 = vld [vmem:[#allocation2 + $0xc1] sm:$0xff] }
 0x12c   : > { %3393 = vmatmul.mubr.msk.f32.gmra.mxu0 %vm589_vm0, %v4686_v57  ;;  %v3353_v63 = vpop.f32.mrf.mxu0  ;;  %v4703_v59 = vld [vmem:[#allocation2 + $0x12a] sm:$0xff]  ;;  %v3682_v43 = vpack.i.bf16 %v870_v32, %v904_v40 }
 0x12d   : > { %663 = vst.msk [vmem:[#allocation2 + $0x159] sm:$0xff] %vm589_vm0, %v584_v56  ;;  %v583_v1 = vmax.f32 %v529_v38, 0.0  ;;  %v544_v48 = vadd.f32 %v3353_v63, %v4443_v12  ;;  %v872_v46 = vld [vmem:[#allocation2 + $0xb0] sm:$0xff]  ;;  %v871_v29 = vld [vmem:[#allocation2 + $0xa8] sm:$0xff]  ;;  %v3722_v63 = vpack.i.bf16 %v4588_v50, %v873_v58 }
 0x12e   : > { %3638 = vrot.lane.b32.xlu0 %v3637_v55, %s4070_s20  ;;  %v4696_v5 = vld [vmem:[#allocation2 + $0x122] sm:$0xff]  ;;  %v538_v6 = vpop.f32.mrf.mxu0  ;;  %v3702_v23 = vpack.i.bf16 %v4578_v39, %v872_v46  ;;  %v3692_v44 = vpack.i.bf16 %v4570_v34, %v871_v29  ;;  %v3727_v56 = vpack.i.bf16 %v871_v29, %v905_v53  ;;  %v3717_v39 = vpack.i.bf16 %v904_v40, %v4632_v13  ;;  %v880_v32 = vld [vmem:[#allocation2 + $0x110] sm:$0xff] }
 0x12f   : > { %3628 = vrot.lane.b32.xlu1 %v3627_v0, %s4069_s15  ;;  %662 = vst.msk [vmem:[#allocation2 + $0x151] sm:$0xff] %vm589_vm0, %v583_v1  ;;  %v586_v10 = vmax.f32 %v544_v48, 0.0  ;;  %3395 = vmatprep.mubr.msk.f32.mxu0 %vm589_vm0, %v4696_v5  ;;  %v539_v11 = vadd.f32 %v4443_v12, %v538_v6  ;;  %v906_v47 = vld [vmem:[#allocation2 + $0xc9] sm:$0xff]  ;;  %v908_v0 = vld [vmem:[#allocation2 + $0xe1] sm:$0xff]  ;;  %v3737_v1 = vpack.i.bf16 %v903_v42, %v4625_v8  ;;  %v907_v48 = vld [vmem:[#allocation2 + $0xd9] sm:$0xff] }
 0x130   : > { %3396 = vmatmul.mubr.msk.f32.gmra.mxu0 %vm589_vm0, %v4703_v59  ;;  %v3356_v49 = vpop.f32.mrf.mxu0  ;;  %v4720_v9 = vld [vmem:[#allocation2 + $0x142] sm:$0xff]  ;;  %v3712_v55 = vpack.i.bf16 %v872_v46, %v906_v47  ;;  %v3757_v6 = vpack.i.bf16 %v873_v58, %v907_v48  ;;  %v3797_v28 = vpack.i.bf16 %v907_v48, %v4660_v37 }
 0x131   : > { %665 = vst.msk [vmem:[#allocation2 + $0x171] sm:$0xff] %vm589_vm0, %v586_v10  ;;  %v585_v14 = vmax.f32 %v539_v11, 0.0  ;;  %v554_v16 = vadd.f32 %v3356_v49, %v4443_v12  ;;  %v874_v38 = vld [vmem:[#allocation2 + $0xc8] sm:$0xff]  ;;  %v875_v10 = vld [vmem:[#allocation2 + $0xd8] sm:$0xff] }
 0x132   : > { %3643 = vrot.lane.b32.xlu0 %v3642_v7, %s4071_s21  ;;  %v4712_v18 = vld [vmem:[#allocation2 + $0x13a] sm:$0xff]  ;;  %v548_v19 = vpop.f32.mrf.mxu0  ;;  %v3732_v34 = vpack.i.bf16 %v4595_v54, %v874_v38  ;;  %v3742_v4 = vpack.i.bf16 %v874_v38, %v908_v0  ;;  %v3752_v11 = vpack.i.bf16 %v4606_v60, %v875_v10 }
 0x133   : > { %3633 = vrot.lane.b32.xlu1 %v3632_v15, %s4071_s21  ;;  %664 = vst.msk [vmem:[#allocation2 + $0x169] sm:$0xff] %vm589_vm0, %v585_v14  ;;  %v588_v24 = vmax.f32 %v554_v16, 0.0  ;;  %3398 = vmatprep.mubr.msk.f32.mxu0 %vm589_vm0, %v4712_v18  ;;  %v549_v26 = vadd.f32 %v4443_v12, %v548_v19  ;;  %v3657_v12 = vpack.i.bf16 %v4658_v36, %v4595_v54  ;;  %v876_v7 = vld [vmem:[#allocation2 + $0xe0] sm:$0xff]  ;;  %v909_v14 = vld [vmem:[#allocation2 + $0xf1] sm:$0xff] }
 0x134   : > { %3399 = vmatmul.mubr.msk.f32.gmra.mxu0 %vm589_vm0, %v4720_v9  ;;  %v3697_v36 = vpack.i.bf16 %v869_v33, %v903_v42  ;;  %v3747_v54 = vpack.i.bf16 %v906_v47, %v4649_v22  ;;  %v3762_v50 = vpack.i.bf16 %v4614_v45, %v876_v7  ;;  %v910_v49 = vld [vmem:[#allocation2 + $0xf9] sm:$0xff]  ;;  %v3767_v15 = vpack.i.bf16 %v905_v53, %v4642_v25 }
 0x135   : > { %667 = vst.msk [vmem:[#allocation2 + $0x189] sm:$0xff] %vm589_vm0, %v588_v24  ;;  %v587_v3 = vmax.f32 %v549_v26, 0.0  ;;  %v3772_v16 = vpack.i.bf16 %v876_v7, %v910_v49  ;;  %v3787_v17 = vpack.i.bf16 %v875_v10, %v909_v14  ;;  %v878_v19 = vld [vmem:[#allocation2 + $0xf8] sm:$0xff]  ;;  %v3777_v45 = vpack.i.bf16 %v908_v0, %v4668_v61  ;;  %v668_v53 = vld [vmem:[#allocation2] sm:$0xff]  ;;  %v669_v7 = vld [vmem:[#allocation2 + $0x8] sm:$0xff] }
 0x136   : > { %3648 = vrot.lane.b32.xlu0 %v3647_v20, %s4069_s15  ;;  %v877_v20 = vld [vmem:[#allocation2 + $0xf0] sm:$0xff]  ;;  %v3792_v60 = vpack.i.bf16 %v4632_v13, %v878_v19 }
 0x137   : > { %3653 = vrot.lane.b32.xlu1 %v3652_v30, %s4070_s20  ;;  %666 = vst.msk [vmem:[#allocation2 + $0x181] sm:$0xff] %vm589_vm0, %v587_v3  ;;  %v3782_v24 = vpack.i.bf16 %v4625_v8, %v877_v20  ;;  %v912_v26 = vld [vmem:[#allocation2 + $0x111] sm:$0xff]  ;;  %v4779_v30 = vld [vmem:[#allocation2 + $0x109] sm:$0xff]  ;;  %v3807_v8 = vpack.i.bf16 %v910_v49, %v4686_v57 }
 0x138   : > { %v3802_v3 = vpack.i.bf16 %v878_v19, %v912_v26  ;;  %v3837_v58 = vpack.i.bf16 %v912_v26, %v4703_v59  ;;  %v4834_v26 = vld [vmem:[#allocation2 + $0x139] sm:$0xff] }
 0x13a   : > { %3668 = vrot.lane.b32.xlu0 %v3667_v31, %s4070_s20  ;;  %v3817_v31 = vpack.i.bf16 %v877_v20, %v4779_v30 }
 0x13b   : > { %3658 = vrot.lane.b32.xlu1 %v3657_v12, %s4069_s15  ;;  %v879_v12 = vld [vmem:[#allocation2 + $0x108] sm:$0xff] }
 0x13c   : > { %v3812_v40 = vpack.i.bf16 %v4642_v25, %v879_v12 }
 0x13e   : > { %3673 = vrot.lane.b32.xlu0 %v3672_v62, %s4071_s21  ;;  %v3822_v62 = vpack.i.bf16 %v4649_v22, %v880_v32 }
 0x13f   : > { %3663 = vrot.lane.b32.xlu1 %v3662_v35, %s4071_s21 }
 0x142   : > { %3678 = vrot.lane.b32.xlu0 %v3677_v41, %s4069_s15  ;;  %v4792_v41 = vld [vmem:[#allocation2 + $0x129] sm:$0xff] }
 0x143   : > { %3683 = vrot.lane.b32.xlu1 %v3682_v43, %s4070_s20  ;;  %v3827_v43 = vpack.i.bf16 %v909_v14, %v4679_v52  ;;  %v3832_v22 = vpack.i.bf16 %v880_v32, %v4792_v41  ;;  %v4003_v32 = vld [vmem:[%s5467_s2 + $0x110] sm:$0xff] }
 0x146   : > { %3698 = vrot.lane.b32.xlu0 %v3697_v36, %s4070_s20  ;;  %v4796_v36 = vld [vmem:[#allocation2 + $0x121] sm:$0xff] }
 0x147   : > { %3688 = vrot.lane.b32.xlu1 %v3687_v27, %s4069_s15 }
 0x14a   : > { %3703 = vrot.lane.b32.xlu0 %v3702_v23, %s4071_s21 }
 0x14b   : > { %3693 = vrot.lane.b32.xlu1 %v3692_v44, %s4071_s21 }
 0x14e   : > { %3708 = vrot.lane.b32.xlu0 %v3707_v51, %s4069_s15  ;;  %v3847_v51 = vpack.i.bf16 %v879_v12, %v4796_v36 }
 0x14f   : > { %3713 = vrot.lane.b32.xlu1 %v3712_v55, %s4070_s20 }
 0x152   : > { %3728 = vrot.lane.b32.xlu0 %v3727_v56, %s4070_s20  ;;  %v882_v56 = vld [vmem:[#allocation2 + $0x128] sm:$0xff] }
 0x153   : > { %3718 = vrot.lane.b32.xlu1 %v3717_v39, %s4069_s15 }
 0x156   : > { %3733 = vrot.lane.b32.xlu0 %v3732_v34, %s4071_s21 }
 0x157   : > { %3723 = vrot.lane.b32.xlu1 %v3722_v63, %s4071_s21 }
 0x15a   : > { %3738 = vrot.lane.b32.xlu0 %v3737_v1, %s4069_s15 }
 0x15b   : > { %3743 = vrot.lane.b32.xlu1 %v3742_v4, %s4070_s20 }
 0x15e   : > { %3758 = vrot.lane.b32.xlu0 %v3757_v6, %s4070_s20  ;;  %v881_v6 = vld [vmem:[#allocation2 + $0x120] sm:$0xff] }
 0x15f   : > { %3748 = vrot.lane.b32.xlu1 %v3747_v54, %s4069_s15 }
 0x162   : > { %3763 = vrot.lane.b32.xlu0 %v3762_v50, %s4071_s21  ;;  %v3852_v50 = vpack.i.bf16 %v4668_v61, %v882_v56 }
 0x163   : > { %3753 = vrot.lane.b32.xlu1 %v3752_v11, %s4071_s21 }
 0x166   : > { %3768 = vrot.lane.b32.xlu0 %v3767_v15, %s4069_s15 }
 0x167   : > { %3773 = vrot.lane.b32.xlu1 %v3772_v16, %s4070_s20  ;;  %v3842_v16 = vpack.i.bf16 %v4660_v37, %v881_v6  ;;  %v4002_v37 = vld [vmem:[%s5467_s2 + $0x118] sm:$0xff] }
 0x16a   : > { %3788 = vrot.lane.b32.xlu0 %v3787_v17, %s4070_s20 }
 0x16b   : > { %3778 = vrot.lane.b32.xlu1 %v3777_v45, %s4069_s15  ;;  %v4828_v45 = vld [vmem:[#allocation2 + $0x141] sm:$0xff] }
 0x16e   : > { %3793 = vrot.lane.b32.xlu0 %v3792_v60, %s4071_s21 }
 0x16f   : > { %3783 = vrot.lane.b32.xlu1 %v3782_v24, %s4071_s21  ;;  %v3857_v24 = vpack.i.bf16 %v4779_v30, %v4696_v5 }
 0x172   : > { %3798 = vrot.lane.b32.xlu0 %v3797_v28, %s4069_s15 }
 0x173   : > { %3803 = vrot.lane.b32.xlu1 %v3802_v3, %s4070_s20 }
 0x175   : > { %v3524_v13 = vpop.permute.xlu1 %3523 }
 0x176   : > { %3818 = vrot.lane.b32.xlu0 %v3817_v31, %s4070_s20  ;;  %v3525_v46 = vunpack.i.l.bf16 %v3524_v13  ;;  %v3526_v38 = vunpack.i.h.bf16 %v3524_v13  ;;  %v3862_v31 = vpack.i.bf16 %v882_v56, %v4828_v45 }
 0x177   : > { %v3529_v33 = vpop.permute.xlu0 %3528  ;;  %3808 = vrot.lane.b32.xlu1 %v3807_v8, %s4069_s15  ;;  %v4849_v8 = vld [vmem:[#allocation2 + $0x140] sm:$0xff] }
 0x178   : > { %v3530_v27 = vunpack.i.l.bf16 %v3529_v33  ;;  %v3531_v23 = vunpack.i.h.bf16 %v3529_v33  ;;  %v1824_v63 = vsel %vm589_vm0, %v4522_v2, %v3525_v46  ;;  %v1726_v17 = vsel %vm589_vm0, %v669_v7, %v3526_v38  ;;  %v671_v7 = vld [vmem:[#allocation2 + $0x20] sm:$0xff] }
 0x179   : > { %v4788_v35 = vpop.permute.xlu1 %3533  ;;  %v3867_v46 = vpack.i.bf16 %v4792_v41, %v4720_v9 }
 0x17a   : > { %3823 = vrot.lane.b32.xlu0 %v3822_v62, %s4071_s21  ;;  %v1823_v34 = vsel %vm589_vm0, %v4547_v21, %v3530_v27  ;;  %v1725_v4 = vsel %vm589_vm0, %v668_v53, %v3531_v23  ;;  %v3535_v2 = vunpack.i.l.bf16 %v4788_v35  ;;  %v3536_v20 = vunpack.i.h.bf16 %v4788_v35  ;;  %v799_v23 = vld [vmem:[#allocation2 + $0x39] sm:$0xff] }
 0x17b   : > { %3813 = vrot.lane.b32.xlu1 %v3812_v40, %s4071_s21  ;;  %v3877_v62 = vpack.i.bf16 %v881_v6, %v4834_v26  ;;  %v4004_v40 = vld [vmem:[%s5467_s2 + $0x108] sm:$0xff]  ;;  %v3882_v27 = vpack.i.bf16 %v4686_v57, %v4849_v8  ;;  %v670_v53 = vld [vmem:[#allocation2 + $0x18] sm:$0xff] }
 0x17c   : > { %v3544_v42 = vpop.permute.xlu0 %3543 }
 0x17d   : > { %v4798_v29 = vpop.permute.xlu1 %3538  ;;  %v3546_v44 = vunpack.i.h.bf16 %v3544_v42  ;;  %v3545_v25 = vunpack.i.l.bf16 %v3544_v42 }
 0x17e   : > { %3828 = vrot.lane.b32.xlu0 %v3827_v43, %s4069_s15  ;;  %v3540_v30 = vunpack.i.l.bf16 %v4798_v29  ;;  %v3541_v42 = vunpack.i.h.bf16 %v4798_v29 }
 0x17f   : > { %3833 = vrot.lane.b32.xlu1 %v3832_v22, %s4070_s20  ;;  %v1855_v10 = vsel %vm1757_vm3, %v1823_v34, %v3545_v25  ;;  %v1758_v21 = vsel %vm1757_vm3, %v1725_v4, %v3546_v44  ;;  %v798_v22 = vld [vmem:[#allocation2 + $0x31] sm:$0xff] }
 0x180   : > { %v3554_v47 = vpop.permute.xlu0 %3553  ;;  %v1826_v29 = vsel %vm589_vm0, %v799_v23, %v3540_v30 }
 0x181   : > { %v3555_v55 = vunpack.i.l.bf16 %v3554_v47  ;;  %v3549_v39 = vpop.permute.xlu1 %3548  ;;  %v3556_v0 = vunpack.i.h.bf16 %v3554_v47 }
 0x182   : > { %3848 = vrot.lane.b32.xlu0 %v3847_v51, %s4070_s20  ;;  %v3551_v1 = vunpack.i.h.bf16 %v3549_v39  ;;  %v3550_v48 = vunpack.i.l.bf16 %v3549_v39  ;;  %v883_v51 = vld [vmem:[#allocation2 + $0x138] sm:$0xff] }
 0x183   : > { %3838 = vrot.lane.b32.xlu1 %v3837_v58, %s4069_s15  ;;  %v1856_v11 = vsel %vm1757_vm3, %v1824_v63, %v3555_v55  ;;  %v1759_v19 = vsel %vm1757_vm3, %v1726_v17, %v3556_v0  ;;  %v4005_v55 = vld [vmem:[%s5467_s2 + $0x100] sm:$0xff]  ;;  %v3872_v4 = vpack.i.bf16 %v4679_v52, %v883_v51 }
 0x184   : > { %v4812_v54 = vpop.permute.xlu0 %3558  ;;  %v1887_v49 = vsel %vm1790_vm4, %v1855_v10, %v3550_v48  ;;  %v1791_v15 = vsel %vm1790_vm4, %v1758_v21, %v3551_v1  ;;  %v1888_v61 = vsel %vm1790_vm4, %v1856_v11, %v3535_v2  ;;  %v1792_v3 = vsel %vm1790_vm4, %v1759_v19, %v3536_v20  ;;  %v886_v20 = vld [vmem:[#allocation2 + $0x158] sm:$0xff] }
 0x185   : > { %v4821_v14 = vpop.permute.xlu1 %3563  ;;  %2122 = vmatprep.mubr.f32.mxu1 %v1887_v49  ;;  %v3560_v13 = vunpack.i.l.bf16 %v4812_v54  ;;  %v3561_v12 = vunpack.i.h.bf16 %v4812_v54  ;;  %v4880_v54 = vld [vmem:[#allocation2 + $0x159] sm:$0xff]  ;;  %v1728_v10 = vsel %vm589_vm0, %v671_v7, %v3541_v42  ;;  %v3887_v11 = vpack.i.bf16 %v4796_v36, %v4712_v18  ;;  %v4889_v49 = vld [vmem:[#allocation2 + $0x151] sm:$0xff]  ;;  %v4940_v7 = vld [vmem:[#allocation2 + $0x168] sm:$0xff] }
 0x186   : > { %3853 = vrot.lane.b32.xlu0 %v3852_v50, %s4071_s21  ;;  %2123 = vmatmul.mubr.f32.vlgmr.msra.gmra.mxu1 %v1791_v15  ;;  %v3565_v0 = vunpack.i.l.bf16 %v4821_v14  ;;  %v3566_v52 = vunpack.i.h.bf16 %v4821_v14  ;;  %v4898_v36 = vld [vmem:[#allocation2 + $0x15a] sm:$0xff]  ;;  %v3912_v30 = vpack.i.bf16 %v4703_v59, %v886_v20 }
 0x187   : > { %2127 = vmatprep.mubr.f32.mxu1 %v1888_v61  ;;  %3843 = vrot.lane.b32.xlu1 %v3842_v16, %s4071_s21  ;;  %v1825_v47 = vsel %vm589_vm0, %v798_v22, %v3560_v13  ;;  %v1727_v39 = vsel %vm589_vm0, %v670_v53, %v3561_v12  ;;  %v3892_v16 = vpack.i.bf16 %v4849_v8, %v4880_v54  ;;  %v800_v13 = vld [vmem:[#allocation2 + $0x49] sm:$0xff]  ;;  %v801_v8 = vld [vmem:[#allocation2 + $0x51] sm:$0xff] }
 0x188   : > { %v3579_v60 = vpop.permute.xlu0 %3578  ;;  %3473 = vmatpush3.msra.mxu1 %v4002_v37 }
 0x189   : > { %v4839_v28 = vpop.permute.xlu1 %3568  ;;  %3470 = vmatprep.subr.mxu1 %v4003_v32  ;;  %v3581_v41 = vunpack.i.h.bf16 %v3579_v60  ;;  %v3580_v56 = vunpack.i.l.bf16 %v3579_v60 }
 0x18a   : > { %3858 = vrot.lane.b32.xlu0 %v3857_v24, %s4069_s15  ;;  %2128 = vmatmul.mubr.f32.gmra.mxu1 %v1792_v3  ;;  %v3570_v17 = vunpack.i.l.bf16 %v4839_v28  ;;  %v3907_v24 = vpack.i.bf16 %v883_v51, %v4889_v49  ;;  %v3571_v3 = vunpack.i.h.bf16 %v4839_v28 }
 0x18b   : > { %3863 = vrot.lane.b32.xlu1 %v3862_v31, %s4070_s20  ;;  %3474 = vmatpush3.msra.mxu1 %v4003_v32  ;;  %v3897_v32 = vpack.i.bf16 %v4828_v45, %v4898_v36 }
 0x18c   : > { %v3584_v33 = vpop.permute.xlu0 %3583  ;;  %3471 = vmatprep.subr.mxu1 %v4004_v40  ;;  %v1828_v42 = vsel %vm589_vm0, %v801_v8, %v3570_v17  ;;  %v802_v17 = vld [vmem:[#allocation2 + $0x61] sm:$0xff]  ;;  %v4961_v8 = vld [vmem:[#allocation2 + $0x16a] sm:$0xff] }
 0x18d   : > { %v3585_v35 = vunpack.i.l.bf16 %v3584_v33  ;;  %v3574_v43 = vpop.permute.xlu1 %3573  ;;  %3475 = vmatpush3.msra.mxu1 %v4004_v40  ;;  %v3586_v38 = vunpack.i.h.bf16 %v3584_v33  ;;  %v672_v40 = vld [vmem:[#allocation2 + $0x30] sm:$0xff] }
 0x18e   : > { %3878 = vrot.lane.b32.xlu0 %v3877_v62, %s4070_s20  ;;  %v3576_v44 = vunpack.i.h.bf16 %v3574_v43  ;;  %v3575_v25 = vunpack.i.l.bf16 %v3574_v43  ;;  %3472 = vmatprep.subr.mxu1 %v4005_v55 }
 0x18f   : > { %3868 = vrot.lane.b32.xlu1 %v3867_v46, %s4069_s15  ;;  %3476 = vmatpush3.msra.mxu1 %v4005_v55  ;;  %v1858_v63 = vsel %vm1757_vm3, %v1826_v29, %v3585_v35  ;;  %v1761_v2 = vsel %vm1757_vm3, %v1728_v10, %v3586_v38  ;;  %v885_v35 = vld [vmem:[#allocation2 + $0x150] sm:$0xff]  ;;  %v673_v55 = vld [vmem:[#allocation2 + $0x38] sm:$0xff] }
 0x190   : > { %v3589_v57 = vpop.permute.xlu0 %3588  ;;  %v1857_v58 = vsel %vm1757_vm3, %v1825_v47, %v3575_v25  ;;  %v1760_v34 = vsel %vm1757_vm3, %v1727_v39, %v3576_v44  ;;  %v1890_v21 = vsel %vm1790_vm4, %v1858_v63, %v3565_v0  ;;  %v1794_v19 = vsel %vm1790_vm4, %v1761_v2, %v3566_v52  ;;  %v4914_v44 = vld [vmem:[#allocation2 + $0x152] sm:$0xff] }
 0x191   : > { %v4874_v1 = vpop.permute.xlu1 %3593  ;;  %v1889_v48 = vsel %vm1790_vm4, %v1857_v58, %v3580_v56  ;;  %v1793_v6 = vsel %vm1790_vm4, %v1760_v34, %v3581_v41  ;;  %v3590_v61 = vunpack.i.l.bf16 %v3589_v57  ;;  %v3591_v60 = vunpack.i.h.bf16 %v3589_v57  ;;  %v4923_v41 = vld [vmem:[#allocation2 + $0x171] sm:$0xff]  ;;  %v4932_v34 = vld [vmem:[#allocation2 + $0x169] sm:$0xff] }
 0x192   : > { %3883 = vrot.lane.b32.xlu0 %v3882_v27, %s4071_s21  ;;  %2132 = vmatprep.mubr.f32.mxu1 %v1889_v48  ;;  %v3595_v25 = vunpack.i.l.bf16 %v4874_v1  ;;  %v3902_v53 = vpack.i.bf16 %v4696_v5, %v885_v35  ;;  %v1730_v56 = vsel %vm589_vm0, %v673_v55, %v3571_v3  ;;  %v3917_v39 = vpack.i.bf16 %v4834_v26, %v4914_v44  ;;  %v4942_v26 = vld [vmem:[#allocation2 + $0x170] sm:$0xff]  ;;  %v4991_v55 = vld [vmem:[#allocation2 + $0x188] sm:$0xff] }
 0x193   : > { %3873 = vrot.lane.b32.xlu1 %v3872_v4, %s4071_s21  ;;  %2133 = vmatmul.mubr.f32.gmra.mxu1 %v1793_v6  ;;  %v1827_v62 = vsel %vm589_vm0, %v800_v13, %v3590_v61  ;;  %v1729_v45 = vsel %vm589_vm0, %v672_v40, %v3591_v60  ;;  %v3596_v5 = vunpack.i.h.bf16 %v4874_v1  ;;  %v3922_v0 = vpack.i.bf16 %v886_v20, %v4923_v41  ;;  %v803_v61 = vld [vmem:[#allocation2 + $0x69] sm:$0xff] }
 0x194   : > { %v3609_v50 = vpop.permute.xlu0 %3608  ;;  %2137 = vmatprep.mubr.f32.mxu1 %v1890_v21  ;;  %v3927_v52 = vpack.i.bf16 %v4712_v18, %v4940_v7 }
 0x195   : > { %v4891_v15 = vpop.permute.xlu1 %3598  ;;  %v3611_v43 = vunpack.i.h.bf16 %v3609_v50  ;;  %v3610_v28 = vunpack.i.l.bf16 %v3609_v50  ;;  %v3937_v50 = vpack.i.bf16 %v885_v35, %v4932_v34 }
 0x196   : > { %3888 = vrot.lane.b32.xlu0 %v3887_v11, %s4069_s15  ;;  %v3600_v48 = vunpack.i.l.bf16 %v4891_v15  ;;  %v3601_v11 = vunpack.i.h.bf16 %v4891_v15 }
 0x197   : > { %3893 = vrot.lane.b32.xlu1 %v3892_v16, %s4070_s20  ;;  %2138 = vmatmul.mubr.f32.gmra.mxu1 %v1794_v19  ;;  %v3942_v16 = vpack.i.bf16 %v4720_v9, %v4942_v26 }
 0x198   : > { %v3614_v14 = vpop.permute.xlu0 %3613  ;;  %v1830_v15 = vsel %vm589_vm0, %v803_v61, %v3600_v48  ;;  %v805_v48 = vld [vmem:[#allocation2 + $0x81] sm:$0xff] }
 0x199   : > { %v3615_v37 = vunpack.i.l.bf16 %v3614_v14  ;;  %v3604_v31 = vpop.permute.xlu1 %3603  ;;  %v3616_v46 = vunpack.i.h.bf16 %v3614_v14  ;;  %v4953_v14 = vld [vmem:[#allocation2 + $0x172] sm:$0xff] }
 0x19a   : > { %3908 = vrot.lane.b32.xlu0 %v3907_v24, %s4070_s20  ;;  %v3606_v12 = vunpack.i.h.bf16 %v3604_v31  ;;  %v3605_v33 = vunpack.i.l.bf16 %v3604_v31  ;;  %v674_v24 = vld [vmem:[#allocation2 + $0x48] sm:$0xff]  ;;  %v3932_v35 = vpack.i.bf16 %v4880_v54, %v4953_v14 }
 0x19b   : > { %3898 = vrot.lane.b32.xlu1 %v3897_v32, %s4069_s15  ;;  %v1860_v23 = vsel %vm1757_vm3, %v1828_v42, %v3615_v37  ;;  %v1763_v58 = vsel %vm1757_vm3, %v1730_v56, %v3616_v46  ;;  %v675_v42 = vld [vmem:[#allocation2 + $0x50] sm:$0xff] }
 0x19c   : > { %v3619_v27 = vpop.permute.xlu0 %3618  ;;  %v1859_v59 = vsel %vm1757_vm3, %v1827_v62, %v3605_v33  ;;  %v1762_v22 = vsel %vm1757_vm3, %v1729_v45, %v3606_v12  ;;  %v1892_v57 = vsel %vm1790_vm4, %v1860_v23, %v3595_v25  ;;  %v1796_v6 = vsel %vm1790_vm4, %v1763_v58, %v3596_v5 }
 0x19d   : > { %v4917_v47 = vpop.permute.xlu1 %3623  ;;  %v1891_v51 = vsel %vm1790_vm4, %v1859_v59, %v3610_v28  ;;  %v1795_v29 = vsel %vm1790_vm4, %v1762_v22, %v3611_v43  ;;  %v3620_v4 = vunpack.i.l.bf16 %v3619_v27  ;;  %v3621_v10 = vunpack.i.h.bf16 %v3619_v27  ;;  %v4971_v43 = vld [vmem:[#allocation2 + $0x180] sm:$0xff] }
 0x19e   : > { %3913 = vrot.lane.b32.xlu0 %v3912_v30, %s4071_s21  ;;  %2142 = vmatprep.mubr.f32.mxu1 %v1891_v51  ;;  %v3625_v12 = vunpack.i.l.bf16 %v4917_v47  ;;  %v1732_v28 = vsel %vm589_vm0, %v675_v42, %v3601_v11  ;;  %v3947_v45 = vpack.i.bf16 %v4889_v49, %v4961_v8  ;;  %v3626_v54 = vunpack.i.h.bf16 %v4917_v47  ;;  %v4980_v22 = vld [vmem:[#allocation2 + $0x181] sm:$0xff]  ;;  %v4989_v49 = vld [vmem:[#allocation2 + $0x189] sm:$0xff] }
 0x19f   : > { %3903 = vrot.lane.b32.xlu1 %v3902_v53, %s4071_s21  ;;  %2143 = vmatmul.mubr.f32.gmra.mxu1 %v1795_v29  ;;  %v1829_v60 = vsel %vm589_vm0, %v802_v17, %v3620_v4  ;;  %v1731_v32 = vsel %vm589_vm0, %v674_v24, %v3621_v10  ;;  %v3952_v25 = vpack.i.bf16 %v4914_v44, %v4971_v43  ;;  %v5009_v17 = vld [vmem:[#allocation2 + $0x182] sm:$0xff] }
 0x1a0   : > { %v3639_v38 = vpop.permute.xlu0 %3638  ;;  %2147 = vmatprep.mubr.f32.mxu1 %v1892_v57  ;;  %v3957_v58 = vpack.i.bf16 %v4942_v26, %v4989_v49  ;;  %v3977_v5 = vpack.i.bf16 %v4898_v36, %v4991_v55  ;;  %v924_v42 = vld [vmem:[#allocation2 + $0x1a1] sm:$0xff] }
 0x1a1   : > { %v4934_v63 = vpop.permute.xlu1 %3628  ;;  %v3641_v37 = vunpack.i.h.bf16 %v3639_v38  ;;  %v3640_v3 = vunpack.i.l.bf16 %v3639_v38  ;;  %v3972_v38 = vpack.i.bf16 %v4940_v7, %v4980_v22  ;;  %v676_v7 = vld [vmem:[#allocation2 + $0x60] sm:$0xff] }
 0x1a2   : > { %3918 = vrot.lane.b32.xlu0 %v3917_v39, %s4069_s15  ;;  %v3630_v51 = vunpack.i.l.bf16 %v4934_v63  ;;  %v3631_v44 = vunpack.i.h.bf16 %v4934_v63 }
 0x1a3   : > { %3923 = vrot.lane.b32.xlu1 %v3922_v0, %s4070_s20  ;;  %2148 = vmatmul.mubr.f32.gmra.mxu1 %v1796_v6  ;;  %v804_v0 = vld [vmem:[#allocation2 + $0x79] sm:$0xff] }
 0x1a4   : > { %v3644_v1 = vpop.permute.xlu0 %3643 }
 0x1a5   : > { %v3645_v21 = vunpack.i.l.bf16 %v3644_v1  ;;  %v3634_v2 = vpop.permute.xlu1 %3633  ;;  %v3646_v31 = vunpack.i.h.bf16 %v3644_v1  ;;  %v891_v1 = vld [vmem:[#allocation2 + $0x198] sm:$0xff] }
 0x1a6   : > { %3938 = vrot.lane.b32.xlu0 %v3937_v50, %s4070_s20  ;;  %v3636_v19 = vunpack.i.h.bf16 %v3634_v2  ;;  %v3635_v20 = vunpack.i.l.bf16 %v3634_v2  ;;  %v1832_v50 = vsel %vm589_vm0, %v805_v48, %v3630_v51  ;;  %v806_v51 = vld [vmem:[#allocation2 + $0x91] sm:$0xff] }
 0x1a7   : > { %3928 = vrot.lane.b32.xlu1 %v3927_v52, %s4071_s21  ;;  %v1862_v13 = vsel %vm1757_vm3, %v1830_v15, %v3645_v21  ;;  %v1765_v59 = vsel %vm1757_vm3, %v1732_v28, %v3646_v31  ;;  %v677_v15 = vld [vmem:[#allocation2 + $0x68] sm:$0xff]  ;;  %v892_v28 = vld [vmem:[#allocation2 + $0x1a0] sm:$0xff] }
 0x1a8   : > { %v3649_v18 = vpop.permute.xlu0 %3648  ;;  %v1861_v9 = vsel %vm1757_vm3, %v1829_v60, %v3635_v20  ;;  %v1764_v30 = vsel %vm1757_vm3, %v1731_v32, %v3636_v19  ;;  %v1894_v27 = vsel %vm1790_vm4, %v1862_v13, %v3625_v12  ;;  %v1798_v29 = vsel %vm1790_vm4, %v1765_v59, %v3626_v54  ;;  %v923_v13 = vld [vmem:[#allocation2 + $0x199] sm:$0xff] }
 0x1a9   : > { %v4964_v33 = vpop.permute.xlu1 %3653  ;;  %v1893_v62 = vsel %vm1790_vm4, %v1861_v9, %v3640_v3  ;;  %v1797_v40 = vsel %vm1790_vm4, %v1764_v30, %v3641_v37  ;;  %v3650_v53 = vunpack.i.l.bf16 %v3649_v18  ;;  %v3651_v47 = vunpack.i.h.bf16 %v3649_v18  ;;  %v5018_v37 = vld [vmem:[#allocation2 + $0x18a] sm:$0xff] }
 0x1aa   : > { %3943 = vrot.lane.b32.xlu0 %v3942_v16, %s4071_s21  ;;  %2152 = vmatprep.mubr.f32.mxu1 %v1893_v62  ;;  %v3655_v61 = vunpack.i.l.bf16 %v4964_v33  ;;  %v3962_v60 = vpack.i.bf16 %v4961_v8, %v891_v1  ;;  %v1734_v3 = vsel %vm589_vm0, %v677_v15, %v3631_v44  ;;  %v3982_v32 = vpack.i.bf16 %v4932_v34, %v5009_v17  ;;  %v809_v15 = vld [vmem:[#allocation2 + $0xb1] sm:$0xff] }
 0x1ab   : > { %3933 = vrot.lane.b32.xlu1 %v3932_v35, %s4069_s15  ;;  %2153 = vmatmul.mubr.f32.gmra.mxu1 %v1797_v40  ;;  %v1831_v10 = vsel %vm589_vm0, %v804_v0, %v3650_v53  ;;  %v1733_v26 = vsel %vm589_vm0, %v676_v7, %v3651_v47  ;;  %v3656_v30 = vunpack.i.h.bf16 %v4964_v33  ;;  %v3967_v12 = vpack.i.bf16 %v4923_v41, %v5018_v37  ;;  %v807_v53 = vld [vmem:[#allocation2 + $0x99] sm:$0xff] }
 0x1ac   : > { %v3669_v46 = vpop.permute.xlu0 %3668  ;;  %2157 = vmatprep.mubr.f32.mxu1 %v1894_v27  ;;  %v3987_v27 = vpack.i.bf16 %v4971_v43, %v923_v13  ;;  %v3997_v41 = vpack.i.bf16 %v4991_v55, %v924_v42 }
 0x1ad   : > { %v4982_v23 = vpop.permute.xlu1 %3658  ;;  %v3671_v63 = vunpack.i.h.bf16 %v3669_v46  ;;  %v3670_v21 = vunpack.i.l.bf16 %v3669_v46 }
 0x1ae   : > { %3948 = vrot.lane.b32.xlu0 %v3947_v45, %s4069_s15  ;;  %v3660_v62 = vunpack.i.l.bf16 %v4982_v23  ;;  %v3661_v59 = vunpack.i.h.bf16 %v4982_v23 }
 0x1af   : > { %3953 = vrot.lane.b32.xlu1 %v3952_v25, %s4071_s21  ;;  %2158 = vmatmul.mubr.f32.gmra.mxu1 %v1798_v29  ;;  %v3992_v25 = vpack.i.bf16 %v4953_v14, %v892_v28 }
 0x1b0   : > { %v3674_v56 = vpop.permute.xlu0 %3673 }
 0x1b1   : > { %v3675_v57 = vunpack.i.l.bf16 %v3674_v56  ;;  %v3664_v39 = vpop.permute.xlu1 %3663  ;;  %v3676_v11 = vunpack.i.h.bf16 %v3674_v56 }
 0x1b2   : > { %3973 = vrot.lane.b32.xlu0 %v3972_v38, %s4070_s20  ;;  %v3666_v4 = vunpack.i.h.bf16 %v3664_v39  ;;  %v3665_v6 = vunpack.i.l.bf16 %v3664_v39  ;;  %v678_v38 = vld [vmem:[#allocation2 + $0x78] sm:$0xff] }
 0x1b3   : > { %3958 = vrot.lane.b32.xlu1 %v3957_v58, %s4070_s20  ;;  %v1864_v16 = vsel %vm1757_vm3, %v1832_v50, %v3675_v57  ;;  %v1767_v9 = vsel %vm1757_vm3, %v1734_v3, %v3676_v11  ;;  %v1834_v57 = vsel %vm589_vm0, %v807_v53, %v3660_v62  ;;  %v2541_v53 = vld [vmem:[%s5468_s3 + $0x8] sm:$0xff] }
 0x1b4   : > { %v3679_v2 = vpop.permute.xlu0 %3678  ;;  %v1863_v36 = vsel %vm1757_vm3, %v1831_v10, %v3665_v6  ;;  %v1766_v52 = vsel %vm1757_vm3, %v1733_v26, %v3666_v4  ;;  %v1896_v18 = vsel %vm1790_vm4, %v1864_v16, %v3655_v61  ;;  %v1800_v40 = vsel %vm1790_vm4, %v1767_v9, %v3656_v30  ;;  %v679_v10 = vld [vmem:[#allocation2 + $0x80] sm:$0xff] }
 0x1b5   : > { %v5012_v19 = vpop.permute.xlu1 %3683  ;;  %v1895_v20 = vsel %vm1790_vm4, %v1863_v36, %v3670_v21  ;;  %v1799_v24 = vsel %vm1790_vm4, %v1766_v52, %v3671_v63  ;;  %v3680_v35 = vunpack.i.l.bf16 %v3679_v2  ;;  %v3681_v46 = vunpack.i.h.bf16 %v3679_v2 }
 0x1b6   : > { %3978 = vrot.lane.b32.xlu0 %v3977_v5, %s4071_s21  ;;  %2162 = vmatprep.mubr.f32.mxu1 %v1895_v20  ;;  %v3685_v0 = vunpack.i.l.bf16 %v5012_v19  ;;  %v1736_v1 = vsel %vm589_vm0, %v679_v10, %v3661_v59  ;;  %v3686_v21 = vunpack.i.h.bf16 %v5012_v19  ;;  %v2542_v59 = vld [vmem:[%s5468_s3 + $0x10] sm:$0xff] }
 0x1b7   : > { %3963 = vrot.lane.b32.xlu1 %v3962_v60, %s4071_s21  ;;  %2163 = vmatmul.mubr.f32.gmra.mxu1 %v1799_v24  ;;  %v1833_v56 = vsel %vm589_vm0, %v806_v51, %v3680_v35  ;;  %v1735_v58 = vsel %vm589_vm0, %v678_v38, %v3681_v46  ;;  %v808_v24 = vld [vmem:[#allocation2 + $0xa9] sm:$0xff] }
 0x1b8   : > { %v3699_v31 = vpop.permute.xlu0 %3698  ;;  %2167 = vmatprep.mubr.f32.mxu1 %v1896_v18  ;;  %v680_v18 = vld [vmem:[#allocation2 + $0x90] sm:$0xff] }
 0x1b9   : > { %v5027_v8 = vpop.permute.xlu1 %3688  ;;  %v3701_v43 = vunpack.i.h.bf16 %v3699_v31  ;;  %v3700_v44 = vunpack.i.l.bf16 %v3699_v31 }
 0x1ba   : > { %3983 = vrot.lane.b32.xlu0 %v3982_v32, %s4069_s15  ;;  %v3690_v2 = vunpack.i.l.bf16 %v5027_v8  ;;  %v3691_v20 = vunpack.i.h.bf16 %v5027_v8  ;;  %v2543_v8 = vld [vmem:[%s5468_s3 + $0x18] sm:$0xff] }
 0x1bb   : > { %3968 = vrot.lane.b32.xlu1 %v3967_v12, %s4069_s15  ;;  %2168 = vmatmul.mubr.f32.gmra.mxu1 %v1800_v40  ;;  %s3080_s15 = sshll.u32 %s269_s14, 8 }
 0x1bc   : > { %v3704_v33 = vpop.permute.xlu0 %3703  ;;  %v1836_v32 = vsel %vm589_vm0, %v809_v15, %v3690_v2  ;;  %3413 = vmatprep.subr.mxu0 %v2543_v8  ;;  %s5320_s18 = scalar_lea.vmem [#allocation3], %s3080_s15 }
 0x1bd   : > { %v3705_v45 = vunpack.i.l.bf16 %v3704_v33  ;;  %v3694_v54 = vpop.permute.xlu1 %3693  ;;  %v3706_v39 = vunpack.i.h.bf16 %v3704_v33  ;;  %3414 = vmatpush3.msra.mxu0 %v2543_v8 }
 0x1be   : > { %3988 = vrot.lane.b32.xlu0 %v3987_v27, %s4070_s20  ;;  %v3696_v29 = vunpack.i.h.bf16 %v3694_v54  ;;  %v3695_v47 = vunpack.i.l.bf16 %v3694_v54  ;;  %3415 = vmatprep.subr.mxu0 %v2542_v59 }
 0x1bf   : > { %3998 = vrot.lane.b32.xlu1 %v3997_v41, %s4070_s20  ;;  %v1866_v5 = vsel %vm1757_vm3, %v1834_v57, %v3705_v45  ;;  %v1769_v63 = vsel %vm1757_vm3, %v1736_v1, %v3706_v39  ;;  %v681_v45 = vld [vmem:[#allocation2 + $0x98] sm:$0xff]  ;;  %3416 = vmatpush3.msra.mxu0 %v2542_v59  ;;  %s3014_s20 = sshll.u32 %s5320_s18, 4  ;;  %s5419_s20 = int_to_ptr.vmem [resolvable:$true] %s3014_s20 }
 0x1c0   : > { %v3709_v23 = vpop.permute.xlu0 %3708  ;;  %v1865_v55 = vsel %vm1757_vm3, %v1833_v56, %v3695_v47  ;;  %v1768_v14 = vsel %vm1757_vm3, %v1735_v58, %v3696_v29  ;;  %v1898_v50 = vsel %vm1790_vm4, %v1866_v5, %v3685_v0  ;;  %v1802_v36 = vsel %vm1790_vm4, %v1769_v63, %v3686_v21  ;;  %v2540_v29 = vld [vmem:[%s5468_s3] sm:$0xff]  ;;  %3417 = vmatprep.subr.mxu0 %v2541_v53  ;;  %v811_v5 = vld [vmem:[#allocation2 + $0xc9] sm:$0xff]  ;;  %s4006_s28 = scalar_lea.vmem %s5419_s20, 4096  ;;  %p4013_p0 = scmp.lt.s32.totalorder %s5419_s20, %s4011_s9 }
 0x1c1   : > { %v5048_v48 = vpop.permute.xlu1 %3713  ;;  %v1897_v4 = vsel %vm1790_vm4, %v1865_v55, %v3700_v44  ;;  %v1801_v6 = vsel %vm1790_vm4, %v1768_v14, %v3701_v43  ;;  %v3710_v26 = vunpack.i.l.bf16 %v3709_v23  ;;  %v3711_v52 = vunpack.i.h.bf16 %v3709_v23  ;;  %3418 = vmatpush3.msra.mxu0 %v2541_v53  ;;  %v810_v14 = vld [vmem:[#allocation2 + $0xc1] sm:$0xff]  ;;  %p4007_p11 = scmp.ne.s32.totalorder %s5419_s20, %s4006_s28  ;;  %p4014_p1 = scmp.lt.s32.totalorder %s4012_s13, %s4006_s28 }
 0x1c2   : > { %3993 = vrot.lane.b32.xlu0 %v3992_v25, %s4071_s21  ;;  %2172 = vmatprep.mubr.f32.mxu1 %v1897_v4  ;;  %v3715_v28 = vunpack.i.l.bf16 %v5048_v48  ;;  %v1738_v54 = vsel %vm589_vm0, %v681_v45, %v3691_v20  ;;  %v3716_v47 = vunpack.i.h.bf16 %v5048_v48  ;;  %v683_v20 = vld [vmem:[#allocation2 + $0xb0] sm:$0xff] }
 0x1c3   : > { %2173 = vmatmul.mubr.f32.gmra.mxu1 %v1801_v6  ;;  %v1835_v19 = vsel %vm589_vm0, %v808_v24, %v3710_v26  ;;  %v1737_v62 = vsel %vm589_vm0, %v680_v18, %v3711_v52  ;;  %3419 = vmatprep.subr.mxu0 %v2540_v29  ;;  %v682_v6 = vld [vmem:[#allocation2 + $0xa8] sm:$0xff]  ;;  %p4008_p12 = pnand %p4007_p11, %p4153_p5  ;;  %p4015_p2 = por %p4014_p1, %p4013_p0 }
 0x1c4   : > { %v3729_v7 = vpop.permute.xlu0 %3728  ;;  %2177 = vmatprep.mubr.f32.mxu1 %v1898_v50  ;;  %3420 = vmatpush3.msra.mxu0 %v2540_v29 }
 0x1c5   : > { %v5057_v11 = vpop.permute.xlu1 %3718  ;;  %v3731_v9 = vunpack.i.h.bf16 %v3729_v7  ;;  %v3730_v30 = vunpack.i.l.bf16 %v3729_v7  ;;  %p4009_p13 = pneg %p4008_p12 }
 0x1c6   : > { %v3720_v38 = vunpack.i.l.bf16 %v5057_v11  ;;  %v3721_v58 = vunpack.i.h.bf16 %v5057_v11 }
 0x1c7   : > { %2178 = vmatmul.mubr.f32.gmra.mxu1 %v1802_v36  ;;  %p4016_p3 = pnand %p4015_p2, %p4009_p13 }
 0x1c8   : > { %v3734_v16 = vpop.permute.xlu0 %3733  ;;  %v1838_v10 = vsel %vm589_vm0, %v811_v5, %v3720_v38 }
 0x1c9   : > { %v3735_v61 = vunpack.i.l.bf16 %v3734_v16  ;;  %v3724_v60 = vpop.permute.xlu1 %3723  ;;  %v3736_v13 = vunpack.i.h.bf16 %v3734_v16 }
 0x1ca   : > { %v3726_v3 = vunpack.i.h.bf16 %v3724_v60  ;;  %v3725_v31 = vunpack.i.l.bf16 %v3724_v60  ;;  %v1740_v60 = vsel %vm589_vm0, %v683_v20, %v3721_v58 }
 0x1cb   : > { %v1868_v42 = vsel %vm1757_vm3, %v1836_v32, %v3735_v61  ;;  %v1771_v51 = vsel %vm1757_vm3, %v1738_v54, %v3736_v13 }
 0x1cc   : > { %v3739_v12 = vpop.permute.xlu0 %3738  ;;  %v1867_v35 = vsel %vm1757_vm3, %v1835_v19, %v3725_v31  ;;  %v1770_v40 = vsel %vm1757_vm3, %v1737_v62, %v3726_v3  ;;  %v1900_v25 = vsel %vm1790_vm4, %v1868_v42, %v3715_v28  ;;  %v1804_v43 = vsel %vm1790_vm4, %v1771_v51, %v3716_v47 }
 0x1cd   : > { %v5072_v46 = vpop.permute.xlu1 %3743  ;;  %v1899_v33 = vsel %vm1790_vm4, %v1867_v35, %v3730_v30  ;;  %v1803_v27 = vsel %vm1790_vm4, %v1770_v40, %v3731_v9  ;;  %v3740_v57 = vunpack.i.l.bf16 %v3739_v12  ;;  %v3741_v44 = vunpack.i.h.bf16 %v3739_v12  ;;  %v812_v35 = vld [vmem:[#allocation2 + $0xd9] sm:$0xff]  ;;  %v813_v40 = vld [vmem:[#allocation2 + $0xe1] sm:$0xff] }
 0x1ce   : > { %2182 = vmatprep.mubr.f32.mxu1 %v1899_v33  ;;  %v3745_v36 = vunpack.i.l.bf16 %v5072_v46  ;;  %v3746_v31 = vunpack.i.h.bf16 %v5072_v46  ;;  %v684_v33 = vld [vmem:[#allocation2 + $0xc0] sm:$0xff] }
 0x1cf   : > { %2183 = vmatmul.mubr.f32.gmra.mxu1 %v1803_v27  ;;  %v1837_v4 = vsel %vm589_vm0, %v810_v14, %v3740_v57  ;;  %v1739_v21 = vsel %vm589_vm0, %v682_v6, %v3741_v44 }
 0x1d0   : > { %v3759_v41 = vpop.permute.xlu0 %3758  ;;  %2187 = vmatprep.mubr.f32.mxu1 %v1900_v25 }
 0x1d1   : > { %v5089_v56 = vpop.permute.xlu1 %3748  ;;  %v3761_v1 = vunpack.i.h.bf16 %v3759_v41  ;;  %v3760_v7 = vunpack.i.l.bf16 %v3759_v41 }
 0x1d2   : > { %v3750_v18 = vunpack.i.l.bf16 %v5089_v56  ;;  %v3751_v62 = vunpack.i.h.bf16 %v5089_v56 }
 0x1d3   : > { %2188 = vmatmul.mubr.f32.gmra.mxu1 %v1804_v43  ;;  %v685_v43 = vld [vmem:[#allocation2 + $0xc8] sm:$0xff] }
 0x1d4   : > { %v3764_v39 = vpop.permute.xlu0 %3763  ;;  %v1840_v27 = vsel %vm589_vm0, %v813_v40, %v3750_v18  ;;  %v1742_v44 = vsel %vm589_vm0, %v685_v43, %v3751_v62 }
 0x1d5   : > { %v3765_v23 = vunpack.i.l.bf16 %v3764_v39  ;;  %v3754_v55 = vpop.permute.xlu1 %3753  ;;  %v3766_v50 = vunpack.i.h.bf16 %v3764_v39 }
 0x1d6   : > { %v3756_v0 = vunpack.i.h.bf16 %v3754_v55  ;;  %v3755_v48 = vunpack.i.l.bf16 %v3754_v55 }
 0x1d7   : > { %v1870_v26 = vsel %vm1757_vm3, %v1838_v10, %v3765_v23  ;;  %v1773_v3 = vsel %vm1757_vm3, %v1740_v60, %v3766_v50  ;;  %v814_v50 = vld [vmem:[#allocation2 + $0xf1] sm:$0xff] }
 0x1d8   : > { %v3769_v63 = vpop.permute.xlu0 %3768  ;;  %v1869_v2 = vsel %vm1757_vm3, %v1837_v4, %v3755_v48  ;;  %v1772_v11 = vsel %vm1757_vm3, %v1739_v21, %v3756_v0  ;;  %v1902_v15 = vsel %vm1790_vm4, %v1870_v26, %v3745_v36  ;;  %v1806_v9 = vsel %vm1790_vm4, %v1773_v3, %v3746_v31  ;;  %v686_v26 = vld [vmem:[#allocation2 + $0xd8] sm:$0xff] }
 0x1d9   : > { %v3774_v52 = vpop.permute.xlu1 %3773  ;;  %v1901_v16 = vsel %vm1790_vm4, %v1869_v2, %v3760_v7  ;;  %v1805_v61 = vsel %vm1790_vm4, %v1772_v11, %v3761_v1  ;;  %v3770_v32 = vunpack.i.l.bf16 %v3769_v63  ;;  %v3771_v30 = vunpack.i.h.bf16 %v3769_v63  ;;  %v815_v63 = vld [vmem:[#allocation2 + $0xf9] sm:$0xff] }
 0x1da   : > { %2192 = vmatprep.mubr.f32.mxu1 %v1901_v16  ;;  %v3775_v47 = vunpack.i.l.bf16 %v3774_v52  ;;  %v3776_v55 = vunpack.i.h.bf16 %v3774_v52 }
 0x1db   : > { %2193 = vmatmul.mubr.f32.gmra.mxu1 %v1805_v61  ;;  %v1839_v46 = vsel %vm589_vm0, %v812_v35, %v3770_v32  ;;  %v1741_v25 = vsel %vm589_vm0, %v684_v33, %v3771_v30 }
 0x1dc   : > { %v3789_v24 = vpop.permute.xlu0 %3788  ;;  %2197 = vmatprep.mubr.f32.mxu1 %v1902_v15 }
 0x1dd   : > { %v5107_v19 = vpop.permute.xlu1 %3778  ;;  %v3791_v45 = vunpack.i.h.bf16 %v3789_v24  ;;  %v3790_v59 = vunpack.i.l.bf16 %v3789_v24 }
 0x1de   : > { %v3780_v5 = vunpack.i.l.bf16 %v5107_v19  ;;  %v3781_v1 = vunpack.i.h.bf16 %v5107_v19 }
 0x1df   : > { %2198 = vmatmul.mubr.f32.gmra.mxu1 %v1806_v9  ;;  %v687_v9 = vld [vmem:[#allocation2 + $0xe0] sm:$0xff] }
 0x1e0   : > { %v3794_v13 = vpop.permute.xlu0 %3793  ;;  %v1842_v36 = vsel %vm589_vm0, %v815_v63, %v3780_v5  ;;  %v1744_v30 = vsel %vm589_vm0, %v687_v9, %v3781_v1 }
 0x1e1   : > { %v3795_v12 = vunpack.i.l.bf16 %v3794_v13  ;;  %v3784_v8 = vpop.permute.xlu1 %3783  ;;  %v3796_v54 = vunpack.i.h.bf16 %v3794_v13 }
 0x1e2   : > { %v3786_v42 = vunpack.i.h.bf16 %v3784_v8  ;;  %v3785_v28 = vunpack.i.l.bf16 %v3784_v8 }
 0x1e3   : > { %v1872_v29 = vsel %vm1757_vm3, %v1840_v27, %v3795_v12  ;;  %v1775_v58 = vsel %vm1757_vm3, %v1742_v44, %v3796_v54  ;;  %v816_v54 = vld [vmem:[#allocation2 + $0x109] sm:$0xff] }
 0x1e4   : > { %v3799_v41 = vpop.permute.xlu0 %3798  ;;  %v1871_v51 = vsel %vm1757_vm3, %v1839_v46, %v3785_v28  ;;  %v1774_v53 = vsel %vm1757_vm3, %v1741_v25, %v3786_v42  ;;  %v1904_v23 = vsel %vm1790_vm4, %v1872_v29, %v3775_v47  ;;  %v1808_v48 = vsel %vm1790_vm4, %v1775_v58, %v3776_v55  ;;  %v688_v29 = vld [vmem:[#allocation2 + $0xf0] sm:$0xff] }
 0x1e5   : > { %v3804_v56 = vpop.permute.xlu1 %3803  ;;  %v1903_v38 = vsel %vm1790_vm4, %v1871_v51, %v3790_v59  ;;  %v1807_v57 = vsel %vm1790_vm4, %v1774_v53, %v3791_v45  ;;  %v3800_v0 = vunpack.i.l.bf16 %v3799_v41  ;;  %v3801_v4 = vunpack.i.h.bf16 %v3799_v41  ;;  %v817_v41 = vld [vmem:[#allocation2 + $0x111] sm:$0xff] }
 0x1e6   : > { %2202 = vmatprep.mubr.f32.mxu1 %v1903_v38  ;;  %v3805_v31 = vunpack.i.l.bf16 %v3804_v56  ;;  %v3806_v8 = vunpack.i.h.bf16 %v3804_v56 }
 0x1e7   : > { %2203 = vmatmul.mubr.f32.gmra.mxu1 %v1807_v57  ;;  %v1841_v11 = vsel %vm589_vm0, %v814_v50, %v3800_v0  ;;  %v1743_v60 = vsel %vm589_vm0, %v686_v26, %v3801_v4 }
 0x1e8   : > { %v3819_v39 = vpop.permute.xlu0 %3818  ;;  %2207 = vmatprep.mubr.f32.mxu1 %v1904_v23 }
 0x1e9   : > { %v5123_v14 = vpop.permute.xlu1 %3808  ;;  %v3821_v52 = vunpack.i.h.bf16 %v3819_v39  ;;  %v3820_v16 = vunpack.i.l.bf16 %v3819_v39 }
 0x1ea   : > { %v3810_v40 = vunpack.i.l.bf16 %v5123_v14  ;;  %v3811_v45 = vunpack.i.h.bf16 %v5123_v14 }
 0x1eb   : > { %2208 = vmatmul.mubr.f32.gmra.mxu1 %v1808_v48  ;;  %v689_v48 = vld [vmem:[#allocation2 + $0xf8] sm:$0xff] }
 0x1ec   : > { %v3824_v6 = vpop.permute.xlu0 %3823  ;;  %v1844_v47 = vsel %vm589_vm0, %v817_v41, %v3810_v40  ;;  %v1746_v4 = vsel %vm589_vm0, %v689_v48, %v3811_v45 }
 0x1ed   : > { %v3825_v10 = vunpack.i.l.bf16 %v3824_v6  ;;  %v3814_v7 = vpop.permute.xlu1 %3813  ;;  %v3826_v61 = vunpack.i.h.bf16 %v3824_v6 }
 0x1ee   : > { %v3816_v21 = vunpack.i.h.bf16 %v3814_v7  ;;  %v3815_v2 = vunpack.i.l.bf16 %v3814_v7 }
 0x1ef   : > { %v1874_v3 = vsel %vm1757_vm3, %v1842_v36, %v3825_v10  ;;  %v1777_v62 = vsel %vm1757_vm3, %v1744_v30, %v3826_v61  ;;  %v818_v61 = vld [vmem:[#allocation2 + $0x121] sm:$0xff] }
 0x1f0   : > { %v3829_v20 = vpop.permute.xlu0 %3828  ;;  %v1873_v24 = vsel %vm1757_vm3, %v1841_v11, %v3815_v2  ;;  %v1776_v15 = vsel %vm1757_vm3, %v1743_v60, %v3816_v21  ;;  %v1906_v12 = vsel %vm1790_vm4, %v1874_v3, %v3805_v31  ;;  %v1810_v28 = vsel %vm1790_vm4, %v1777_v62, %v3806_v8  ;;  %v690_v3 = vld [vmem:[#allocation2 + $0x108] sm:$0xff] }
 0x1f1   : > { %v3834_v19 = vpop.permute.xlu1 %3833  ;;  %v1905_v18 = vsel %vm1790_vm4, %v1873_v24, %v3820_v16  ;;  %v1809_v32 = vsel %vm1790_vm4, %v1776_v15, %v3821_v52  ;;  %v3830_v42 = vunpack.i.l.bf16 %v3829_v20  ;;  %v3831_v46 = vunpack.i.h.bf16 %v3829_v20  ;;  %v819_v20 = vld [vmem:[#allocation2 + $0x129] sm:$0xff] }
 0x1f2   : > { %2212 = vmatprep.mubr.f32.mxu1 %v1905_v18  ;;  %v3835_v55 = vunpack.i.l.bf16 %v3834_v19  ;;  %v3836_v7 = vunpack.i.h.bf16 %v3834_v19 }
 0x1f3   : > { %2213 = vmatmul.mubr.f32.gmra.mxu1 %v1809_v32  ;;  %v1843_v53 = vsel %vm589_vm0, %v816_v54, %v3830_v42  ;;  %v1745_v44 = vsel %vm589_vm0, %v688_v29, %v3831_v46 }
 0x1f4   : > { %v3849_v13 = vpop.permute.xlu0 %3848  ;;  %2217 = vmatprep.mubr.f32.mxu1 %v1906_v12 }
 0x1f5   : > { %v5139_v35 = vpop.permute.xlu1 %3838  ;;  %v3851_v56 = vunpack.i.h.bf16 %v3849_v13  ;;  %v3850_v38 = vunpack.i.l.bf16 %v3849_v13 }
 0x1f6   : > { %v3840_v63 = vunpack.i.l.bf16 %v5139_v35  ;;  %v3841_v52 = vunpack.i.h.bf16 %v5139_v35 }
 0x1f7   : > { %2218 = vmatmul.mubr.f32.gmra.mxu1 %v1810_v28  ;;  %v691_v28 = vld [vmem:[#allocation2 + $0x110] sm:$0xff] }
 0x1f8   : > { %v3854_v33 = vpop.permute.xlu0 %3853  ;;  %v1846_v31 = vsel %vm589_vm0, %v819_v20, %v3840_v63  ;;  %v1748_v46 = vsel %vm589_vm0, %v691_v28, %v3841_v52 }
 0x1f9   : > { %v3855_v27 = vunpack.i.l.bf16 %v3854_v33  ;;  %v3844_v59 = vpop.permute.xlu1 %3843  ;;  %v3856_v57 = vunpack.i.h.bf16 %v3854_v33 }
 0x1fa   : > { %v3846_v25 = vunpack.i.h.bf16 %v3844_v59  ;;  %v3845_v51 = vunpack.i.l.bf16 %v3844_v59 }
 0x1fb   : > { %v1876_v58 = vsel %vm1757_vm3, %v1844_v47, %v3855_v27  ;;  %v1779_v1 = vsel %vm1757_vm3, %v1746_v4, %v3856_v57  ;;  %v820_v57 = vld [vmem:[#allocation2 + $0x139] sm:$0xff] }
 0x1fc   : > { %v3859_v43 = vpop.permute.xlu0 %3858  ;;  %v1875_v39 = vsel %vm1757_vm3, %v1843_v53, %v3845_v51  ;;  %v1778_v23 = vsel %vm1757_vm3, %v1745_v44, %v3846_v25  ;;  %v1908_v10 = vsel %vm1790_vm4, %v1876_v58, %v3835_v55  ;;  %v1812_v2 = vsel %vm1790_vm4, %v1779_v1, %v3836_v7  ;;  %v692_v58 = vld [vmem:[#allocation2 + $0x120] sm:$0xff] }
 0x1fd   : > { %v3864_v14 = vpop.permute.xlu1 %3863  ;;  %v1907_v5 = vsel %vm1790_vm4, %v1875_v39, %v3850_v38  ;;  %v1811_v0 = vsel %vm1790_vm4, %v1778_v23, %v3851_v56  ;;  %v3860_v21 = vunpack.i.l.bf16 %v3859_v43  ;;  %v3861_v11 = vunpack.i.h.bf16 %v3859_v43  ;;  %v821_v43 = vld [vmem:[#allocation2 + $0x141] sm:$0xff] }
 0x1fe   : > { %2222 = vmatprep.mubr.f32.mxu1 %v1907_v5  ;;  %v3865_v8 = vunpack.i.l.bf16 %v3864_v14  ;;  %v3866_v59 = vunpack.i.h.bf16 %v3864_v14 }
 0x1ff   : > { %2223 = vmatmul.mubr.f32.gmra.mxu1 %v1811_v0  ;;  %v1845_v15 = vsel %vm589_vm0, %v818_v61, %v3860_v21  ;;  %v1747_v30 = vsel %vm589_vm0, %v690_v3, %v3861_v11  ;;  %v823_v3 = vld [vmem:[#allocation2 + $0x159] sm:$0xff] }
 0x200   : > { %v3879_v6 = vpop.permute.xlu0 %3878  ;;  %2227 = vmatprep.mubr.f32.mxu1 %v1908_v10 }
 0x201   : > { %v5155_v50 = vpop.permute.xlu1 %3868  ;;  %v3881_v19 = vunpack.i.h.bf16 %v3879_v6  ;;  %v3880_v18 = vunpack.i.l.bf16 %v3879_v6 }
 0x202   : > { %v3870_v41 = vunpack.i.l.bf16 %v5155_v50  ;;  %v3871_v56 = vunpack.i.h.bf16 %v5155_v50 }
 0x203   : > { %2228 = vmatmul.mubr.f32.gmra.mxu1 %v1812_v2  ;;  %v693_v2 = vld [vmem:[#allocation2 + $0x128] sm:$0xff] }
 0x204   : > { %v3884_v26 = vpop.permute.xlu0 %3883  ;;  %v1848_v55 = vsel %vm589_vm0, %v821_v43, %v3870_v41 }
 0x205   : > { %v3885_v36 = vunpack.i.l.bf16 %v3884_v26  ;;  %v3874_v16 = vpop.permute.xlu1 %3873  ;;  %v3886_v32 = vunpack.i.h.bf16 %v3884_v26  ;;  %v1750_v26 = vsel %vm589_vm0, %v693_v2, %v3871_v56  ;;  %v825_v2 = vld [vmem:[#allocation2 + $0x171] sm:$0xff] }
 0x206   : > { %v3876_v60 = vunpack.i.h.bf16 %v3874_v16  ;;  %v3875_v24 = vunpack.i.l.bf16 %v3874_v16 }
 0x207   : > { %v1878_v62 = vsel %vm1757_vm3, %v1846_v31, %v3885_v36  ;;  %v1781_v45 = vsel %vm1757_vm3, %v1748_v46, %v3886_v32  ;;  %v822_v32 = vld [vmem:[#allocation2 + $0x151] sm:$0xff] }
 0x208   : > { %v3889_v9 = vpop.permute.xlu0 %3888  ;;  %v1877_v13 = vsel %vm1757_vm3, %v1845_v15, %v3875_v24  ;;  %v1780_v12 = vsel %vm1757_vm3, %v1747_v30, %v3876_v60  ;;  %v1910_v27 = vsel %vm1790_vm4, %v1878_v62, %v3865_v8  ;;  %v1814_v51 = vsel %vm1790_vm4, %v1781_v45, %v3866_v59 }
 0x209   : > { %v3894_v35 = vpop.permute.xlu1 %3893  ;;  %v1909_v40 = vsel %vm1790_vm4, %v1877_v13, %v3880_v18  ;;  %v1813_v42 = vsel %vm1790_vm4, %v1780_v12, %v3881_v19  ;;  %v3890_v25 = vunpack.i.l.bf16 %v3889_v9  ;;  %v3891_v53 = vunpack.i.h.bf16 %v3889_v9  ;;  %v694_v9 = vld [vmem:[#allocation2 + $0x138] sm:$0xff] }
 0x20a   : > { %2232 = vmatprep.mubr.f32.mxu1 %v1909_v40  ;;  %v3895_v7 = vunpack.i.l.bf16 %v3894_v35  ;;  %v3896_v60 = vunpack.i.h.bf16 %v3894_v35 }
 0x20b   : > { %2233 = vmatmul.mubr.f32.gmra.mxu1 %v1813_v42  ;;  %v1847_v23 = vsel %vm589_vm0, %v820_v57, %v3890_v25  ;;  %v1749_v4 = vsel %vm589_vm0, %v692_v58, %v3891_v53 }
 0x20c   : > { %v3909_v33 = vpop.permute.xlu0 %3908  ;;  %2237 = vmatprep.mubr.f32.mxu1 %v1910_v27 }
 0x20d   : > { %v5171_v54 = vpop.permute.xlu1 %3898  ;;  %v3911_v14 = vunpack.i.h.bf16 %v3909_v33  ;;  %v3910_v5 = vunpack.i.l.bf16 %v3909_v33  ;;  %v695_v33 = vld [vmem:[#allocation2 + $0x140] sm:$0xff] }
 0x20e   : > { %v3900_v11 = vunpack.i.l.bf16 %v5171_v54  ;;  %v3901_v24 = vunpack.i.h.bf16 %v5171_v54 }
 0x20f   : > { %2238 = vmatmul.mubr.f32.gmra.mxu1 %v1814_v51 }
 0x210   : > { %v3914_v29 = vpop.permute.xlu0 %3913  ;;  %v1850_v30 = vsel %vm589_vm0, %v823_v3, %v3900_v11  ;;  %v1752_v41 = vsel %vm589_vm0, %v695_v33, %v3901_v24  ;;  %v697_v11 = vld [vmem:[#allocation2 + $0x158] sm:$0xff] }
 0x211   : > { %v3915_v47 = vunpack.i.l.bf16 %v3914_v29  ;;  %v3904_v38 = vpop.permute.xlu1 %3903  ;;  %v3916_v0 = vunpack.i.h.bf16 %v3914_v29 }
 0x212   : > { %v3906_v44 = vunpack.i.h.bf16 %v3904_v38  ;;  %v3905_v39 = vunpack.i.l.bf16 %v3904_v38 }
 0x213   : > { %v1880_v1 = vsel %vm1757_vm3, %v1848_v55, %v3915_v47  ;;  %v1783_v20 = vsel %vm1757_vm3, %v1750_v26, %v3916_v0 }
 0x214   : > { %v3919_v48 = vpop.permute.xlu0 %3918  ;;  %v1879_v6 = vsel %vm1757_vm3, %v1847_v23, %v3905_v39  ;;  %v1782_v10 = vsel %vm1757_vm3, %v1749_v4, %v3906_v44  ;;  %v1912_v61 = vsel %vm1790_vm4, %v1880_v1, %v3895_v7  ;;  %v1816_v18 = vsel %vm1790_vm4, %v1783_v20, %v3896_v60  ;;  %v696_v44 = vld [vmem:[#allocation2 + $0x150] sm:$0xff] }
 0x215   : > { %v3924_v50 = vpop.permute.xlu1 %3923  ;;  %v1911_v63 = vsel %vm1790_vm4, %v1879_v6, %v3910_v5  ;;  %v1815_v21 = vsel %vm1790_vm4, %v1782_v10, %v3911_v14  ;;  %v3921_v36 = vunpack.i.h.bf16 %v3919_v48  ;;  %v3920_v52 = vunpack.i.l.bf16 %v3919_v48 }
 0x216   : > { %2242 = vmatprep.mubr.f32.mxu1 %v1911_v63  ;;  %v3925_v27 = vunpack.i.l.bf16 %v3924_v50  ;;  %v3926_v53 = vunpack.i.h.bf16 %v3924_v50 }
 0x217   : > { %2243 = vmatmul.mubr.f32.gmra.mxu1 %v1815_v21  ;;  %v1849_v8 = vsel %vm589_vm0, %v822_v32, %v3920_v52  ;;  %v1751_v35 = vsel %vm589_vm0, %v694_v9, %v3921_v36  ;;  %v698_v32 = vld [vmem:[#allocation2 + $0x168] sm:$0xff] }
 0x218   : > { %v3939_v16 = vpop.permute.xlu0 %3938  ;;  %2247 = vmatprep.mubr.f32.mxu1 %v1912_v61 }
 0x219   : > { %v3929_v15 = vpop.permute.xlu1 %3928  ;;  %v3941_v13 = vunpack.i.h.bf16 %v3939_v16  ;;  %v3940_v12 = vunpack.i.l.bf16 %v3939_v16 }
 0x21a   : > { %v3931_v31 = vunpack.i.h.bf16 %v3929_v15  ;;  %v3930_v19 = vunpack.i.l.bf16 %v3929_v15 }
 0x21b   : > { %2248 = vmatmul.mubr.f32.gmra.mxu1 %v1816_v18 }
 0x21c   : > { %v3944_v62 = vpop.permute.xlu0 %3943  ;;  %v1881_v28 = vsel %vm1757_vm3, %v1849_v8, %v3930_v19  ;;  %v1784_v46 = vsel %vm1757_vm3, %v1751_v35, %v3931_v31 }
 0x21d   : > { %v3946_v40 = vunpack.i.h.bf16 %v3944_v62  ;;  %v3945_v42 = vunpack.i.l.bf16 %v3944_v62  ;;  %v3934_v45 = vpop.permute.xlu1 %3933  ;;  %v1913_v59 = vsel %vm1790_vm4, %v1881_v28, %v3940_v12  ;;  %v1817_v54 = vsel %vm1790_vm4, %v1784_v46, %v3941_v13 }
 0x21e   : > { %2252 = vmatprep.mubr.f32.mxu1 %v1913_v59  ;;  %v3936_v6 = vunpack.i.h.bf16 %v3934_v45  ;;  %v3935_v10 = vunpack.i.l.bf16 %v3934_v45 }
 0x21f   : > { %v1882_v25 = vsel %vm1757_vm3, %v1850_v30, %v3945_v42  ;;  %v1785_v51 = vsel %vm1757_vm3, %v1752_v41, %v3946_v40  ;;  %2253 = vmatmul.mubr.f32.gmra.mxu1 %v1817_v54  ;;  %v699_v41 = vld [vmem:[#allocation2 + $0x170] sm:$0xff] }
 0x220   : > { %v3949_v29 = vpop.permute.xlu0 %3948  ;;  %v1914_v47 = vsel %vm1790_vm4, %v1882_v25, %v3925_v27  ;;  %v1818_v43 = vsel %vm1790_vm4, %v1785_v51, %v3926_v53  ;;  %v1852_v16 = vsel %vm589_vm0, %v825_v2, %v3935_v10  ;;  %v1754_v61 = vsel %vm589_vm0, %v697_v11, %v3936_v6 }
 0x221   : > { %v3951_v56 = vunpack.i.h.bf16 %v3949_v29  ;;  %v3950_v38 = vunpack.i.l.bf16 %v3949_v29  ;;  %2257 = vmatprep.mubr.f32.mxu1 %v1914_v47  ;;  %v3954_v57 = vpop.permute.xlu1 %3953 }
 0x222   : > { %v3956_v39 = vunpack.i.h.bf16 %v3954_v57  ;;  %v3955_v23 = vunpack.i.l.bf16 %v3954_v57 }
 0x223   : > { %v1851_v58 = vsel %vm589_vm0, %v4932_v34, %v3950_v38  ;;  %v1753_v55 = vsel %vm589_vm0, %v696_v44, %v3951_v56  ;;  %2258 = vmatmul.mubr.f32.gmra.mxu1 %v1818_v43  ;;  %v949_v43 = vld [vmem:[#allocation2 + $0x152] sm:$0xff]  ;;  %v950_v44 = vld [vmem:[#allocation2 + $0x15a] sm:$0xff] }
 0x224   : > { %v3974_v14 = vpop.permute.xlu0 %3973  ;;  %v1883_v48 = vsel %vm1757_vm3, %v1851_v58, %v3955_v23  ;;  %v1786_v4 = vsel %vm1757_vm3, %v1753_v55, %v3956_v39  ;;  %v951_v39 = vld [vmem:[#allocation2 + $0x16a] sm:$0xff]  ;;  %v955_v23 = vld [vmem:[#allocation2 + $0x19a] sm:$0xff]  ;;  %v3367_v58 = vpop.f32.mrf.mxu0 }
 0x225   : > { %v3976_v5 = vunpack.i.h.bf16 %v3974_v14  ;;  %v3975_v0 = vunpack.i.l.bf16 %v3974_v14  ;;  %v3959_v1 = vpop.permute.xlu1 %3958  ;;  %v5238_v55 = vld [vmem:[%s5470_s5] ss:$0 sm:$0xff] }
 0x226   : > { %v3961_v26 = vunpack.i.h.bf16 %v3959_v1  ;;  %v3960_v36 = vunpack.i.l.bf16 %v3959_v1 }
 0x227   : > { %v1915_v7 = vsel %vm1790_vm4, %v1883_v48, %v3975_v0  ;;  %v1819_v50 = vsel %vm1790_vm4, %v1786_v4, %v3976_v5  ;;  %v956_v5 = vld [vmem:[#allocation2 + $0x1a2] sm:$0xff]  ;;  %v2349_v48 = vpop.f32.mrf.mxu0 }
 0x228   : > { %v3979_v63 = vpop.permute.xlu0 %3978  ;;  %2262 = vmatprep.mubr.f32.mxu1 %v1915_v7 }
 0x229   : > { %v3981_v34 = vunpack.i.h.bf16 %v3979_v63  ;;  %v3980_v21 = vunpack.i.l.bf16 %v3979_v63  ;;  %2263 = vmatmul.mubr.f32.gmra.mxu1 %v1819_v50  ;;  %v3964_v52 = vpop.permute.xlu1 %3963  ;;  %v3370_v63 = vpop.f32.mrf.mxu0 }
 0x22a   : > { %v3966_v13 = vunpack.i.h.bf16 %v3964_v52  ;;  %v3965_v12 = vunpack.i.l.bf16 %v3964_v52 }
 0x22b   : > { %v1884_v20 = vsel %vm1757_vm3, %v1852_v16, %v3980_v21  ;;  %v1787_v60 = vsel %vm1757_vm3, %v1754_v61, %v3981_v34  ;;  %v2359_v2 = vpop.f32.mrf.mxu0 }
 0x22c   : > { %v3984_v24 = vpop.permute.xlu0 %3983  ;;  %v1916_v15 = vsel %vm1790_vm4, %v1884_v20, %v3960_v36  ;;  %v1820_v3 = vsel %vm1790_vm4, %v1787_v60, %v3961_v26 }
 0x22d   : > { %v3986_v31 = vunpack.i.h.bf16 %v3984_v24  ;;  %v3985_v19 = vunpack.i.l.bf16 %v3984_v24  ;;  %2267 = vmatprep.mubr.f32.mxu1 %v1916_v15  ;;  %v3969_v18 = vpop.permute.xlu1 %3968  ;;  %v3373_v24 = vpop.f32.mrf.mxu0 }
 0x22e   : > { %2268 = vmatmul.mubr.f32.gmra.mxu1 %v1820_v3  ;;  %v3971_v40 = vunpack.i.h.bf16 %v3969_v18  ;;  %v3970_v42 = vunpack.i.l.bf16 %v3969_v18 }
 0x22f   : > { %v1853_v9 = vsel %vm589_vm0, %v4980_v22, %v3985_v19  ;;  %v1755_v30 = vsel %vm589_vm0, %v698_v32, %v3986_v31  ;;  %v2369_v31 = vpop.f32.mrf.mxu0 }
 0x230   : > { %v3989_v62 = vpop.permute.xlu0 %3988  ;;  %v1885_v28 = vsel %vm1757_vm3, %v1853_v9, %v3965_v12  ;;  %v1788_v46 = vsel %vm1757_vm3, %v1755_v30, %v3966_v13  ;;  %v1854_v53 = vsel %vm589_vm0, %v4989_v49, %v3970_v42  ;;  %v1756_v29 = vsel %vm589_vm0, %v699_v41, %v3971_v40  ;;  %v952_v49 = vld [vmem:[#allocation2 + $0x172] sm:$0xff] }
 0x231   : > { %v3991_v8 = vunpack.i.h.bf16 %v3989_v62  ;;  %v3990_v35 = vunpack.i.l.bf16 %v3989_v62  ;;  %v3999_v33 = vpop.permute.xlu1 %3998 }
 0x232   : > { %v4001_v25 = vunpack.i.h.bf16 %v3999_v33  ;;  %v4000_v51 = vunpack.i.l.bf16 %v3999_v33 }
 0x233   : > { %v1917_v27 = vsel %vm1790_vm4, %v1885_v28, %v3990_v35  ;;  %v1821_v45 = vsel %vm1790_vm4, %v1788_v46, %v3991_v8  ;;  %v3376_v8 = vpop.f32.mrf.mxu0 }
 0x234   : > { %v3994_v59 = vpop.permute.xlu0 %3993  ;;  %2272 = vmatprep.mubr.f32.mxu1 %v1917_v27 }
 0x235   : > { %v3996_v22 = vunpack.i.h.bf16 %v3994_v59  ;;  %v3995_v54 = vunpack.i.l.bf16 %v3994_v59  ;;  %2273 = vmatmul.mubr.f32.gmra.mxu1 %v1821_v45  ;;  %v2379_v42 = vpop.f32.mrf.mxu0 }
 0x237   : > { %v1886_v47 = vsel %vm1757_vm3, %v1854_v53, %v3995_v54  ;;  %v1789_v56 = vsel %vm1757_vm3, %v1756_v29, %v3996_v22  ;;  %v3379_v41 = vpop.f32.mrf.mxu0 }
 0x238   : > { %v1918_v38 = vsel %vm1790_vm4, %v1886_v47, %v4000_v51  ;;  %v1822_v57 = vsel %vm1790_vm4, %v1789_v56, %v4001_v25 }
 0x239   : > { %2277 = vmatprep.mubr.f32.mxu1 %v1918_v38  ;;  %v2389_v53 = vpop.f32.mrf.mxu0 }
 0x23a   : > { %2278 = vmatmul.mubr.f32.gmra.mxu1 %v1822_v57 }
 0x23b   : > { %3401 = vmatprep.mubr.msk.f32.mxu1 %vm589_vm0, %v949_v43 }
 0x23e   : > { %3402 = vmatmul.mubr.msk.f32.vlgmr.msra.gmra.mxu1 %vm589_vm0, %v950_v44 }
 0x23f   : > { %3404 = vmatprep.mubr.msk.f32.mxu1 %vm589_vm0, %v951_v39 }
 0x242   : > { %3405 = vmatmul.mubr.msk.f32.gmra.mxu1 %vm589_vm0, %v952_v49  ;;  %v3382_v49 = vpop.f32.mrf.mxu0 }
 0x243   : > { %3407 = vmatprep.mubr.msk.f32.mxu1 %vm589_vm0, %v5009_v17 }
 0x246   : > { %3408 = vmatmul.mubr.msk.f32.gmra.mxu1 %vm589_vm0, %v5018_v37  ;;  %v2124_v14 = vpop.f32.mrf.mxu1 }
 0x247   : > { %3410 = vmatprep.mubr.msk.f32.mxu1 %vm589_vm0, %v955_v23  ;;  %v2125_v0 = vadd.f32 %v5238_v55, %v2124_v14  ;;  %v2399_v14 = vpop.f32.mrf.mxu0 }
 0x248   : > { %v2126_v4 = vpop.f32.mrf.mxu1 }
 0x249   : > { %v2350_v6 = vadd.f32 %v2349_v48, %v2125_v0 }
 0x24a   : > { %3411 = vmatmul.mubr.msk.f32.gmra.mxu1 %vm589_vm0, %v956_v5  ;;  %v2129_v17 = vpop.f32.mrf.mxu1 }
 0x24b   : > { %v2508_v10 = vmax.f32 %v2350_v6, 0.0  ;;  %v2130_v1 = vadd.f32 %v5238_v55, %v2129_v17 }
 0x24c   : > { %v2131_v7 = vpop.f32.mrf.mxu1 }
 0x24d   : > { %v2355_v50 = vadd.f32 %v3367_v58, %v2130_v1  ;;  %3421 = vmatprep.mubr.msk.f32.mxu0 %vm589_vm0, %v2508_v10  ;;  %v3385_v7 = vpop.f32.mrf.mxu0 }
 0x24f   : > { %v2509_v37 = vmax.f32 %v2355_v50, 0.0 }
 0x251   : > { %3422 = vmatmul.mubr.msk.f32.vlgmr.msra.gmra.mxu0 %vm589_vm0, %v2509_v37 }
 0x253   : > { %v2134_v34 = vpop.f32.mrf.mxu1 }
 0x254   : > { %v2135_v21 = vadd.f32 %v5238_v55, %v2134_v34 }
 0x255   : > { %v2136_v11 = vpop.f32.mrf.mxu1 }
 0x256   : > { %v2360_v26 = vadd.f32 %v2359_v2, %v2135_v21 }
 0x257   : > { %v2139_v36 = vpop.f32.mrf.mxu1 }
 0x258   : > { %v2510_v52 = vmax.f32 %v2360_v26, 0.0  ;;  %v2140_v16 = vadd.f32 %v5238_v55, %v2139_v36 }
 0x259   : > { %v2141_v61 = vpop.f32.mrf.mxu1 }
 0x25a   : > { %v2365_v20 = vadd.f32 %v3370_v63, %v2140_v16  ;;  %3424 = vmatprep.mubr.msk.f32.mxu0 %vm589_vm0, %v2510_v52  ;;  %v2409_v63 = vpop.f32.mrf.mxu0 }
 0x25c   : > { %v2511_v60 = vmax.f32 %v2365_v20, 0.0  ;;  %v3388_v61 = vpop.f32.mrf.mxu0 }
 0x25e   : > { %3425 = vmatmul.mubr.msk.f32.gmra.mxu0 %vm589_vm0, %v2511_v60 }
 0x25f   : > { %v2144_v15 = vpop.f32.mrf.mxu1 }
 0x260   : > { %v2145_v3 = vadd.f32 %v5238_v55, %v2144_v15 }
 0x261   : > { %v2146_v19 = vpop.f32.mrf.mxu1 }
 0x262   : > { %v2370_v18 = vadd.f32 %v2369_v31, %v2145_v3 }
 0x263   : > { %v2149_v32 = vpop.f32.mrf.mxu1 }
 0x264   : > { %v2512_v9 = vmax.f32 %v2370_v18, 0.0  ;;  %v2150_v30 = vadd.f32 %v5238_v55, %v2149_v32 }
 0x265   : > { %v2151_v13 = vpop.f32.mrf.mxu1 }
 0x266   : > { %v2375_v12 = vadd.f32 %v3373_v24, %v2150_v30  ;;  %3427 = vmatprep.mubr.msk.f32.mxu0 %vm589_vm0, %v2512_v9  ;;  %v2419_v24 = vpop.f32.mrf.mxu0 }
 0x268   : > { %v2513_v62 = vmax.f32 %v2375_v12, 0.0  ;;  %v3391_v13 = vpop.f32.mrf.mxu0 }
 0x26a   : > { %3428 = vmatmul.mubr.msk.f32.gmra.mxu0 %vm589_vm0, %v2513_v62 }
 0x26b   : > { %v2154_v35 = vpop.f32.mrf.mxu1 }
 0x26c   : > { %v2155_v40 = vadd.f32 %v5238_v55, %v2154_v35 }
 0x26d   : > { %v2156_v28 = vpop.f32.mrf.mxu1 }
 0x26e   : > { %v2380_v46 = vadd.f32 %v2379_v42, %v2155_v40 }
 0x26f   : > { %v2159_v33 = vpop.f32.mrf.mxu1 }
 0x270   : > { %v2514_v27 = vmax.f32 %v2380_v46, 0.0  ;;  %v2160_v45 = vadd.f32 %v5238_v55, %v2159_v33 }
 0x271   : > { %v2161_v59 = vpop.f32.mrf.mxu1 }
 0x272   : > { %v2385_v22 = vadd.f32 %v3376_v8, %v2160_v45  ;;  %3430 = vmatprep.mubr.msk.f32.mxu0 %vm589_vm0, %v2514_v27  ;;  %v2429_v8 = vpop.f32.mrf.mxu0 }
 0x274   : > { %v2515_v54 = vmax.f32 %v2385_v22, 0.0  ;;  %v3394_v59 = vpop.f32.mrf.mxu0 }
 0x276   : > { %3431 = vmatmul.mubr.msk.f32.gmra.mxu0 %vm589_vm0, %v2515_v54 }
 0x277   : > { %v2164_v25 = vpop.f32.mrf.mxu1 }
 0x278   : > { %v2165_v51 = vadd.f32 %v5238_v55, %v2164_v25 }
 0x279   : > { %v2166_v29 = vpop.f32.mrf.mxu1 }
 0x27a   : > { %v2390_v47 = vadd.f32 %v2389_v53, %v2165_v51 }
 0x27b   : > { %v2169_v56 = vpop.f32.mrf.mxu1 }
 0x27c   : > { %v2516_v38 = vmax.f32 %v2390_v47, 0.0  ;;  %v2170_v57 = vadd.f32 %v5238_v55, %v2169_v56 }
 0x27d   : > { %v2171_v43 = vpop.f32.mrf.mxu1 }
 0x27e   : > { %v2395_v44 = vadd.f32 %v3379_v41, %v2170_v57  ;;  %3433 = vmatprep.mubr.msk.f32.mxu0 %vm589_vm0, %v2516_v38  ;;  %v2439_v41 = vpop.f32.mrf.mxu0 }
 0x280   : > { %v2517_v39 = vmax.f32 %v2395_v44, 0.0  ;;  %v3397_v43 = vpop.f32.mrf.mxu0 }
 0x282   : > { %3434 = vmatmul.mubr.msk.f32.gmra.mxu0 %vm589_vm0, %v2517_v39 }
 0x283   : > { %v2174_v23 = vpop.f32.mrf.mxu1 }
 0x284   : > { %v2175_v58 = vadd.f32 %v5238_v55, %v2174_v23 }
 0x285   : > { %v2176_v5 = vpop.f32.mrf.mxu1 }
 0x286   : > { %v2400_v0 = vadd.f32 %v2399_v14, %v2175_v58 }
 0x287   : > { %v2179_v48 = vpop.f32.mrf.mxu1 }
 0x288   : > { %v2518_v4 = vmax.f32 %v2400_v0, 0.0  ;;  %v2180_v6 = vadd.f32 %v5238_v55, %v2179_v48 }
 0x289   : > { %v2181_v17 = vpop.f32.mrf.mxu1 }
 0x28a   : > { %v2405_v10 = vadd.f32 %v3382_v49, %v2180_v6  ;;  %3436 = vmatprep.mubr.msk.f32.mxu0 %vm589_vm0, %v2518_v4  ;;  %v2449_v49 = vpop.f32.mrf.mxu0 }
 0x28c   : > { %v2519_v1 = vmax.f32 %v2405_v10, 0.0  ;;  %v3400_v17 = vpop.f32.mrf.mxu0 }
 0x28e   : > { %3437 = vmatmul.mubr.msk.f32.gmra.mxu0 %vm589_vm0, %v2519_v1 }
 0x28f   : > { %v2184_v50 = vpop.f32.mrf.mxu1 }
 0x290   : > { %v2185_v37 = vadd.f32 %v5238_v55, %v2184_v50 }
 0x291   : > { %v2186_v34 = vpop.f32.mrf.mxu1 }
 0x292   : > { %v2410_v21 = vadd.f32 %v2409_v63, %v2185_v37 }
 0x293   : > { %v2189_v2 = vpop.f32.mrf.mxu1 }
 0x294   : > { %v2520_v11 = vmax.f32 %v2410_v21, 0.0  ;;  %v2190_v26 = vadd.f32 %v5238_v55, %v2189_v2 }
 0x295   : > { %v2191_v36 = vpop.f32.mrf.mxu1 }
 0x296   : > { %v2415_v52 = vadd.f32 %v3385_v7, %v2190_v26  ;;  %3439 = vmatprep.mubr.msk.f32.mxu0 %vm589_vm0, %v2520_v11  ;;  %v2459_v7 = vpop.f32.mrf.mxu0 }
 0x298   : > { %v2521_v16 = vmax.f32 %v2415_v52, 0.0 }
 0x29a   : > { %3440 = vmatmul.mubr.msk.f32.gmra.mxu0 %vm589_vm0, %v2521_v16 }
 0x29b   : > { %v2194_v20 = vpop.f32.mrf.mxu1 }
 0x29c   : > { %v2195_v60 = vadd.f32 %v5238_v55, %v2194_v20 }
 0x29d   : > { %v2196_v15 = vpop.f32.mrf.mxu1 }
 0x29e   : > { %v2420_v3 = vadd.f32 %v2419_v24, %v2195_v60 }
 0x29f   : > { %v2199_v31 = vpop.f32.mrf.mxu1 }
 0x2a0   : > { %v2522_v19 = vmax.f32 %v2420_v3, 0.0  ;;  %v2200_v18 = vadd.f32 %v5238_v55, %v2199_v31 }
 0x2a1   : > { %v2201_v32 = vpop.f32.mrf.mxu1 }
 0x2a2   : > { %v2425_v9 = vadd.f32 %v3388_v61, %v2200_v18  ;;  %3442 = vmatprep.mubr.msk.f32.mxu0 %vm589_vm0, %v2522_v19 }
 0x2a4   : > { %v2523_v30 = vmax.f32 %v2425_v9, 0.0 }
 0x2a6   : > { %3443 = vmatmul.mubr.msk.f32.gmra.mxu0 %vm589_vm0, %v2523_v30 }
 0x2a7   : > { %v2204_v12 = vpop.f32.mrf.mxu1 }
 0x2a8   : > { %v2205_v62 = vadd.f32 %v5238_v55, %v2204_v12 }
 0x2a9   : > { %v2206_v35 = vpop.f32.mrf.mxu1 }
 0x2aa   : > { %v2430_v40 = vadd.f32 %v2429_v8, %v2205_v62 }
 0x2ab   : > { %v2209_v42 = vpop.f32.mrf.mxu1 }
 0x2ac   : > { %v2524_v28 = vmax.f32 %v2430_v40, 0.0  ;;  %v2210_v46 = vadd.f32 %v5238_v55, %v2209_v42 }
 0x2ad   : > { %v2211_v33 = vpop.f32.mrf.mxu1 }
 0x2ae   : > { %v2435_v27 = vadd.f32 %v3391_v13, %v2210_v46  ;;  %3445 = vmatprep.mubr.msk.f32.mxu0 %vm589_vm0, %v2524_v28 }
 0x2b0   : > { %v2525_v45 = vmax.f32 %v2435_v27, 0.0 }
 0x2b2   : > { %3446 = vmatmul.mubr.msk.f32.gmra.mxu0 %vm589_vm0, %v2525_v45 }
 0x2b3   : > { %v2214_v22 = vpop.f32.mrf.mxu1 }
 0x2b4   : > { %v2215_v54 = vadd.f32 %v5238_v55, %v2214_v22 }
 0x2b5   : > { %v2216_v25 = vpop.f32.mrf.mxu1 }
 0x2b6   : > { %v2440_v51 = vadd.f32 %v2439_v41, %v2215_v54 }
 0x2b7   : > { %v2219_v53 = vpop.f32.mrf.mxu1 }
 0x2b8   : > { %v2526_v29 = vmax.f32 %v2440_v51, 0.0  ;;  %v2220_v47 = vadd.f32 %v5238_v55, %v2219_v53 }
 0x2b9   : > { %v2221_v56 = vpop.f32.mrf.mxu1 }
 0x2ba   : > { %v2445_v38 = vadd.f32 %v3394_v59, %v2220_v47  ;;  %3448 = vmatprep.mubr.msk.f32.mxu0 %vm589_vm0, %v2526_v29 }
 0x2bc   : > { %v2527_v57 = vmax.f32 %v2445_v38, 0.0 }
 0x2be   : > { %3449 = vmatmul.mubr.msk.f32.gmra.mxu0 %vm589_vm0, %v2527_v57 }
 0x2bf   : > { %v2224_v44 = vpop.f32.mrf.mxu1 }
 0x2c0   : > { %v2225_v39 = vadd.f32 %v5238_v55, %v2224_v44 }
 0x2c1   : > { %v2226_v23 = vpop.f32.mrf.mxu1 }
 0x2c2   : > { %v2450_v58 = vadd.f32 %v2449_v49, %v2225_v39 }
 0x2c3   : > { %v2229_v14 = vpop.f32.mrf.mxu1 }
 0x2c4   : > { %v2528_v5 = vmax.f32 %v2450_v58, 0.0  ;;  %v2230_v0 = vadd.f32 %v5238_v55, %v2229_v14 }
 0x2c5   : > { %v2231_v48 = vpop.f32.mrf.mxu1 }
 0x2c6   : > { %v2455_v4 = vadd.f32 %v3397_v43, %v2230_v0  ;;  %3451 = vmatprep.mubr.msk.f32.mxu0 %vm589_vm0, %v2528_v5  ;;  %v5310_v48 = vld [vmem:[%s5471_s6] ss:$0 sm:$0xff] }
 0x2c8   : > { %v2529_v6 = vmax.f32 %v2455_v4, 0.0 }
 0x2ca   : > { %3452 = vmatmul.mubr.msk.f32.gmra.mxu0 %vm589_vm0, %v2529_v6 }
 0x2cb   : > { %v2234_v10 = vpop.f32.mrf.mxu1 }
 0x2cc   : > { %v2235_v1 = vadd.f32 %v5238_v55, %v2234_v10 }
 0x2cd   : > { %v2236_v50 = vpop.f32.mrf.mxu1 }
 0x2ce   : > { %v2460_v37 = vadd.f32 %v2459_v7, %v2235_v1 }
 0x2cf   : > { %v2239_v63 = vpop.f32.mrf.mxu1 }
 0x2d0   : > { %v2530_v34 = vmax.f32 %v2460_v37, 0.0  ;;  %v2240_v21 = vadd.f32 %v5238_v55, %v2239_v63 }
 0x2d1   : > { %v2241_v2 = vpop.f32.mrf.mxu1 }
 0x2d2   : > { %v2465_v11 = vadd.f32 %v3400_v17, %v2240_v21  ;;  %3454 = vmatprep.mubr.msk.f32.mxu0 %vm589_vm0, %v2530_v34  ;;  %v2544_v17 = vld [vmem:[%s4180_s8] sm:$0xff]  ;;  %v2547_v34 = vld [vmem:[%s4180_s8 + $0x18] sm:$0xff] }
 0x2d4   : > { %v2531_v26 = vmax.f32 %v2465_v11, 0.0  ;;  %v2546_v11 = vld [vmem:[%s4180_s8 + $0x10] sm:$0xff] }
 0x2d6   : > { %3455 = vmatmul.mubr.msk.f32.gmra.mxu0 %vm589_vm0, %v2531_v26 }
 0x2d7   : > { %v2244_v36 = vpop.f32.mrf.mxu1 }
 0x2d8   : > { %v2245_v8 = vadd.f32 %v5238_v55, %v2244_v36 }
 0x2d9   : > { %v2246_v52 = vpop.f32.mrf.mxu1 }
 0x2db   : > { %v2249_v16 = vpop.f32.mrf.mxu1 }
 0x2dc   : > { %v2250_v12 = vadd.f32 %v5238_v55, %v2249_v16 }
 0x2dd   : > { %v2251_v61 = vpop.f32.mrf.mxu1 }
 0x2df   : > { %v2254_v20 = vpop.f32.mrf.mxu1 }
 0x2e0   : > { %v2255_v33 = vadd.f32 %v5238_v55, %v2254_v20 }
 0x2e1   : > { %v2256_v60 = vpop.f32.mrf.mxu1 }
 0x2e2   : > { %v2549_v60 = vld [vmem:[%s4180_s8 + $0x28] sm:$0xff] }
 0x2e3   : > { %v2259_v24 = vpop.f32.mrf.mxu1 }
 0x2e4   : > { %v2260_v28 = vadd.f32 %v5238_v55, %v2259_v24 }
 0x2e5   : > { %v2261_v15 = vpop.f32.mrf.mxu1 }
 0x2e9   : > { %v2264_v3 = vpop.f32.mrf.mxu1 }
 0x2ea   : > { %v2265_v51 = vadd.f32 %v5238_v55, %v2264_v3  ;;  %v2548_v3 = vld [vmem:[%s4180_s8 + $0x20] sm:$0xff] }
 0x2eb   : > { %v2266_v31 = vpop.f32.mrf.mxu1 }
 0x2ee   : > { %v2269_v19 = vpop.f32.mrf.mxu1 }
 0x2ef   : > { %v2270_v41 = vadd.f32 %v5238_v55, %v2269_v19 }
 0x2f0   : > { %v2271_v18 = vpop.f32.mrf.mxu1 }
 0x2f5   : > { %v2274_v32 = vpop.f32.mrf.mxu1 }
 0x2f6   : > { %v2275_v44 = vadd.f32 %v5238_v55, %v2274_v32 }
 0x2f7   : > { %v2276_v9 = vpop.f32.mrf.mxu1 }
 0x2fa   : > { %v2279_v30 = vpop.f32.mrf.mxu1 }
 0x2fb   : > { %v2280_v57 = vadd.f32 %v5238_v55, %v2279_v30  ;;  %v2545_v55 = vld [vmem:[%s4180_s8 + $0x8] sm:$0xff] }
 0x2fc   : > { %v2281_v13 = vpop.f32.mrf.mxu1 }
 0x2fd   : > { %v2551_v13 = vld [vmem:[%s4180_s8 + $0x38] sm:$0xff] }
 0x2fe   : > { %v3403_v62 = vpop.f32.mrf.mxu1 }
 0x2ff   : > { %v2475_v35 = vadd.f32 %v3403_v62, %v2250_v12 }
 0x300   : > { %v2469_v40 = vpop.f32.mrf.mxu1 }
 0x301   : > { %v2470_v42 = vadd.f32 %v2469_v40, %v2245_v8  ;;  %v2533_v45 = vmax.f32 %v2475_v35, 0.0  ;;  %v2550_v8 = vld [vmem:[%s4180_s8 + $0x30] sm:$0xff] }
 0x302   : > { %v3406_v46 = vpop.f32.mrf.mxu1 }
 0x303   : > { %v2532_v27 = vmax.f32 %v2470_v42, 0.0  ;;  %v2485_v59 = vadd.f32 %v3406_v46, %v2260_v28 }
 0x304   : > { %v2479_v22 = vpop.f32.mrf.mxu1 }
 0x305   : > { %v2480_v54 = vadd.f32 %v2479_v22, %v2255_v33  ;;  %3457 = vmatprep.mubr.msk.f32.mxu0 %vm589_vm0, %v2532_v27  ;;  %v2535_v29 = vmax.f32 %v2485_v59, 0.0  ;;  %v2553_v27 = vld [vmem:[%s4180_s8 + $0x48] sm:$0xff]  ;;  %v2552_v22 = vld [vmem:[%s4180_s8 + $0x40] sm:$0xff] }
 0x306   : > { %v3409_v25 = vpop.f32.mrf.mxu1  ;;  %3458 = vmatmul.mubr.msk.f32.gmra.mxu0 %vm589_vm0, %v2533_v45 }
 0x307   : > { %v2534_v53 = vmax.f32 %v2480_v54, 0.0  ;;  %v2495_v47 = vadd.f32 %v3409_v25, %v2270_v41 }
 0x308   : > { %v2489_v56 = vpop.f32.mrf.mxu1 }
 0x309   : > { %v2490_v38 = vadd.f32 %v2489_v56, %v2265_v51  ;;  %3460 = vmatprep.mubr.msk.f32.mxu0 %vm589_vm0, %v2534_v53  ;;  %v2537_v49 = vmax.f32 %v2495_v47, 0.0  ;;  %v2555_v47 = vld [vmem:[%s4180_s8 + $0x58] sm:$0xff] }
 0x30a   : > { %v3412_v43 = vpop.f32.mrf.mxu1  ;;  %3461 = vmatmul.mubr.msk.f32.gmra.mxu0 %vm589_vm0, %v2535_v29 }
 0x30b   : > { %v2536_v39 = vmax.f32 %v2490_v38, 0.0  ;;  %v2505_v23 = vadd.f32 %v3412_v43, %v2280_v57  ;;  %v2554_v57 = vld [vmem:[%s4180_s8 + $0x50] sm:$0xff] }
 0x30c   : > { %v2499_v58 = vpop.f32.mrf.mxu1 }
 0x30d   : > { %v2500_v14 = vadd.f32 %v2499_v58, %v2275_v44  ;;  %3463 = vmatprep.mubr.msk.f32.mxu0 %vm589_vm0, %v2536_v39  ;;  %v2539_v0 = vmax.f32 %v2505_v23, 0.0 }
 0x30e   : > { %3464 = vmatmul.mubr.msk.f32.gmra.mxu0 %vm589_vm0, %v2537_v49 }
 0x30f   : > { %v2538_v5 = vmax.f32 %v2500_v14, 0.0  ;;  %v2557_v14 = vld [vmem:[%s4180_s8 + $0x68] sm:$0xff] }
 0x311   : > { %3466 = vmatprep.mubr.msk.f32.mxu0 %vm589_vm0, %v2538_v5  ;;  %v3423_v4 = vpop.f32.mrf.mxu0 }
 0x312   : > { %3467 = vmatmul.mubr.msk.f32.gmra.mxu0 %vm589_vm0, %v2539_v0  ;;  %v2751_v6 = vadd.f32 %v3423_v4, %v5310_v48 }
 0x313   : > { %v2745_v10 = vpop.f32.mrf.mxu0 }
 0x314   : > { %v2905_v1 = vadd.f32 %v2751_v6, %v2545_v55  ;;  %v2746_v7 = vadd.f32 %v5310_v48, %v2745_v10  ;;  %v2556_v55 = vld [vmem:[%s4180_s8 + $0x60] sm:$0xff] }
 0x316   : > { %v2937_v50 = vmax.f32 %v2905_v1, 0.0  ;;  %v2904_v37 = vadd.f32 %v2746_v7, %v2544_v17 }
 0x318   : > { %2969 = vst [vmem:[%s5320_s18 + $0x8] sm:$0xff] %v2937_v50  ;;  %v2936_v63 = vmax.f32 %v2904_v37, 0.0  ;;  %v2559_v50 = vld [vmem:[%s4180_s8 + $0x78] sm:$0xff] }
 0x31a   : > { %2968 = vst [vmem:[%s5320_s18] sm:$0xff] %v2936_v63 }
 0x31e   : > { %v3426_v21 = vpop.f32.mrf.mxu0 }
 0x31f   : > { %v2761_v2 = vadd.f32 %v3426_v21, %v5310_v48 }
 0x320   : > { %v2755_v26 = vpop.f32.mrf.mxu0 }
 0x321   : > { %v2907_v36 = vadd.f32 %v2761_v2, %v2547_v34  ;;  %v2756_v52 = vadd.f32 %v5310_v48, %v2755_v26  ;;  %v2558_v34 = vld [vmem:[%s4180_s8 + $0x70] sm:$0xff] }
 0x323   : > { %v2939_v16 = vmax.f32 %v2907_v36, 0.0  ;;  %v2906_v61 = vadd.f32 %v2756_v52, %v2546_v11 }
 0x325   : > { %2971 = vst [vmem:[%s5320_s18 + $0x18] sm:$0xff] %v2939_v16  ;;  %v2938_v20 = vmax.f32 %v2906_v61, 0.0  ;;  %v2561_v16 = vld [vmem:[%s4180_s8 + $0x88] sm:$0xff] }
 0x327   : > { %2970 = vst [vmem:[%s5320_s18 + $0x10] sm:$0xff] %v2938_v20 }
 0x32a   : > { %v3429_v24 = vpop.f32.mrf.mxu0 }
 0x32b   : > { %v2771_v15 = vadd.f32 %v3429_v24, %v5310_v48 }
 0x32c   : > { %v2765_v31 = vpop.f32.mrf.mxu0 }
 0x32d   : > { %v2909_v19 = vadd.f32 %v2771_v15, %v2549_v60  ;;  %v2766_v18 = vadd.f32 %v5310_v48, %v2765_v31  ;;  %v2560_v60 = vld [vmem:[%s4180_s8 + $0x80] sm:$0xff] }
 0x32f   : > { %v2941_v32 = vmax.f32 %v2909_v19, 0.0  ;;  %v2908_v9 = vadd.f32 %v2766_v18, %v2548_v3 }
 0x331   : > { %2973 = vst [vmem:[%s5320_s18 + $0x28] sm:$0xff] %v2941_v32  ;;  %v2940_v30 = vmax.f32 %v2908_v9, 0.0  ;;  %v2563_v32 = vld [vmem:[%s4180_s8 + $0x98] sm:$0xff] }
 0x333   : > { %2972 = vst [vmem:[%s5320_s18 + $0x20] sm:$0xff] %v2940_v30 }
 0x336   : > { %v3432_v12 = vpop.f32.mrf.mxu0 }
 0x337   : > { %v2781_v62 = vadd.f32 %v3432_v12, %v5310_v48 }
 0x338   : > { %v2775_v35 = vpop.f32.mrf.mxu0 }
 0x339   : > { %v2911_v40 = vadd.f32 %v2781_v62, %v2551_v13  ;;  %v2776_v42 = vadd.f32 %v5310_v48, %v2775_v35  ;;  %v2562_v13 = vld [vmem:[%s4180_s8 + $0x90] sm:$0xff] }
 0x33b   : > { %v2943_v28 = vmax.f32 %v2911_v40, 0.0  ;;  %v2910_v46 = vadd.f32 %v2776_v42, %v2550_v8 }
 0x33d   : > { %2975 = vst [vmem:[%s5320_s18 + $0x38] sm:$0xff] %v2943_v28  ;;  %v2942_v33 = vmax.f32 %v2910_v46, 0.0  ;;  %v2565_v28 = vld [vmem:[%s4180_s8 + $0xa8] sm:$0xff] }
 0x33f   : > { %2974 = vst [vmem:[%s5320_s18 + $0x30] sm:$0xff] %v2942_v33 }
 0x342   : > { %v3435_v45 = vpop.f32.mrf.mxu0 }
 0x343   : > { %v2791_v59 = vadd.f32 %v3435_v45, %v5310_v48 }
 0x344   : > { %v2785_v54 = vpop.f32.mrf.mxu0 }
 0x345   : > { %v2913_v41 = vadd.f32 %v2791_v59, %v2553_v27  ;;  %v2786_v25 = vadd.f32 %v5310_v48, %v2785_v54  ;;  %v2564_v27 = vld [vmem:[%s4180_s8 + $0xa0] sm:$0xff] }
 0x347   : > { %v2945_v51 = vmax.f32 %v2913_v41, 0.0  ;;  %v2912_v53 = vadd.f32 %v2786_v25, %v2552_v22 }
 0x349   : > { %2977 = vst [vmem:[%s5320_s18 + $0x48] sm:$0xff] %v2945_v51  ;;  %v2944_v29 = vmax.f32 %v2912_v53, 0.0  ;;  %v2567_v51 = vld [vmem:[%s4180_s8 + $0xb8] sm:$0xff] }
 0x34b   : > { %2976 = vst [vmem:[%s5320_s18 + $0x40] sm:$0xff] %v2944_v29 }
 0x34e   : > { %v3438_v56 = vpop.f32.mrf.mxu0 }
 0x34f   : > { %v2801_v38 = vadd.f32 %v3438_v56, %v5310_v48 }
 0x350   : > { %v2795_v43 = vpop.f32.mrf.mxu0 }
 0x351   : > { %v2915_v44 = vadd.f32 %v2801_v38, %v2555_v47  ;;  %v2796_v39 = vadd.f32 %v5310_v48, %v2795_v43  ;;  %v2566_v47 = vld [vmem:[%s4180_s8 + $0xb0] sm:$0xff] }
 0x353   : > { %v2947_v49 = vmax.f32 %v2915_v44, 0.0  ;;  %v2914_v23 = vadd.f32 %v2796_v39, %v2554_v57 }
 0x355   : > { %2979 = vst [vmem:[%s5320_s18 + $0x58] sm:$0xff] %v2947_v49  ;;  %v2946_v58 = vmax.f32 %v2914_v23, 0.0  ;;  %v2569_v49 = vld [vmem:[%s4180_s8 + $0xc8] sm:$0xff] }
 0x357   : > { %2978 = vst [vmem:[%s5320_s18 + $0x50] sm:$0xff] %v2946_v58 }
 0x35a   : > { %v3441_v5 = vpop.f32.mrf.mxu0 }
 0x35b   : > { %v2811_v0 = vadd.f32 %v3441_v5, %v5310_v48 }
 0x35c   : > { %v2805_v4 = vpop.f32.mrf.mxu0 }
 0x35d   : > { %v2917_v6 = vadd.f32 %v2811_v0, %v2557_v14  ;;  %v2806_v17 = vadd.f32 %v5310_v48, %v2805_v4  ;;  %v2568_v14 = vld [vmem:[%s4180_s8 + $0xc0] sm:$0xff]  ;;  %v2571_v4 = vld [vmem:[%s4180_s8 + $0xd8] sm:$0xff] }
 0x35f   : > { %v2949_v10 = vmax.f32 %v2917_v6, 0.0  ;;  %v2916_v1 = vadd.f32 %v2806_v17, %v2556_v55 }
 0x361   : > { %2981 = vst [vmem:[%s5320_s18 + $0x68] sm:$0xff] %v2949_v10  ;;  %v2948_v7 = vmax.f32 %v2916_v1, 0.0 }
 0x363   : > { %2980 = vst [vmem:[%s5320_s18 + $0x60] sm:$0xff] %v2948_v7  ;;  %v2570_v7 = vld [vmem:[%s4180_s8 + $0xd0] sm:$0xff] }
 0x366   : > { %v3444_v37 = vpop.f32.mrf.mxu0 }
 0x367   : > { %v2821_v63 = vadd.f32 %v3444_v37, %v5310_v48 }
 0x368   : > { %v2815_v21 = vpop.f32.mrf.mxu0 }
 0x369   : > { %v2919_v2 = vadd.f32 %v2821_v63, %v2559_v50  ;;  %v2816_v11 = vadd.f32 %v5310_v48, %v2815_v21  ;;  %v2573_v21 = vld [vmem:[%s4180_s8 + $0xe8] sm:$0xff] }
 0x36b   : > { %v2951_v26 = vmax.f32 %v2919_v2, 0.0  ;;  %v2918_v36 = vadd.f32 %v2816_v11, %v2558_v34 }
 0x36d   : > { %2983 = vst [vmem:[%s5320_s18 + $0x78] sm:$0xff] %v2951_v26  ;;  %v2950_v52 = vmax.f32 %v2918_v36, 0.0 }
 0x36f   : > { %2982 = vst [vmem:[%s5320_s18 + $0x70] sm:$0xff] %v2950_v52  ;;  %v2572_v52 = vld [vmem:[%s4180_s8 + $0xe0] sm:$0xff] }
 0x372   : > { %v3447_v61 = vpop.f32.mrf.mxu0 }
 0x373   : > { %v2831_v20 = vadd.f32 %v3447_v61, %v5310_v48 }
 0x374   : > { %v2825_v24 = vpop.f32.mrf.mxu0 }
 0x375   : > { %v2921_v15 = vadd.f32 %v2831_v20, %v2561_v16  ;;  %v2826_v3 = vadd.f32 %v5310_v48, %v2825_v24  ;;  %v2575_v24 = vld [vmem:[%s4180_s8 + $0xf8] sm:$0xff] }
 0x377   : > { %v2953_v31 = vmax.f32 %v2921_v15, 0.0  ;;  %v2920_v19 = vadd.f32 %v2826_v3, %v2560_v60 }
 0x379   : > { %2985 = vst [vmem:[%s5320_s18 + $0x88] sm:$0xff] %v2953_v31  ;;  %v2952_v18 = vmax.f32 %v2920_v19, 0.0 }
 0x37b   : > { %2984 = vst [vmem:[%s5320_s18 + $0x80] sm:$0xff] %v2952_v18  ;;  %v2574_v18 = vld [vmem:[%s4180_s8 + $0xf0] sm:$0xff]  ;;  %s5425_s8 = scalar_lea.sflag [#allocation4], %s269_s14 }
 0x37e   : > { %v3450_v9 = vpop.f32.mrf.mxu0 }
 0x37f   : > { %v2841_v30 = vadd.f32 %v3450_v9, %v5310_v48 }
 0x380   : > { %v2835_v12 = vpop.f32.mrf.mxu0 }
 0x381   : > { %v2923_v62 = vadd.f32 %v2841_v30, %v2563_v32  ;;  %v2836_v8 = vadd.f32 %v5310_v48, %v2835_v12 }
 0x383   : > { %v2955_v35 = vmax.f32 %v2923_v62, 0.0  ;;  %v2922_v40 = vadd.f32 %v2836_v8, %v2562_v13 }
 0x385   : > { %2987 = vst [vmem:[%s5320_s18 + $0x98] sm:$0xff] %v2955_v35  ;;  %v2954_v42 = vmax.f32 %v2922_v40, 0.0 }
 0x387   : > { %2986 = vst [vmem:[%s5320_s18 + $0x90] sm:$0xff] %v2954_v42 }
 0x38a   : > { %v3453_v46 = vpop.f32.mrf.mxu0 }
 0x38b   : > { %v2851_v33 = vadd.f32 %v3453_v46, %v5310_v48 }
 0x38c   : > { %v2845_v45 = vpop.f32.mrf.mxu0 }
 0x38d   : > { %v2925_v59 = vadd.f32 %v2851_v33, %v2565_v28  ;;  %v2846_v22 = vadd.f32 %v5310_v48, %v2845_v45 }
 0x38f   : > { %v2957_v54 = vmax.f32 %v2925_v59, 0.0  ;;  %v2924_v41 = vadd.f32 %v2846_v22, %v2564_v27 }
 0x391   : > { %2989 = vst [vmem:[%s5320_s18 + $0xa8] sm:$0xff] %v2957_v54  ;;  %v2956_v25 = vmax.f32 %v2924_v41, 0.0 }
 0x393   : > { %2988 = vst [vmem:[%s5320_s18 + $0xa0] sm:$0xff] %v2956_v25 }
 0x396   : > { %v3456_v53 = vpop.f32.mrf.mxu0 }
 0x397   : > { %v2861_v29 = vadd.f32 %v3456_v53, %v5310_v48 }
 0x398   : > { %v2855_v56 = vpop.f32.mrf.mxu0 }
 0x399   : > { %v2927_v38 = vadd.f32 %v2861_v29, %v2567_v51  ;;  %v2856_v57 = vadd.f32 %v5310_v48, %v2855_v56 }
 0x39b   : > { %v2959_v43 = vmax.f32 %v2927_v38, 0.0  ;;  %v2926_v44 = vadd.f32 %v2856_v57, %v2566_v47 }
 0x39d   : > { %2991 = vst [vmem:[%s5320_s18 + $0xb8] sm:$0xff] %v2959_v43  ;;  %v2958_v39 = vmax.f32 %v2926_v44, 0.0 }
 0x39f   : > { %2990 = vst [vmem:[%s5320_s18 + $0xb0] sm:$0xff] %v2958_v39 }
 0x3c6   : > { %v3459_v23 = vpop.f32.mrf.mxu0 }
 0x3c7   : > { %v2871_v58 = vadd.f32 %v3459_v23, %v5310_v48 }
 0x3c8   : > { %v2865_v5 = vpop.f32.mrf.mxu0 }
 0x3c9   : > { %v2929_v0 = vadd.f32 %v2871_v58, %v2569_v49  ;;  %v2866_v55 = vadd.f32 %v5310_v48, %v2865_v5 }
 0x3ca   : > { %v3462_v6 = vpop.f32.mrf.mxu0 }
 0x3cb   : > { %v2961_v17 = vmax.f32 %v2929_v0, 0.0  ;;  %v2928_v10 = vadd.f32 %v2866_v55, %v2568_v14  ;;  %v2881_v1 = vadd.f32 %v3462_v6, %v5310_v48 }
 0x3cc   : > { %v2875_v50 = vpop.f32.mrf.mxu0 }
 0x3cd   : > { %2993 = vst [vmem:[%s5320_s18 + $0xc8] sm:$0xff] %v2961_v17  ;;  %v2960_v37 = vmax.f32 %v2928_v10, 0.0  ;;  %v2931_v63 = vadd.f32 %v2881_v1, %v2571_v4  ;;  %v2876_v34 = vadd.f32 %v5310_v48, %v2875_v50 }
 0x3ce   : > { %v3465_v2 = vpop.f32.mrf.mxu0 }
 0x3cf   : > { %2992 = vst [vmem:[%s5320_s18 + $0xc0] sm:$0xff] %v2960_v37  ;;  %v2963_v11 = vmax.f32 %v2931_v63, 0.0  ;;  %v2930_v26 = vadd.f32 %v2876_v34, %v2570_v7  ;;  %v2891_v36 = vadd.f32 %v3465_v2, %v5310_v48 }
 0x3d0   : > { %v2885_v16 = vpop.f32.mrf.mxu0 }
 0x3d1   : > { %2995 = vst [vmem:[%s5320_s18 + $0xd8] sm:$0xff] %v2963_v11  ;;  %v2962_v61 = vmax.f32 %v2930_v26, 0.0  ;;  %v2933_v20 = vadd.f32 %v2891_v36, %v2573_v21  ;;  %v2886_v60 = vadd.f32 %v5310_v48, %v2885_v16 }
 0x3d2   : > { %v3468_v15 = vpop.f32.mrf.mxu0 }
 0x3d3   : > { %2994 = vst [vmem:[%s5320_s18 + $0xd0] sm:$0xff] %v2962_v61  ;;  %v2965_v3 = vmax.f32 %v2933_v20, 0.0  ;;  %v2932_v31 = vadd.f32 %v2886_v60, %v2572_v52  ;;  %v2901_v19 = vadd.f32 %v3468_v15, %v5310_v48 }
 0x3d4   : > { %v2895_v32 = vpop.f32.mrf.mxu0 }
 0x3d5   : > { %2997 = vst [vmem:[%s5320_s18 + $0xe8] sm:$0xff] %v2965_v3  ;;  %v2964_v9 = vmax.f32 %v2932_v31, 0.0  ;;  %v2935_v30 = vadd.f32 %v2901_v19, %v2575_v24  ;;  %v2896_v13 = vadd.f32 %v5310_v48, %v2895_v32 }
 0x3d7   : > { %2996 = vst [vmem:[%s5320_s18 + $0xe0] sm:$0xff] %v2964_v9  ;;  %v2967_v12 = vmax.f32 %v2935_v30, 0.0  ;;  %v2934_v62 = vadd.f32 %v2896_v13, %v2574_v18 }
 0x3d9   : > { %2999 = vst [vmem:[%s5320_s18 + $0xf8] sm:$0xff] %v2967_v12  ;;  %v2966_v8 = vmax.f32 %v2934_v62, 0.0 }
 0x3db   : > { %2998 = vst [vmem:[%s5320_s18 + $0xf0] sm:$0xff] %v2966_v8 }
 0x3dc   : > { %4019 = shalt.err (!%p4016_p3)
}
 0x3dd   : > { %s4020_s14 = scalar_lea.hbm %s5417_s23, 4096  ;;  %s4024_s15 = scalar_lea.hbm %s5472_s7, 8192 }
 0x3de   : > { %p4021_p4 = scmp.ne.s32.totalorder %s5417_s23, %s4020_s14  ;;  %p4025_p9 = scmp.lt.s32.totalorder %s5417_s23, %s5472_s7 }
 0x3df   : > { %p4026_p10 = scmp.lt.s32.totalorder %s4024_s15, %s4020_s14 }
 0x3e0   : > { %p4022_p7 = pnand %p4021_p4, %p4153_p5 }
 0x3e1   : > { %p4027_p11 = por %p4026_p10, %p4025_p9 }
 0x3e2   : > { %p4023_p8 = pneg %p4022_p7 }
 0x3e4   : > { %p4028_p12 = pnand %p4027_p11, %p4023_p8 }
 0x3e6   : > { %4031 = shalt.err (!%p4028_p12)
}
 0x3e7   : > { %s4073_s21 = smov 128   ;;  %s4074_s22 = smov 8  }
 0x3e8   : > { %3477 = dma.vmem_to_hbm [thread:$0]  (%p4153_p5), %s5419_s20, 4096, %s5417_s23, %s5425_s8, %s4073_s21, %s4073_s21, %s4074_s22  }
 0x3e9 PF: > { %p3483_p13 = scmp.ge.s32.totalorder %s4066_s27, 2  ;;  %s3029_s28 = sand.u32 1, %s4054_s24  }
 0x3ea   : > { %s3030_s29 = scalar_lea.sflag [#allocation4], %s3029_s28 }
 0x3eb   : > { %p3480_p0 = pnand %p3483_p13, %p4157_p6 }
 0x3ed   : > { %p3481_p1 = pneg %p3480_p0 }
 0x3ef   : > { %4049 = dma.done.wait (%p3481_p1), %s3030_s29, 4096  }
 0x3f0   : > { %4051 = vsyncadd (%p3481_p1), %s3030_s29, 4294963200  ;;  %p17_p2 = scmp.ge.s32.totalorder %s4140_s30, 4   ;;  %s5475_s24 = smov %s4058_s25 }
 0x3f1   : > { %s5476_s25 = smov %s4062_s26  ;;  %s5477_s26 = smov %s4151_s10 }
 0x3f2   : > { %s5478_s27 = smov %s4140_s30  ;;  %19 = sbr.rel (!%p17_p2) target bundleno = 3 (0x3), region = 86 }
 0x3f7   :  { %3035 = vsyncpa [#allocation4], 1 }
 0x3f8   :  { %3037 = vsyncpa [#allocation4 + $0x1], 1 }

</bundles_post_ra>
